<compile_context>
chip_gen: v5e
topology: v5e:2x2
jax: 0.10.0
libtpu: 0.0.40
codegen_flags: <defaults>
</compile_context>

<pallas_src>
import functools

import jax
import jax.numpy as jnp
import numpy as np
from jax.experimental import pallas as pl
from jax.experimental.pallas import tpu as pltpu


# ---------------------------------------------------------------------------
# Host-side, one-time preparation helpers (pure layout plumbing)
# ---------------------------------------------------------------------------
def _gather_matrix(B, H, W, kh, kw, stride, *, spatial_major_out):
    """0/1 selection matrix realising a conv's im2col row-gather as a matmul.

    Input rows are assumed ordered (b, h, w).  For kernel tap q = i*kw + j and
    output position r_out, row q*n_out + r_out selects input row
    (b, stride*oh + i, stride*ow + j).
    """
    OH = (H - kh) // stride + 1
    OW = (W - kw) // stride + 1
    n_out = B * OH * OW
    G = np.zeros((kh * kw * n_out, B * H * W), np.float32)
    for i in range(kh):
        for j in range(kw):
            q = i * kw + j
            for b in range(B):
                for oh in range(OH):
                    for ow in range(OW):
                        if spatial_major_out:
                            r_out = (oh * OW + ow) * B + b
                        else:
                            r_out = (b * OH + oh) * OW + ow
                        r_in = (b * H + stride * oh + i) * W + (stride * ow + j)
                        G[q * n_out + r_out, r_in] = 1.0
    return G


def im2col(x, kh, kw, sh, sw):
    """x: [B, C, H, W] -> [B*OH*OW, C*kh*kw]; patch column order = (C, kh, kw)."""
    B, C, H, W = x.shape
    OH = (H - kh) // sh + 1
    OW = (W - kw) // sw + 1
    cols = []
    for i in range(kh):
        for j in range(kw):
            cols.append(x[:, :, i:i + sh * OH:sh, j:j + sw * OW:sw])  # [B,C,OH,OW]
    p = jnp.stack(cols, axis=0).reshape(kh, kw, B, C, OH, OW)
    p = p.transpose(2, 4, 5, 3, 0, 1)                 # [B, OH, OW, C, kh, kw]
    return p.reshape(B * OH * OW, C * kh * kw)


def prepare_params(params, eps=1e-5):
    """One-time host-side repack: BN fold, weight transposes, flatten fold, padding."""
    bf16, f32 = jnp.bfloat16, jnp.float32

    def bn_fold(c):
        s = c["gamma"] / jnp.sqrt(c["var"] + eps)
        scale = s.reshape(1, -1).astype(f32)
        shift = ((c["b"] - c["mean"]) * s + c["beta"]).reshape(1, -1).astype(f32)
        return scale, shift

    sc1, sh1 = bn_fold(params["conv1"])
    sc2, sh2 = bn_fold(params["conv2"])
    sc3, sh3 = bn_fold(params["conv3"])

    # conv weights: [Cout, Cin, kh, kw] -> matmul-ready layouts (bf16)
    w1 = params["conv1"]["w"].reshape(32, 2 * 8 * 8).T.astype(bf16)            # (128, 32)
    w2 = params["conv2"]["w"].transpose(2, 3, 1, 0).reshape(16, 32, 64).astype(bf16)
    w3 = params["conv3"]["w"].transpose(2, 3, 1, 0).reshape(9, 64, 64).astype(bf16)

    # fc1: fold torch's NCHW flatten (flat index = c*4 + (h*2 + w)) into 4 blocks
    wfc1 = params["fc1"]["w"].reshape(128, 64, 4).transpose(2, 1, 0).astype(bf16)  # (4,64,128)
    bfc1 = params["fc1"]["b"].reshape(1, -1).astype(f32)
    wfc2 = params["fc2"]["w"].T.astype(bf16)                                    # (128, 32)
    bfc2 = params["fc2"]["b"].reshape(1, -1).astype(f32)

    # output Linear, lane-padded from 3 -> 128 columns for a lane-dense store
    wout = jnp.zeros((32, 128), f32).at[:, :3].set(params["out"]["w"].T).astype(bf16)
    bout = jnp.zeros((1, 128), f32).at[0, :3].set(params["out"]["b"])

    return dict(w1=w1, sc1=sc1, sh1=sh1, w2=w2, sc2=sc2, sh2=sh2,
                w3=w3, sc3=sc3, sh3=sh3, wfc1=wfc1, bfc1=bfc1,
                wfc2=wfc2, bfc2=bfc2, wout=wout, bout=bout)


# ---------------------------------------------------------------------------
# The single fused Pallas kernel
# ---------------------------------------------------------------------------
def _dqn_kernel(p1, w1, sc1, sh1, g2, w2, sc2, sh2, g3, w3, sc3, sh3,
                wfc1, bfc1, wfc2, bfc2, wout, bout, o_ref):
    f32, bf16 = jnp.float32, jnp.bfloat16
    B = o_ref.shape[0]
    n2 = 16 * B          # conv2 output rows, ordered (b, oh, ow)
    n3 = 4 * B           # conv3 output rows, ordered (oh*2+ow, b)

    def bn_relu(acc, sc, sh):
        return jnp.maximum(acc * sc[...] + sh[...], 0.0)

    # --- conv1 + BN + ReLU (patches built host-side from the raw input) -----
    y1 = jnp.dot(p1[...], w1[...], preferred_element_type=f32)        # (B*100, 32)
    y1 = bn_relu(y1, sc1, sh1).astype(bf16)

    # --- conv2 + BN + ReLU: strided im2col via gather-by-matmul per tap -----
    acc = jnp.zeros((n2, 64), f32)
    for q in range(16):
        s_q = jnp.dot(g2[pl.ds(q * n2, n2), :], y1,
                      preferred_element_type=f32)                     # (n2, 32)
        acc = acc + jnp.dot(s_q.astype(bf16), w2[q],
                            preferred_element_type=f32)               # (n2, 64)
    y2 = bn_relu(acc, sc2, sh2).astype(bf16)

    # --- conv3 + BN + ReLU (rows emitted (spatial, batch) for fc1) ----------
    acc = jnp.zeros((n3, 64), f32)
    for q in range(9):
        s_q = jnp.dot(g3[pl.ds(q * n3, n3), :].astype(bf16), y2,
                      preferred_element_type=f32)                     # (n3, 64)
        acc = acc + jnp.dot(s_q.astype(bf16), w3[q],
                            preferred_element_type=f32)
    y3 = bn_relu(acc, sc3, sh3)                                       # f32 (n3, 64)

    # --- fc1 + ReLU: NCHW flatten folded into 4 per-position weight blocks --
    acc = jnp.zeros((B, 128), f32)
    for p in range(4):
        acc = acc + jnp.dot(y3[p * B:(p + 1) * B, :].astype(bf16), wfc1[p],
                            preferred_element_type=f32)
    z = jnp.maximum(acc + bfc1[...], 0.0).astype(bf16)                # (B, 128)

    # --- fc2 + ReLU ----------------------------------------------------------
    z = jnp.dot(z, wfc2[...], preferred_element_type=f32) + bfc2[...]
    z = jnp.maximum(z, 0.0).astype(bf16)                              # (B, 32)

    # --- output Linear, lane-padded to 128 columns (real logits in 0..2) ----
    o_ref[...] = jnp.dot(z, wout[...], preferred_element_type=f32) + bout[...]


# ---------------------------------------------------------------------------
# Forward pass wrapper: one pallas_call for the entire network
# ---------------------------------------------------------------------------
@jax.jit
def dqn_forward(prepped, x):
    """x: [B, 2, 44, 44] float32 -> Q-values [B, 3] float32."""
    B = x.shape[0]
    assert x.shape[1:] == (2, 44, 44), x.shape

    # conv1 im2col on the raw network input (single XLA gather, host side)
    p1 = im2col(x, 8, 8, 4, 4).astype(jnp.bfloat16)                   # (B*100, 128)

    # constant 0/1 gather matrices for the in-kernel conv2/conv3 im2col
    g2 = jnp.asarray(_gather_matrix(B, 10, 10, 4, 4, 2, spatial_major_out=False),
                     jnp.bfloat16)                                    # (16*16B, 100B)
    g3 = jnp.asarray(_gather_matrix(B, 4, 4, 3, 3, 1, spatial_major_out=True),
                     jnp.float32)                                     # (9*4B, 16B)

    pp = prepped
    args = (p1, pp["w1"], pp["sc1"], pp["sh1"], g2, pp["w2"], pp["sc2"], pp["sh2"],
            g3, pp["w3"], pp["sc3"], pp["sh3"], pp["wfc1"], pp["bfc1"],
            pp["wfc2"], pp["bfc2"], pp["wout"], pp["bout"])

    n1, n2, n3 = 100 * B, 16 * B, 4 * B
    flops = 2 * (n1 * 128 * 32
                 + 16 * (n2 * n1 * 32 + n2 * 32 * 64)
                 + 9 * (n3 * n2 * 64 + n3 * 64 * 64)
                 + 4 * B * 64 * 128 + B * 128 * 32 + B * 32 * 128)
    bytes_accessed = sum(int(np.prod(a.shape)) * a.dtype.itemsize for a in args)
    bytes_accessed += B * 128 * 4

    out = pl.pallas_call(
        _dqn_kernel,
        out_shape=jax.ShapeDtypeStruct((B, 128), jnp.float32),
        in_specs=[pl.BlockSpec(memory_space=pltpu.MemorySpace.VMEM)] * len(args),
        out_specs=pl.BlockSpec(memory_space=pltpu.MemorySpace.VMEM),
        cost_estimate=pl.CostEstimate(flops=flops, transcendentals=0,
                                      bytes_accessed=bytes_accessed),
    )(*args)
    return out[:, :3]


# ---------------------------------------------------------------------------
# Deterministic parameter initialization (shapes from DQN.__init__)
# ---------------------------------------------------------------------------
def init_params(key):
    keys = jax.random.split(key, 24)
    k = iter(keys)

    def conv_block(cout, cin, kh, kw):
        return dict(
            w=jax.random.normal(next(k), (cout, cin, kh, kw), jnp.float32) * 0.05,
            b=jax.random.normal(next(k), (cout,), jnp.float32) * 0.05,
            gamma=1.0 + 0.1 * jax.random.normal(next(k), (cout,), jnp.float32),
            beta=0.1 * jax.random.normal(next(k), (cout,), jnp.float32),
            mean=0.1 * jax.random.normal(next(k), (cout,), jnp.float32),
            var=1.0 + 0.1 * jnp.abs(jax.random.normal(next(k), (cout,), jnp.float32)),
        )

    def linear_block(nout, nin):
        return dict(
            w=jax.random.normal(next(k), (nout, nin), jnp.float32) * 0.05,
            b=jax.random.normal(next(k), (nout,), jnp.float32) * 0.05,
        )

    return dict(
        conv1=conv_block(32, 2, 8, 8),
        conv2=conv_block(64, 32, 4, 4),
        conv3=conv_block(64, 64, 3, 3),
        fc1=linear_block(128, 256),
        fc2=linear_block(32, 128),
        out=linear_block(3, 32),
    )


# ---------------------------------------------------------------------------
# Pure-JAX reference (eval-mode BN) for a loose numerical sanity check
# ---------------------------------------------------------------------------
def dqn_reference(params, x, eps=1e-5):
    def conv_bn_relu(t, c, stride):
        y = jax.lax.conv_general_dilated(
            t, c["w"], window_strides=(stride, stride), padding="VALID",
            dimension_numbers=("NCHW", "OIHW", "NCHW"))
        y = y + c["b"][None, :, None, None]
        y = (y - c["mean"][None, :, None, None]) * (
            c["gamma"][None, :, None, None]
            / jnp.sqrt(c["var"][None, :, None, None] + eps))
        y = y + c["beta"][None, :, None, None]
        return jnp.maximum(y, 0.0)

    t = conv_bn_relu(x, params["conv1"], 4)
    t = conv_bn_relu(t, params["conv2"], 2)
    t = conv_bn_relu(t, params["conv3"], 1)
    t = t.reshape(t.shape[0], -1)
    t = jnp.maximum(t @ params["fc1"]["w"].T + params["fc1"]["b"], 0.0)
    t = jnp.maximum(t @ params["fc2"]["w"].T + params["fc2"]["b"], 0.0)
    return t @ params["out"]["w"].T + params["out"]["b"]


if __name__ == "__main__":
    key = jax.random.PRNGKey(0)
    pkey, xkey = jax.random.split(key)
    params = init_params(pkey)
    prepped = prepare_params(params)

    # B=2, 2 stacked frames (frame diff), 44x44 spatial -> conv features 64*2*2=256
    x = jax.random.normal(xkey, (2, 2, 44, 44), jnp.float32)

    q_values = jax.block_until_ready(dqn_forward(prepped, x))
    assert q_values.shape == (2, 3), q_values.shape
    assert q_values.dtype == jnp.float32

    q_ref = jax.block_until_ready(dqn_reference(params, x))
    np.testing.assert_allclose(np.asarray(q_values), np.asarray(q_ref),
                               atol=5e-2, rtol=5e-2)
    print("KERNEL_OK")
</pallas_src>

<mosaic_0001>
module attributes {stable_mosaic.version = 11 : i64} {
  func.func @_dqn_kernel(%arg0: memref<200x128xbf16, #tpu.memory_space<vmem>>, %arg1: memref<128x32xbf16, #tpu.memory_space<vmem>>, %arg2: memref<1x32xf32, #tpu.memory_space<vmem>>, %arg3: memref<1x32xf32, #tpu.memory_space<vmem>>, %arg4: memref<512x200xbf16, #tpu.memory_space<vmem>>, %arg5: memref<16x32x64xbf16, #tpu.memory_space<vmem>>, %arg6: memref<1x64xf32, #tpu.memory_space<vmem>>, %arg7: memref<1x64xf32, #tpu.memory_space<vmem>>, %arg8: memref<72x32xf32, #tpu.memory_space<vmem>>, %arg9: memref<9x64x64xbf16, #tpu.memory_space<vmem>>, %arg10: memref<1x64xf32, #tpu.memory_space<vmem>>, %arg11: memref<1x64xf32, #tpu.memory_space<vmem>>, %arg12: memref<4x64x128xbf16, #tpu.memory_space<vmem>>, %arg13: memref<1x128xf32, #tpu.memory_space<vmem>>, %arg14: memref<128x32xbf16, #tpu.memory_space<vmem>>, %arg15: memref<1x32xf32, #tpu.memory_space<vmem>>, %arg16: memref<32x128xbf16, #tpu.memory_space<vmem>>, %arg17: memref<1x128xf32, #tpu.memory_space<vmem>>, %arg18: memref<2x128xf32, #tpu.memory_space<vmem>>) attributes {dimension_semantics = [], scalar_prefetch = 0 : i64, scratch_operands = 0 : i64, tpu.core_type = #tpu.core_type<tc>} {
    %c0 = arith.constant 0 : index
    %c0_0 = arith.constant 0 : index
    %0 = vector.load %arg0[%c0, %c0_0] : memref<200x128xbf16, #tpu.memory_space<vmem>>, vector<200x128xbf16>
    %c0_1 = arith.constant 0 : index
    %c0_2 = arith.constant 0 : index
    %1 = vector.load %arg1[%c0_1, %c0_2] : memref<128x32xbf16, #tpu.memory_space<vmem>>, vector<128x32xbf16>
    %cst = arith.constant dense<0.000000e+00> : vector<200x32xf32>
    %2 = tpu.matmul %0, %1, %cst {dimension_numbers = #tpu.dot_dimension_numbers<[1], [0], [0], [1], [0, 0, 1, 1], [], []>} : vector<200x128xbf16>, vector<128x32xbf16>, vector<200x32xf32> -> vector<200x32xf32>
    %c0_3 = arith.constant 0 : index
    %c0_4 = arith.constant 0 : index
    %3 = vector.load %arg2[%c0_3, %c0_4] : memref<1x32xf32, #tpu.memory_space<vmem>>, vector<1x32xf32>
    %4 = vector.broadcast %3 : vector<1x32xf32> to vector<200x32xf32>
    %5 = arith.mulf %2, %4 : vector<200x32xf32>
    %c0_5 = arith.constant 0 : index
    %c0_6 = arith.constant 0 : index
    %6 = vector.load %arg3[%c0_5, %c0_6] : memref<1x32xf32, #tpu.memory_space<vmem>>, vector<1x32xf32>
    %7 = vector.broadcast %6 : vector<1x32xf32> to vector<200x32xf32>
    %8 = arith.addf %5, %7 : vector<200x32xf32>
    %cst_7 = arith.constant 0.000000e+00 : f32
    %9 = vector.broadcast %cst_7 : f32 to vector<200x32xf32>
    %10 = arith.maximumf %8, %9 : vector<200x32xf32>
    %11 = arith.truncf %10 : vector<200x32xf32> to vector<200x32xbf16>
    %cst_8 = arith.constant 0.000000e+00 : f32
    %12 = vector.broadcast %cst_8 : f32 to vector<32x64xf32>
    %c0_9 = arith.constant 0 : index
    %c0_10 = arith.constant 0 : index
    %13 = vector.load %arg4[%c0_9, %c0_10] : memref<512x200xbf16, #tpu.memory_space<vmem>>, vector<32x200xbf16>
    %cst_11 = arith.constant dense<0.000000e+00> : vector<32x32xf32>
    %14 = tpu.matmul %13, %11, %cst_11 {dimension_numbers = #tpu.dot_dimension_numbers<[1], [0], [0], [1], [0, 0, 1, 1], [], []>} : vector<32x200xbf16>, vector<200x32xbf16>, vector<32x32xf32> -> vector<32x32xf32>
    %15 = arith.truncf %14 : vector<32x32xf32> to vector<32x32xbf16>
    %c0_12 = arith.constant 0 : index
    %c0_13 = arith.constant 0 : index
    %c0_14 = arith.constant 0 : index
    %16 = vector.load %arg5[%c0_12, %c0_13, %c0_14] : memref<16x32x64xbf16, #tpu.memory_space<vmem>>, vector<1x32x64xbf16>
    %17 = vector.shape_cast %16 : vector<1x32x64xbf16> to vector<32x64xbf16>
    %cst_15 = arith.constant dense<0.000000e+00> : vector<32x64xf32>
    %18 = tpu.matmul %15, %17, %cst_15 {dimension_numbers = #tpu.dot_dimension_numbers<[1], [0], [0], [1], [0, 0, 1, 1], [], []>} : vector<32x32xbf16>, vector<32x64xbf16>, vector<32x64xf32> -> vector<32x64xf32>
    %19 = arith.addf %12, %18 : vector<32x64xf32>
    %c32 = arith.constant 32 : index
    %c0_16 = arith.constant 0 : index
    %20 = vector.load %arg4[%c32, %c0_16] : memref<512x200xbf16, #tpu.memory_space<vmem>>, vector<32x200xbf16>
    %cst_17 = arith.constant dense<0.000000e+00> : vector<32x32xf32>
    %21 = tpu.matmul %20, %11, %cst_17 {dimension_numbers = #tpu.dot_dimension_numbers<[1], [0], [0], [1], [0, 0, 1, 1], [], []>} : vector<32x200xbf16>, vector<200x32xbf16>, vector<32x32xf32> -> vector<32x32xf32>
    %22 = arith.truncf %21 : vector<32x32xf32> to vector<32x32xbf16>
    %c1 = arith.constant 1 : index
    %c0_18 = arith.constant 0 : index
    %c0_19 = arith.constant 0 : index
    %23 = vector.load %arg5[%c1, %c0_18, %c0_19] : memref<16x32x64xbf16, #tpu.memory_space<vmem>>, vector<1x32x64xbf16>
    %24 = vector.shape_cast %23 : vector<1x32x64xbf16> to vector<32x64xbf16>
    %cst_20 = arith.constant dense<0.000000e+00> : vector<32x64xf32>
    %25 = tpu.matmul %22, %24, %cst_20 {dimension_numbers = #tpu.dot_dimension_numbers<[1], [0], [0], [1], [0, 0, 1, 1], [], []>} : vector<32x32xbf16>, vector<32x64xbf16>, vector<32x64xf32> -> vector<32x64xf32>
    %26 = arith.addf %19, %25 : vector<32x64xf32>
    %c64 = arith.constant 64 : index
    %c0_21 = arith.constant 0 : index
    %27 = vector.load %arg4[%c64, %c0_21] : memref<512x200xbf16, #tpu.memory_space<vmem>>, vector<32x200xbf16>
    %cst_22 = arith.constant dense<0.000000e+00> : vector<32x32xf32>
    %28 = tpu.matmul %27, %11, %cst_22 {dimension_numbers = #tpu.dot_dimension_numbers<[1], [0], [0], [1], [0, 0, 1, 1], [], []>} : vector<32x200xbf16>, vector<200x32xbf16>, vector<32x32xf32> -> vector<32x32xf32>
    %29 = arith.truncf %28 : vector<32x32xf32> to vector<32x32xbf16>
    %c2 = arith.constant 2 : index
    %c0_23 = arith.constant 0 : index
    %c0_24 = arith.constant 0 : index
    %30 = vector.load %arg5[%c2, %c0_23, %c0_24] : memref<16x32x64xbf16, #tpu.memory_space<vmem>>, vector<1x32x64xbf16>
    %31 = vector.shape_cast %30 : vector<1x32x64xbf16> to vector<32x64xbf16>
    %cst_25 = arith.constant dense<0.000000e+00> : vector<32x64xf32>
    %32 = tpu.matmul %29, %31, %cst_25 {dimension_numbers = #tpu.dot_dimension_numbers<[1], [0], [0], [1], [0, 0, 1, 1], [], []>} : vector<32x32xbf16>, vector<32x64xbf16>, vector<32x64xf32> -> vector<32x64xf32>
    %33 = arith.addf %26, %32 : vector<32x64xf32>
    %c96 = arith.constant 96 : index
    %c0_26 = arith.constant 0 : index
    %34 = vector.load %arg4[%c96, %c0_26] : memref<512x200xbf16, #tpu.memory_space<vmem>>, vector<32x200xbf16>
    %cst_27 = arith.constant dense<0.000000e+00> : vector<32x32xf32>
    %35 = tpu.matmul %34, %11, %cst_27 {dimension_numbers = #tpu.dot_dimension_numbers<[1], [0], [0], [1], [0, 0, 1, 1], [], []>} : vector<32x200xbf16>, vector<200x32xbf16>, vector<32x32xf32> -> vector<32x32xf32>
    %36 = arith.truncf %35 : vector<32x32xf32> to vector<32x32xbf16>
    %c3 = arith.constant 3 : index
    %c0_28 = arith.constant 0 : index
    %c0_29 = arith.constant 0 : index
    %37 = vector.load %arg5[%c3, %c0_28, %c0_29] : memref<16x32x64xbf16, #tpu.memory_space<vmem>>, vector<1x32x64xbf16>
    %38 = vector.shape_cast %37 : vector<1x32x64xbf16> to vector<32x64xbf16>
    %cst_30 = arith.constant dense<0.000000e+00> : vector<32x64xf32>
    %39 = tpu.matmul %36, %38, %cst_30 {dimension_numbers = #tpu.dot_dimension_numbers<[1], [0], [0], [1], [0, 0, 1, 1], [], []>} : vector<32x32xbf16>, vector<32x64xbf16>, vector<32x64xf32> -> vector<32x64xf32>
    %40 = arith.addf %33, %39 : vector<32x64xf32>
    %c128 = arith.constant 128 : index
    %c0_31 = arith.constant 0 : index
    %41 = vector.load %arg4[%c128, %c0_31] : memref<512x200xbf16, #tpu.memory_space<vmem>>, vector<32x200xbf16>
    %cst_32 = arith.constant dense<0.000000e+00> : vector<32x32xf32>
    %42 = tpu.matmul %41, %11, %cst_32 {dimension_numbers = #tpu.dot_dimension_numbers<[1], [0], [0], [1], [0, 0, 1, 1], [], []>} : vector<32x200xbf16>, vector<200x32xbf16>, vector<32x32xf32> -> vector<32x32xf32>
    %43 = arith.truncf %42 : vector<32x32xf32> to vector<32x32xbf16>
    %c4 = arith.constant 4 : index
    %c0_33 = arith.constant 0 : index
    %c0_34 = arith.constant 0 : index
    %44 = vector.load %arg5[%c4, %c0_33, %c0_34] : memref<16x32x64xbf16, #tpu.memory_space<vmem>>, vector<1x32x64xbf16>
    %45 = vector.shape_cast %44 : vector<1x32x64xbf16> to vector<32x64xbf16>
    %cst_35 = arith.constant dense<0.000000e+00> : vector<32x64xf32>
    %46 = tpu.matmul %43, %45, %cst_35 {dimension_numbers = #tpu.dot_dimension_numbers<[1], [0], [0], [1], [0, 0, 1, 1], [], []>} : vector<32x32xbf16>, vector<32x64xbf16>, vector<32x64xf32> -> vector<32x64xf32>
    %47 = arith.addf %40, %46 : vector<32x64xf32>
    %c160 = arith.constant 160 : index
    %c0_36 = arith.constant 0 : index
    %48 = vector.load %arg4[%c160, %c0_36] : memref<512x200xbf16, #tpu.memory_space<vmem>>, vector<32x200xbf16>
    %cst_37 = arith.constant dense<0.000000e+00> : vector<32x32xf32>
    %49 = tpu.matmul %48, %11, %cst_37 {dimension_numbers = #tpu.dot_dimension_numbers<[1], [0], [0], [1], [0, 0, 1, 1], [], []>} : vector<32x200xbf16>, vector<200x32xbf16>, vector<32x32xf32> -> vector<32x32xf32>
    %50 = arith.truncf %49 : vector<32x32xf32> to vector<32x32xbf16>
    %c5 = arith.constant 5 : index
    %c0_38 = arith.constant 0 : index
    %c0_39 = arith.constant 0 : index
    %51 = vector.load %arg5[%c5, %c0_38, %c0_39] : memref<16x32x64xbf16, #tpu.memory_space<vmem>>, vector<1x32x64xbf16>
    %52 = vector.shape_cast %51 : vector<1x32x64xbf16> to vector<32x64xbf16>
    %cst_40 = arith.constant dense<0.000000e+00> : vector<32x64xf32>
    %53 = tpu.matmul %50, %52, %cst_40 {dimension_numbers = #tpu.dot_dimension_numbers<[1], [0], [0], [1], [0, 0, 1, 1], [], []>} : vector<32x32xbf16>, vector<32x64xbf16>, vector<32x64xf32> -> vector<32x64xf32>
    %54 = arith.addf %47, %53 : vector<32x64xf32>
    %c192 = arith.constant 192 : index
    %c0_41 = arith.constant 0 : index
    %55 = vector.load %arg4[%c192, %c0_41] : memref<512x200xbf16, #tpu.memory_space<vmem>>, vector<32x200xbf16>
    %cst_42 = arith.constant dense<0.000000e+00> : vector<32x32xf32>
    %56 = tpu.matmul %55, %11, %cst_42 {dimension_numbers = #tpu.dot_dimension_numbers<[1], [0], [0], [1], [0, 0, 1, 1], [], []>} : vector<32x200xbf16>, vector<200x32xbf16>, vector<32x32xf32> -> vector<32x32xf32>
    %57 = arith.truncf %56 : vector<32x32xf32> to vector<32x32xbf16>
    %c6 = arith.constant 6 : index
    %c0_43 = arith.constant 0 : index
    %c0_44 = arith.constant 0 : index
    %58 = vector.load %arg5[%c6, %c0_43, %c0_44] : memref<16x32x64xbf16, #tpu.memory_space<vmem>>, vector<1x32x64xbf16>
    %59 = vector.shape_cast %58 : vector<1x32x64xbf16> to vector<32x64xbf16>
    %cst_45 = arith.constant dense<0.000000e+00> : vector<32x64xf32>
    %60 = tpu.matmul %57, %59, %cst_45 {dimension_numbers = #tpu.dot_dimension_numbers<[1], [0], [0], [1], [0, 0, 1, 1], [], []>} : vector<32x32xbf16>, vector<32x64xbf16>, vector<32x64xf32> -> vector<32x64xf32>
    %61 = arith.addf %54, %60 : vector<32x64xf32>
    %c224 = arith.constant 224 : index
    %c0_46 = arith.constant 0 : index
    %62 = vector.load %arg4[%c224, %c0_46] : memref<512x200xbf16, #tpu.memory_space<vmem>>, vector<32x200xbf16>
    %cst_47 = arith.constant dense<0.000000e+00> : vector<32x32xf32>
    %63 = tpu.matmul %62, %11, %cst_47 {dimension_numbers = #tpu.dot_dimension_numbers<[1], [0], [0], [1], [0, 0, 1, 1], [], []>} : vector<32x200xbf16>, vector<200x32xbf16>, vector<32x32xf32> -> vector<32x32xf32>
    %64 = arith.truncf %63 : vector<32x32xf32> to vector<32x32xbf16>
    %c7 = arith.constant 7 : index
    %c0_48 = arith.constant 0 : index
    %c0_49 = arith.constant 0 : index
    %65 = vector.load %arg5[%c7, %c0_48, %c0_49] : memref<16x32x64xbf16, #tpu.memory_space<vmem>>, vector<1x32x64xbf16>
    %66 = vector.shape_cast %65 : vector<1x32x64xbf16> to vector<32x64xbf16>
    %cst_50 = arith.constant dense<0.000000e+00> : vector<32x64xf32>
    %67 = tpu.matmul %64, %66, %cst_50 {dimension_numbers = #tpu.dot_dimension_numbers<[1], [0], [0], [1], [0, 0, 1, 1], [], []>} : vector<32x32xbf16>, vector<32x64xbf16>, vector<32x64xf32> -> vector<32x64xf32>
    %68 = arith.addf %61, %67 : vector<32x64xf32>
    %c256 = arith.constant 256 : index
    %c0_51 = arith.constant 0 : index
    %69 = vector.load %arg4[%c256, %c0_51] : memref<512x200xbf16, #tpu.memory_space<vmem>>, vector<32x200xbf16>
    %cst_52 = arith.constant dense<0.000000e+00> : vector<32x32xf32>
    %70 = tpu.matmul %69, %11, %cst_52 {dimension_numbers = #tpu.dot_dimension_numbers<[1], [0], [0], [1], [0, 0, 1, 1], [], []>} : vector<32x200xbf16>, vector<200x32xbf16>, vector<32x32xf32> -> vector<32x32xf32>
    %71 = arith.truncf %70 : vector<32x32xf32> to vector<32x32xbf16>
    %c8 = arith.constant 8 : index
    %c0_53 = arith.constant 0 : index
    %c0_54 = arith.constant 0 : index
    %72 = vector.load %arg5[%c8, %c0_53, %c0_54] : memref<16x32x64xbf16, #tpu.memory_space<vmem>>, vector<1x32x64xbf16>
    %73 = vector.shape_cast %72 : vector<1x32x64xbf16> to vector<32x64xbf16>
    %cst_55 = arith.constant dense<0.000000e+00> : vector<32x64xf32>
    %74 = tpu.matmul %71, %73, %cst_55 {dimension_numbers = #tpu.dot_dimension_numbers<[1], [0], [0], [1], [0, 0, 1, 1], [], []>} : vector<32x32xbf16>, vector<32x64xbf16>, vector<32x64xf32> -> vector<32x64xf32>
    %75 = arith.addf %68, %74 : vector<32x64xf32>
    %c288 = arith.constant 288 : index
    %c0_56 = arith.constant 0 : index
    %76 = vector.load %arg4[%c288, %c0_56] : memref<512x200xbf16, #tpu.memory_space<vmem>>, vector<32x200xbf16>
    %cst_57 = arith.constant dense<0.000000e+00> : vector<32x32xf32>
    %77 = tpu.matmul %76, %11, %cst_57 {dimension_numbers = #tpu.dot_dimension_numbers<[1], [0], [0], [1], [0, 0, 1, 1], [], []>} : vector<32x200xbf16>, vector<200x32xbf16>, vector<32x32xf32> -> vector<32x32xf32>
    %78 = arith.truncf %77 : vector<32x32xf32> to vector<32x32xbf16>
    %c9 = arith.constant 9 : index
    %c0_58 = arith.constant 0 : index
    %c0_59 = arith.constant 0 : index
    %79 = vector.load %arg5[%c9, %c0_58, %c0_59] : memref<16x32x64xbf16, #tpu.memory_space<vmem>>, vector<1x32x64xbf16>
    %80 = vector.shape_cast %79 : vector<1x32x64xbf16> to vector<32x64xbf16>
    %cst_60 = arith.constant dense<0.000000e+00> : vector<32x64xf32>
    %81 = tpu.matmul %78, %80, %cst_60 {dimension_numbers = #tpu.dot_dimension_numbers<[1], [0], [0], [1], [0, 0, 1, 1], [], []>} : vector<32x32xbf16>, vector<32x64xbf16>, vector<32x64xf32> -> vector<32x64xf32>
    %82 = arith.addf %75, %81 : vector<32x64xf32>
    %c320 = arith.constant 320 : index
    %c0_61 = arith.constant 0 : index
    %83 = vector.load %arg4[%c320, %c0_61] : memref<512x200xbf16, #tpu.memory_space<vmem>>, vector<32x200xbf16>
    %cst_62 = arith.constant dense<0.000000e+00> : vector<32x32xf32>
    %84 = tpu.matmul %83, %11, %cst_62 {dimension_numbers = #tpu.dot_dimension_numbers<[1], [0], [0], [1], [0, 0, 1, 1], [], []>} : vector<32x200xbf16>, vector<200x32xbf16>, vector<32x32xf32> -> vector<32x32xf32>
    %85 = arith.truncf %84 : vector<32x32xf32> to vector<32x32xbf16>
    %c10 = arith.constant 10 : index
    %c0_63 = arith.constant 0 : index
    %c0_64 = arith.constant 0 : index
    %86 = vector.load %arg5[%c10, %c0_63, %c0_64] : memref<16x32x64xbf16, #tpu.memory_space<vmem>>, vector<1x32x64xbf16>
    %87 = vector.shape_cast %86 : vector<1x32x64xbf16> to vector<32x64xbf16>
    %cst_65 = arith.constant dense<0.000000e+00> : vector<32x64xf32>
    %88 = tpu.matmul %85, %87, %cst_65 {dimension_numbers = #tpu.dot_dimension_numbers<[1], [0], [0], [1], [0, 0, 1, 1], [], []>} : vector<32x32xbf16>, vector<32x64xbf16>, vector<32x64xf32> -> vector<32x64xf32>
    %89 = arith.addf %82, %88 : vector<32x64xf32>
    %c352 = arith.constant 352 : index
    %c0_66 = arith.constant 0 : index
    %90 = vector.load %arg4[%c352, %c0_66] : memref<512x200xbf16, #tpu.memory_space<vmem>>, vector<32x200xbf16>
    %cst_67 = arith.constant dense<0.000000e+00> : vector<32x32xf32>
    %91 = tpu.matmul %90, %11, %cst_67 {dimension_numbers = #tpu.dot_dimension_numbers<[1], [0], [0], [1], [0, 0, 1, 1], [], []>} : vector<32x200xbf16>, vector<200x32xbf16>, vector<32x32xf32> -> vector<32x32xf32>
    %92 = arith.truncf %91 : vector<32x32xf32> to vector<32x32xbf16>
    %c11 = arith.constant 11 : index
    %c0_68 = arith.constant 0 : index
    %c0_69 = arith.constant 0 : index
    %93 = vector.load %arg5[%c11, %c0_68, %c0_69] : memref<16x32x64xbf16, #tpu.memory_space<vmem>>, vector<1x32x64xbf16>
    %94 = vector.shape_cast %93 : vector<1x32x64xbf16> to vector<32x64xbf16>
    %cst_70 = arith.constant dense<0.000000e+00> : vector<32x64xf32>
    %95 = tpu.matmul %92, %94, %cst_70 {dimension_numbers = #tpu.dot_dimension_numbers<[1], [0], [0], [1], [0, 0, 1, 1], [], []>} : vector<32x32xbf16>, vector<32x64xbf16>, vector<32x64xf32> -> vector<32x64xf32>
    %96 = arith.addf %89, %95 : vector<32x64xf32>
    %c384 = arith.constant 384 : index
    %c0_71 = arith.constant 0 : index
    %97 = vector.load %arg4[%c384, %c0_71] : memref<512x200xbf16, #tpu.memory_space<vmem>>, vector<32x200xbf16>
    %cst_72 = arith.constant dense<0.000000e+00> : vector<32x32xf32>
    %98 = tpu.matmul %97, %11, %cst_72 {dimension_numbers = #tpu.dot_dimension_numbers<[1], [0], [0], [1], [0, 0, 1, 1], [], []>} : vector<32x200xbf16>, vector<200x32xbf16>, vector<32x32xf32> -> vector<32x32xf32>
    %99 = arith.truncf %98 : vector<32x32xf32> to vector<32x32xbf16>
    %c12 = arith.constant 12 : index
    %c0_73 = arith.constant 0 : index
    %c0_74 = arith.constant 0 : index
    %100 = vector.load %arg5[%c12, %c0_73, %c0_74] : memref<16x32x64xbf16, #tpu.memory_space<vmem>>, vector<1x32x64xbf16>
    %101 = vector.shape_cast %100 : vector<1x32x64xbf16> to vector<32x64xbf16>
    %cst_75 = arith.constant dense<0.000000e+00> : vector<32x64xf32>
    %102 = tpu.matmul %99, %101, %cst_75 {dimension_numbers = #tpu.dot_dimension_numbers<[1], [0], [0], [1], [0, 0, 1, 1], [], []>} : vector<32x32xbf16>, vector<32x64xbf16>, vector<32x64xf32> -> vector<32x64xf32>
    %103 = arith.addf %96, %102 : vector<32x64xf32>
    %c416 = arith.constant 416 : index
    %c0_76 = arith.constant 0 : index
    %104 = vector.load %arg4[%c416, %c0_76] : memref<512x200xbf16, #tpu.memory_space<vmem>>, vector<32x200xbf16>
    %cst_77 = arith.constant dense<0.000000e+00> : vector<32x32xf32>
    %105 = tpu.matmul %104, %11, %cst_77 {dimension_numbers = #tpu.dot_dimension_numbers<[1], [0], [0], [1], [0, 0, 1, 1], [], []>} : vector<32x200xbf16>, vector<200x32xbf16>, vector<32x32xf32> -> vector<32x32xf32>
    %106 = arith.truncf %105 : vector<32x32xf32> to vector<32x32xbf16>
    %c13 = arith.constant 13 : index
    %c0_78 = arith.constant 0 : index
    %c0_79 = arith.constant 0 : index
    %107 = vector.load %arg5[%c13, %c0_78, %c0_79] : memref<16x32x64xbf16, #tpu.memory_space<vmem>>, vector<1x32x64xbf16>
    %108 = vector.shape_cast %107 : vector<1x32x64xbf16> to vector<32x64xbf16>
    %cst_80 = arith.constant dense<0.000000e+00> : vector<32x64xf32>
    %109 = tpu.matmul %106, %108, %cst_80 {dimension_numbers = #tpu.dot_dimension_numbers<[1], [0], [0], [1], [0, 0, 1, 1], [], []>} : vector<32x32xbf16>, vector<32x64xbf16>, vector<32x64xf32> -> vector<32x64xf32>
    %110 = arith.addf %103, %109 : vector<32x64xf32>
    %c448 = arith.constant 448 : index
    %c0_81 = arith.constant 0 : index
    %111 = vector.load %arg4[%c448, %c0_81] : memref<512x200xbf16, #tpu.memory_space<vmem>>, vector<32x200xbf16>
    %cst_82 = arith.constant dense<0.000000e+00> : vector<32x32xf32>
    %112 = tpu.matmul %111, %11, %cst_82 {dimension_numbers = #tpu.dot_dimension_numbers<[1], [0], [0], [1], [0, 0, 1, 1], [], []>} : vector<32x200xbf16>, vector<200x32xbf16>, vector<32x32xf32> -> vector<32x32xf32>
    %113 = arith.truncf %112 : vector<32x32xf32> to vector<32x32xbf16>
    %c14 = arith.constant 14 : index
    %c0_83 = arith.constant 0 : index
    %c0_84 = arith.constant 0 : index
    %114 = vector.load %arg5[%c14, %c0_83, %c0_84] : memref<16x32x64xbf16, #tpu.memory_space<vmem>>, vector<1x32x64xbf16>
    %115 = vector.shape_cast %114 : vector<1x32x64xbf16> to vector<32x64xbf16>
    %cst_85 = arith.constant dense<0.000000e+00> : vector<32x64xf32>
    %116 = tpu.matmul %113, %115, %cst_85 {dimension_numbers = #tpu.dot_dimension_numbers<[1], [0], [0], [1], [0, 0, 1, 1], [], []>} : vector<32x32xbf16>, vector<32x64xbf16>, vector<32x64xf32> -> vector<32x64xf32>
    %117 = arith.addf %110, %116 : vector<32x64xf32>
    %c480 = arith.constant 480 : index
    %c0_86 = arith.constant 0 : index
    %118 = vector.load %arg4[%c480, %c0_86] : memref<512x200xbf16, #tpu.memory_space<vmem>>, vector<32x200xbf16>
    %cst_87 = arith.constant dense<0.000000e+00> : vector<32x32xf32>
    %119 = tpu.matmul %118, %11, %cst_87 {dimension_numbers = #tpu.dot_dimension_numbers<[1], [0], [0], [1], [0, 0, 1, 1], [], []>} : vector<32x200xbf16>, vector<200x32xbf16>, vector<32x32xf32> -> vector<32x32xf32>
    %120 = arith.truncf %119 : vector<32x32xf32> to vector<32x32xbf16>
    %c15 = arith.constant 15 : index
    %c0_88 = arith.constant 0 : index
    %c0_89 = arith.constant 0 : index
    %121 = vector.load %arg5[%c15, %c0_88, %c0_89] : memref<16x32x64xbf16, #tpu.memory_space<vmem>>, vector<1x32x64xbf16>
    %122 = vector.shape_cast %121 : vector<1x32x64xbf16> to vector<32x64xbf16>
    %cst_90 = arith.constant dense<0.000000e+00> : vector<32x64xf32>
    %123 = tpu.matmul %120, %122, %cst_90 {dimension_numbers = #tpu.dot_dimension_numbers<[1], [0], [0], [1], [0, 0, 1, 1], [], []>} : vector<32x32xbf16>, vector<32x64xbf16>, vector<32x64xf32> -> vector<32x64xf32>
    %124 = arith.addf %117, %123 : vector<32x64xf32>
    %c0_91 = arith.constant 0 : index
    %c0_92 = arith.constant 0 : index
    %125 = vector.load %arg6[%c0_91, %c0_92] : memref<1x64xf32, #tpu.memory_space<vmem>>, vector<1x64xf32>
    %126 = vector.broadcast %125 : vector<1x64xf32> to vector<32x64xf32>
    %127 = arith.mulf %124, %126 : vector<32x64xf32>
    %c0_93 = arith.constant 0 : index
    %c0_94 = arith.constant 0 : index
    %128 = vector.load %arg7[%c0_93, %c0_94] : memref<1x64xf32, #tpu.memory_space<vmem>>, vector<1x64xf32>
    %129 = vector.broadcast %128 : vector<1x64xf32> to vector<32x64xf32>
    %130 = arith.addf %127, %129 : vector<32x64xf32>
    %cst_95 = arith.constant 0.000000e+00 : f32
    %131 = vector.broadcast %cst_95 : f32 to vector<32x64xf32>
    %132 = arith.maximumf %130, %131 : vector<32x64xf32>
    %133 = arith.truncf %132 : vector<32x64xf32> to vector<32x64xbf16>
    %cst_96 = arith.constant 0.000000e+00 : f32
    %134 = vector.broadcast %cst_96 : f32 to vector<8x64xf32>
    %c0_97 = arith.constant 0 : index
    %c0_98 = arith.constant 0 : index
    %135 = vector.load %arg8[%c0_97, %c0_98] : memref<72x32xf32, #tpu.memory_space<vmem>>, vector<8x32xf32>
    %136 = arith.truncf %135 : vector<8x32xf32> to vector<8x32xbf16>
    %cst_99 = arith.constant dense<0.000000e+00> : vector<8x64xf32>
    %137 = tpu.matmul %136, %133, %cst_99 {dimension_numbers = #tpu.dot_dimension_numbers<[1], [0], [0], [1], [0, 0, 1, 1], [], []>} : vector<8x32xbf16>, vector<32x64xbf16>, vector<8x64xf32> -> vector<8x64xf32>
    %138 = arith.truncf %137 : vector<8x64xf32> to vector<8x64xbf16>
    %c0_100 = arith.constant 0 : index
    %c0_101 = arith.constant 0 : index
    %c0_102 = arith.constant 0 : index
    %139 = vector.load %arg9[%c0_100, %c0_101, %c0_102] : memref<9x64x64xbf16, #tpu.memory_space<vmem>>, vector<1x64x64xbf16>
    %140 = vector.shape_cast %139 : vector<1x64x64xbf16> to vector<64x64xbf16>
    %cst_103 = arith.constant dense<0.000000e+00> : vector<8x64xf32>
    %141 = tpu.matmul %138, %140, %cst_103 {dimension_numbers = #tpu.dot_dimension_numbers<[1], [0], [0], [1], [0, 0, 1, 1], [], []>} : vector<8x64xbf16>, vector<64x64xbf16>, vector<8x64xf32> -> vector<8x64xf32>
    %142 = arith.addf %134, %141 : vector<8x64xf32>
    %c8_104 = arith.constant 8 : index
    %c0_105 = arith.constant 0 : index
    %143 = vector.load %arg8[%c8_104, %c0_105] : memref<72x32xf32, #tpu.memory_space<vmem>>, vector<8x32xf32>
    %144 = arith.truncf %143 : vector<8x32xf32> to vector<8x32xbf16>
    %cst_106 = arith.constant dense<0.000000e+00> : vector<8x64xf32>
    %145 = tpu.matmul %144, %133, %cst_106 {dimension_numbers = #tpu.dot_dimension_numbers<[1], [0], [0], [1], [0, 0, 1, 1], [], []>} : vector<8x32xbf16>, vector<32x64xbf16>, vector<8x64xf32> -> vector<8x64xf32>
    %146 = arith.truncf %145 : vector<8x64xf32> to vector<8x64xbf16>
    %c1_107 = arith.constant 1 : index
    %c0_108 = arith.constant 0 : index
    %c0_109 = arith.constant 0 : index
    %147 = vector.load %arg9[%c1_107, %c0_108, %c0_109] : memref<9x64x64xbf16, #tpu.memory_space<vmem>>, vector<1x64x64xbf16>
    %148 = vector.shape_cast %147 : vector<1x64x64xbf16> to vector<64x64xbf16>
    %cst_110 = arith.constant dense<0.000000e+00> : vector<8x64xf32>
    %149 = tpu.matmul %146, %148, %cst_110 {dimension_numbers = #tpu.dot_dimension_numbers<[1], [0], [0], [1], [0, 0, 1, 1], [], []>} : vector<8x64xbf16>, vector<64x64xbf16>, vector<8x64xf32> -> vector<8x64xf32>
    %150 = arith.addf %142, %149 : vector<8x64xf32>
    %c16 = arith.constant 16 : index
    %c0_111 = arith.constant 0 : index
    %151 = vector.load %arg8[%c16, %c0_111] : memref<72x32xf32, #tpu.memory_space<vmem>>, vector<8x32xf32>
    %152 = arith.truncf %151 : vector<8x32xf32> to vector<8x32xbf16>
    %cst_112 = arith.constant dense<0.000000e+00> : vector<8x64xf32>
    %153 = tpu.matmul %152, %133, %cst_112 {dimension_numbers = #tpu.dot_dimension_numbers<[1], [0], [0], [1], [0, 0, 1, 1], [], []>} : vector<8x32xbf16>, vector<32x64xbf16>, vector<8x64xf32> -> vector<8x64xf32>
    %154 = arith.truncf %153 : vector<8x64xf32> to vector<8x64xbf16>
    %c2_113 = arith.constant 2 : index
    %c0_114 = arith.constant 0 : index
    %c0_115 = arith.constant 0 : index
    %155 = vector.load %arg9[%c2_113, %c0_114, %c0_115] : memref<9x64x64xbf16, #tpu.memory_space<vmem>>, vector<1x64x64xbf16>
    %156 = vector.shape_cast %155 : vector<1x64x64xbf16> to vector<64x64xbf16>
    %cst_116 = arith.constant dense<0.000000e+00> : vector<8x64xf32>
    %157 = tpu.matmul %154, %156, %cst_116 {dimension_numbers = #tpu.dot_dimension_numbers<[1], [0], [0], [1], [0, 0, 1, 1], [], []>} : vector<8x64xbf16>, vector<64x64xbf16>, vector<8x64xf32> -> vector<8x64xf32>
    %158 = arith.addf %150, %157 : vector<8x64xf32>
    %c24 = arith.constant 24 : index
    %c0_117 = arith.constant 0 : index
    %159 = vector.load %arg8[%c24, %c0_117] : memref<72x32xf32, #tpu.memory_space<vmem>>, vector<8x32xf32>
    %160 = arith.truncf %159 : vector<8x32xf32> to vector<8x32xbf16>
    %cst_118 = arith.constant dense<0.000000e+00> : vector<8x64xf32>
    %161 = tpu.matmul %160, %133, %cst_118 {dimension_numbers = #tpu.dot_dimension_numbers<[1], [0], [0], [1], [0, 0, 1, 1], [], []>} : vector<8x32xbf16>, vector<32x64xbf16>, vector<8x64xf32> -> vector<8x64xf32>
    %162 = arith.truncf %161 : vector<8x64xf32> to vector<8x64xbf16>
    %c3_119 = arith.constant 3 : index
    %c0_120 = arith.constant 0 : index
    %c0_121 = arith.constant 0 : index
    %163 = vector.load %arg9[%c3_119, %c0_120, %c0_121] : memref<9x64x64xbf16, #tpu.memory_space<vmem>>, vector<1x64x64xbf16>
    %164 = vector.shape_cast %163 : vector<1x64x64xbf16> to vector<64x64xbf16>
    %cst_122 = arith.constant dense<0.000000e+00> : vector<8x64xf32>
    %165 = tpu.matmul %162, %164, %cst_122 {dimension_numbers = #tpu.dot_dimension_numbers<[1], [0], [0], [1], [0, 0, 1, 1], [], []>} : vector<8x64xbf16>, vector<64x64xbf16>, vector<8x64xf32> -> vector<8x64xf32>
    %166 = arith.addf %158, %165 : vector<8x64xf32>
    %c32_123 = arith.constant 32 : index
    %c0_124 = arith.constant 0 : index
    %167 = vector.load %arg8[%c32_123, %c0_124] : memref<72x32xf32, #tpu.memory_space<vmem>>, vector<8x32xf32>
    %168 = arith.truncf %167 : vector<8x32xf32> to vector<8x32xbf16>
    %cst_125 = arith.constant dense<0.000000e+00> : vector<8x64xf32>
    %169 = tpu.matmul %168, %133, %cst_125 {dimension_numbers = #tpu.dot_dimension_numbers<[1], [0], [0], [1], [0, 0, 1, 1], [], []>} : vector<8x32xbf16>, vector<32x64xbf16>, vector<8x64xf32> -> vector<8x64xf32>
    %170 = arith.truncf %169 : vector<8x64xf32> to vector<8x64xbf16>
    %c4_126 = arith.constant 4 : index
    %c0_127 = arith.constant 0 : index
    %c0_128 = arith.constant 0 : index
    %171 = vector.load %arg9[%c4_126, %c0_127, %c0_128] : memref<9x64x64xbf16, #tpu.memory_space<vmem>>, vector<1x64x64xbf16>
    %172 = vector.shape_cast %171 : vector<1x64x64xbf16> to vector<64x64xbf16>
    %cst_129 = arith.constant dense<0.000000e+00> : vector<8x64xf32>
    %173 = tpu.matmul %170, %172, %cst_129 {dimension_numbers = #tpu.dot_dimension_numbers<[1], [0], [0], [1], [0, 0, 1, 1], [], []>} : vector<8x64xbf16>, vector<64x64xbf16>, vector<8x64xf32> -> vector<8x64xf32>
    %174 = arith.addf %166, %173 : vector<8x64xf32>
    %c40 = arith.constant 40 : index
    %c0_130 = arith.constant 0 : index
    %175 = vector.load %arg8[%c40, %c0_130] : memref<72x32xf32, #tpu.memory_space<vmem>>, vector<8x32xf32>
    %176 = arith.truncf %175 : vector<8x32xf32> to vector<8x32xbf16>
    %cst_131 = arith.constant dense<0.000000e+00> : vector<8x64xf32>
    %177 = tpu.matmul %176, %133, %cst_131 {dimension_numbers = #tpu.dot_dimension_numbers<[1], [0], [0], [1], [0, 0, 1, 1], [], []>} : vector<8x32xbf16>, vector<32x64xbf16>, vector<8x64xf32> -> vector<8x64xf32>
    %178 = arith.truncf %177 : vector<8x64xf32> to vector<8x64xbf16>
    %c5_132 = arith.constant 5 : index
    %c0_133 = arith.constant 0 : index
    %c0_134 = arith.constant 0 : index
    %179 = vector.load %arg9[%c5_132, %c0_133, %c0_134] : memref<9x64x64xbf16, #tpu.memory_space<vmem>>, vector<1x64x64xbf16>
    %180 = vector.shape_cast %179 : vector<1x64x64xbf16> to vector<64x64xbf16>
    %cst_135 = arith.constant dense<0.000000e+00> : vector<8x64xf32>
    %181 = tpu.matmul %178, %180, %cst_135 {dimension_numbers = #tpu.dot_dimension_numbers<[1], [0], [0], [1], [0, 0, 1, 1], [], []>} : vector<8x64xbf16>, vector<64x64xbf16>, vector<8x64xf32> -> vector<8x64xf32>
    %182 = arith.addf %174, %181 : vector<8x64xf32>
    %c48 = arith.constant 48 : index
    %c0_136 = arith.constant 0 : index
    %183 = vector.load %arg8[%c48, %c0_136] : memref<72x32xf32, #tpu.memory_space<vmem>>, vector<8x32xf32>
    %184 = arith.truncf %183 : vector<8x32xf32> to vector<8x32xbf16>
    %cst_137 = arith.constant dense<0.000000e+00> : vector<8x64xf32>
    %185 = tpu.matmul %184, %133, %cst_137 {dimension_numbers = #tpu.dot_dimension_numbers<[1], [0], [0], [1], [0, 0, 1, 1], [], []>} : vector<8x32xbf16>, vector<32x64xbf16>, vector<8x64xf32> -> vector<8x64xf32>
    %186 = arith.truncf %185 : vector<8x64xf32> to vector<8x64xbf16>
    %c6_138 = arith.constant 6 : index
    %c0_139 = arith.constant 0 : index
    %c0_140 = arith.constant 0 : index
    %187 = vector.load %arg9[%c6_138, %c0_139, %c0_140] : memref<9x64x64xbf16, #tpu.memory_space<vmem>>, vector<1x64x64xbf16>
    %188 = vector.shape_cast %187 : vector<1x64x64xbf16> to vector<64x64xbf16>
    %cst_141 = arith.constant dense<0.000000e+00> : vector<8x64xf32>
    %189 = tpu.matmul %186, %188, %cst_141 {dimension_numbers = #tpu.dot_dimension_numbers<[1], [0], [0], [1], [0, 0, 1, 1], [], []>} : vector<8x64xbf16>, vector<64x64xbf16>, vector<8x64xf32> -> vector<8x64xf32>
    %190 = arith.addf %182, %189 : vector<8x64xf32>
    %c56 = arith.constant 56 : index
    %c0_142 = arith.constant 0 : index
    %191 = vector.load %arg8[%c56, %c0_142] : memref<72x32xf32, #tpu.memory_space<vmem>>, vector<8x32xf32>
    %192 = arith.truncf %191 : vector<8x32xf32> to vector<8x32xbf16>
    %cst_143 = arith.constant dense<0.000000e+00> : vector<8x64xf32>
    %193 = tpu.matmul %192, %133, %cst_143 {dimension_numbers = #tpu.dot_dimension_numbers<[1], [0], [0], [1], [0, 0, 1, 1], [], []>} : vector<8x32xbf16>, vector<32x64xbf16>, vector<8x64xf32> -> vector<8x64xf32>
    %194 = arith.truncf %193 : vector<8x64xf32> to vector<8x64xbf16>
    %c7_144 = arith.constant 7 : index
    %c0_145 = arith.constant 0 : index
    %c0_146 = arith.constant 0 : index
    %195 = vector.load %arg9[%c7_144, %c0_145, %c0_146] : memref<9x64x64xbf16, #tpu.memory_space<vmem>>, vector<1x64x64xbf16>
    %196 = vector.shape_cast %195 : vector<1x64x64xbf16> to vector<64x64xbf16>
    %cst_147 = arith.constant dense<0.000000e+00> : vector<8x64xf32>
    %197 = tpu.matmul %194, %196, %cst_147 {dimension_numbers = #tpu.dot_dimension_numbers<[1], [0], [0], [1], [0, 0, 1, 1], [], []>} : vector<8x64xbf16>, vector<64x64xbf16>, vector<8x64xf32> -> vector<8x64xf32>
    %198 = arith.addf %190, %197 : vector<8x64xf32>
    %c64_148 = arith.constant 64 : index
    %c0_149 = arith.constant 0 : index
    %199 = vector.load %arg8[%c64_148, %c0_149] : memref<72x32xf32, #tpu.memory_space<vmem>>, vector<8x32xf32>
    %200 = arith.truncf %199 : vector<8x32xf32> to vector<8x32xbf16>
    %cst_150 = arith.constant dense<0.000000e+00> : vector<8x64xf32>
    %201 = tpu.matmul %200, %133, %cst_150 {dimension_numbers = #tpu.dot_dimension_numbers<[1], [0], [0], [1], [0, 0, 1, 1], [], []>} : vector<8x32xbf16>, vector<32x64xbf16>, vector<8x64xf32> -> vector<8x64xf32>
    %202 = arith.truncf %201 : vector<8x64xf32> to vector<8x64xbf16>
    %c8_151 = arith.constant 8 : index
    %c0_152 = arith.constant 0 : index
    %c0_153 = arith.constant 0 : index
    %203 = vector.load %arg9[%c8_151, %c0_152, %c0_153] : memref<9x64x64xbf16, #tpu.memory_space<vmem>>, vector<1x64x64xbf16>
    %204 = vector.shape_cast %203 : vector<1x64x64xbf16> to vector<64x64xbf16>
    %cst_154 = arith.constant dense<0.000000e+00> : vector<8x64xf32>
    %205 = tpu.matmul %202, %204, %cst_154 {dimension_numbers = #tpu.dot_dimension_numbers<[1], [0], [0], [1], [0, 0, 1, 1], [], []>} : vector<8x64xbf16>, vector<64x64xbf16>, vector<8x64xf32> -> vector<8x64xf32>
    %206 = arith.addf %198, %205 : vector<8x64xf32>
    %c0_155 = arith.constant 0 : index
    %c0_156 = arith.constant 0 : index
    %207 = vector.load %arg10[%c0_155, %c0_156] : memref<1x64xf32, #tpu.memory_space<vmem>>, vector<1x64xf32>
    %208 = vector.broadcast %207 : vector<1x64xf32> to vector<8x64xf32>
    %209 = arith.mulf %206, %208 : vector<8x64xf32>
    %c0_157 = arith.constant 0 : index
    %c0_158 = arith.constant 0 : index
    %210 = vector.load %arg11[%c0_157, %c0_158] : memref<1x64xf32, #tpu.memory_space<vmem>>, vector<1x64xf32>
    %211 = vector.broadcast %210 : vector<1x64xf32> to vector<8x64xf32>
    %212 = arith.addf %209, %211 : vector<8x64xf32>
    %cst_159 = arith.constant 0.000000e+00 : f32
    %213 = vector.broadcast %cst_159 : f32 to vector<8x64xf32>
    %214 = arith.maximumf %212, %213 : vector<8x64xf32>
    %cst_160 = arith.constant 0.000000e+00 : f32
    %215 = vector.broadcast %cst_160 : f32 to vector<2x128xf32>
    %216 = vector.extract_strided_slice %214 {offsets = [0, 0], sizes = [2, 64], strides = [1, 1]} : vector<8x64xf32> to vector<2x64xf32>
    %217 = arith.truncf %216 : vector<2x64xf32> to vector<2x64xbf16>
    %c0_161 = arith.constant 0 : index
    %c0_162 = arith.constant 0 : index
    %c0_163 = arith.constant 0 : index
    %218 = vector.load %arg12[%c0_161, %c0_162, %c0_163] : memref<4x64x128xbf16, #tpu.memory_space<vmem>>, vector<1x64x128xbf16>
    %219 = vector.shape_cast %218 : vector<1x64x128xbf16> to vector<64x128xbf16>
    %cst_164 = arith.constant dense<0.000000e+00> : vector<2x128xf32>
    %220 = tpu.matmul %217, %219, %cst_164 {dimension_numbers = #tpu.dot_dimension_numbers<[1], [0], [0], [1], [0, 0, 1, 1], [], []>} : vector<2x64xbf16>, vector<64x128xbf16>, vector<2x128xf32> -> vector<2x128xf32>
    %221 = arith.addf %215, %220 : vector<2x128xf32>
    %222 = vector.extract_strided_slice %214 {offsets = [2, 0], sizes = [2, 64], strides = [1, 1]} : vector<8x64xf32> to vector<2x64xf32>
    %223 = arith.truncf %222 : vector<2x64xf32> to vector<2x64xbf16>
    %c1_165 = arith.constant 1 : index
    %c0_166 = arith.constant 0 : index
    %c0_167 = arith.constant 0 : index
    %224 = vector.load %arg12[%c1_165, %c0_166, %c0_167] : memref<4x64x128xbf16, #tpu.memory_space<vmem>>, vector<1x64x128xbf16>
    %225 = vector.shape_cast %224 : vector<1x64x128xbf16> to vector<64x128xbf16>
    %cst_168 = arith.constant dense<0.000000e+00> : vector<2x128xf32>
    %226 = tpu.matmul %223, %225, %cst_168 {dimension_numbers = #tpu.dot_dimension_numbers<[1], [0], [0], [1], [0, 0, 1, 1], [], []>} : vector<2x64xbf16>, vector<64x128xbf16>, vector<2x128xf32> -> vector<2x128xf32>
    %227 = arith.addf %221, %226 : vector<2x128xf32>
    %228 = vector.extract_strided_slice %214 {offsets = [4, 0], sizes = [2, 64], strides = [1, 1]} : vector<8x64xf32> to vector<2x64xf32>
    %229 = arith.truncf %228 : vector<2x64xf32> to vector<2x64xbf16>
    %c2_169 = arith.constant 2 : index
    %c0_170 = arith.constant 0 : index
    %c0_171 = arith.constant 0 : index
    %230 = vector.load %arg12[%c2_169, %c0_170, %c0_171] : memref<4x64x128xbf16, #tpu.memory_space<vmem>>, vector<1x64x128xbf16>
    %231 = vector.shape_cast %230 : vector<1x64x128xbf16> to vector<64x128xbf16>
    %cst_172 = arith.constant dense<0.000000e+00> : vector<2x128xf32>
    %232 = tpu.matmul %229, %231, %cst_172 {dimension_numbers = #tpu.dot_dimension_numbers<[1], [0], [0], [1], [0, 0, 1, 1], [], []>} : vector<2x64xbf16>, vector<64x128xbf16>, vector<2x128xf32> -> vector<2x128xf32>
    %233 = arith.addf %227, %232 : vector<2x128xf32>
    %234 = vector.extract_strided_slice %214 {offsets = [6, 0], sizes = [2, 64], strides = [1, 1]} : vector<8x64xf32> to vector<2x64xf32>
    %235 = arith.truncf %234 : vector<2x64xf32> to vector<2x64xbf16>
    %c3_173 = arith.constant 3 : index
    %c0_174 = arith.constant 0 : index
    %c0_175 = arith.constant 0 : index
    %236 = vector.load %arg12[%c3_173, %c0_174, %c0_175] : memref<4x64x128xbf16, #tpu.memory_space<vmem>>, vector<1x64x128xbf16>
    %237 = vector.shape_cast %236 : vector<1x64x128xbf16> to vector<64x128xbf16>
    %cst_176 = arith.constant dense<0.000000e+00> : vector<2x128xf32>
    %238 = tpu.matmul %235, %237, %cst_176 {dimension_numbers = #tpu.dot_dimension_numbers<[1], [0], [0], [1], [0, 0, 1, 1], [], []>} : vector<2x64xbf16>, vector<64x128xbf16>, vector<2x128xf32> -> vector<2x128xf32>
    %239 = arith.addf %233, %238 : vector<2x128xf32>
    %c0_177 = arith.constant 0 : index
    %c0_178 = arith.constant 0 : index
    %240 = vector.load %arg13[%c0_177, %c0_178] : memref<1x128xf32, #tpu.memory_space<vmem>>, vector<1x128xf32>
    %241 = vector.broadcast %240 : vector<1x128xf32> to vector<2x128xf32>
    %242 = arith.addf %239, %241 : vector<2x128xf32>
    %cst_179 = arith.constant 0.000000e+00 : f32
    %243 = vector.broadcast %cst_179 : f32 to vector<2x128xf32>
    %244 = arith.maximumf %242, %243 : vector<2x128xf32>
    %245 = arith.truncf %244 : vector<2x128xf32> to vector<2x128xbf16>
    %c0_180 = arith.constant 0 : index
    %c0_181 = arith.constant 0 : index
    %246 = vector.load %arg14[%c0_180, %c0_181] : memref<128x32xbf16, #tpu.memory_space<vmem>>, vector<128x32xbf16>
    %cst_182 = arith.constant dense<0.000000e+00> : vector<2x32xf32>
    %247 = tpu.matmul %245, %246, %cst_182 {dimension_numbers = #tpu.dot_dimension_numbers<[1], [0], [0], [1], [0, 0, 1, 1], [], []>} : vector<2x128xbf16>, vector<128x32xbf16>, vector<2x32xf32> -> vector<2x32xf32>
    %c0_183 = arith.constant 0 : index
    %c0_184 = arith.constant 0 : index
    %248 = vector.load %arg15[%c0_183, %c0_184] : memref<1x32xf32, #tpu.memory_space<vmem>>, vector<1x32xf32>
    %249 = vector.broadcast %248 : vector<1x32xf32> to vector<2x32xf32>
    %250 = arith.addf %247, %249 : vector<2x32xf32>
    %cst_185 = arith.constant 0.000000e+00 : f32
    %251 = vector.broadcast %cst_185 : f32 to vector<2x32xf32>
    %252 = arith.maximumf %250, %251 : vector<2x32xf32>
    %253 = arith.truncf %252 : vector<2x32xf32> to vector<2x32xbf16>
    %c0_186 = arith.constant 0 : index
    %c0_187 = arith.constant 0 : index
    %254 = vector.load %arg16[%c0_186, %c0_187] : memref<32x128xbf16, #tpu.memory_space<vmem>>, vector<32x128xbf16>
    %cst_188 = arith.constant dense<0.000000e+00> : vector<2x128xf32>
    %255 = tpu.matmul %253, %254, %cst_188 {dimension_numbers = #tpu.dot_dimension_numbers<[1], [0], [0], [1], [0, 0, 1, 1], [], []>} : vector<2x32xbf16>, vector<32x128xbf16>, vector<2x128xf32> -> vector<2x128xf32>
    %c0_189 = arith.constant 0 : index
    %c0_190 = arith.constant 0 : index
    %256 = vector.load %arg17[%c0_189, %c0_190] : memref<1x128xf32, #tpu.memory_space<vmem>>, vector<1x128xf32>
    %257 = vector.broadcast %256 : vector<1x128xf32> to vector<2x128xf32>
    %258 = arith.addf %255, %257 : vector<2x128xf32>
    %c0_191 = arith.constant 0 : index
    %c0_192 = arith.constant 0 : index
    %259 = vector.load %arg18[%c0_191, %c0_192] : memref<2x128xf32, #tpu.memory_space<vmem>>, vector<2x128xf32>
    tpu.vector_store %arg18[%c0_191, %c0_192], %258 {strides = array<i32>} : memref<2x128xf32, #tpu.memory_space<vmem>>, vector<2x128xf32>,
    return
  }
}

</mosaic_0001>

<bundles_post_ra>
// kernel: dqn_forward.1
= control target key start
LH: loop header
LB: loop body
LE: loop exit
PB: predicated region body
PF: predicated region fallthrough
CT: control target
= control target key end

     0   :  { %s5818_s0 = inlined_call_operand.vmem [shape: bf16[200,128], index: 0, kind: input, shape index: {}]   ;;  %s5819_s1 = inlined_call_operand.vmem [shape: bf16[128,32], index: 1, kind: input, shape index: {}]   ;;  %s5820_s2 = inlined_call_operand.vmem [shape: f32[1,32], index: 2, kind: input, shape index: {}]   ;;  %s5821_s3 = inlined_call_operand.vmem [shape: f32[1,32], index: 3, kind: input, shape index: {}]   ;;  %s5822_s4 = inlined_call_operand.vmem [shape: bf16[512,200], index: 4, kind: input, shape index: {}]   ;;  %s5823_s5 = inlined_call_operand.vmem [shape: bf16[16,32,64], index: 5, kind: input, shape index: {}]   ;;  %s5824_s6 = inlined_call_operand.vmem [shape: f32[1,64], index: 6, kind: input, shape index: {}]   ;;  %s5825_s7 = inlined_call_operand.vmem [shape: f32[1,64], index: 7, kind: input, shape index: {}]   ;;  %s5826_s8 = inlined_call_operand.vmem [shape: f32[72,32], index: 8, kind: input, shape index: {}]   ;;  %s5827_s9 = inlined_call_operand.vmem [shape: bf16[9,64,64], index: 9, kind: input, shape index: {}]   ;;  %s5828_s10 = inlined_call_operand.vmem [shape: f32[1,64], index: 10, kind: input, shape index: {}]   ;;  %s5829_s11 = inlined_call_operand.vmem [shape: f32[1,64], index: 11, kind: input, shape index: {}]   ;;  %s5830_s12 = inlined_call_operand.vmem [shape: bf16[4,64,128], index: 12, kind: input, shape index: {}]   ;;  %s5831_s13 = inlined_call_operand.vmem [shape: f32[1,128], index: 13, kind: input, shape index: {}]   ;;  %s5832_s14 = inlined_call_operand.vmem [shape: bf16[128,32], index: 14, kind: input, shape index: {}]   ;;  %s5833_s15 = inlined_call_operand.vmem [shape: f32[1,32], index: 15, kind: input, shape index: {}]   ;;  %s5834_s16 = inlined_call_operand.vmem [shape: bf16[32,128], index: 16, kind: input, shape index: {}]   ;;  %s5835_s17 = inlined_call_operand.vmem [shape: f32[1,128], index: 17, kind: input, shape index: {}]   ;;  %s5836_s18 = inlined_call_operand.hbm [shape: f32[2,128], index: 18, kind: output, shape index: {}]  }
   0x1   :  { %5839 = sst [smem:[#allocation5_spill]] %s5818_s0 }
   0x2   :  { %5840 = sst [smem:[#allocation6_spill]] %s5819_s1 }
   0x3   :  { %5841 = sst [smem:[#allocation7_spill]] %s5820_s2 }
   0x4   :  { %s5842_s29 = sld [smem:[#allocation6_spill]] }
   0xa   :  { %v4179_v0 = vld [vmem:[%s5842_s29 + $0x38] sm:$0xff]  ;;  %v4178_v1 = vld [vmem:[%s5842_s29 + $0x30] sm:$0xff]  ;;  %v4177_v2 = vld [vmem:[%s5842_s29 + $0x28] sm:$0xff] }
   0xb   :  { %226 = vmatpush.bf16.msra.mxu0 %v4179_v0 }
   0xf   :  { %227 = vmatpush.bf16.msra.mxu0 %v4178_v1 }
  0x10   :  { %23 = vsyncpa [#allocation3], 0  ;;  %v4176_v3 = vld [vmem:[%s5842_s29 + $0x20] sm:$0xff]  ;;  %v4175_v4 = vld [vmem:[%s5842_s29 + $0x18] sm:$0xff]  ;;  %s5843_s19 = sld [smem:[#allocation5_spill]]  ;;  %vm424_vm0 = vcmask 1043456  }
  0x11   :  { %v4174_v5 = vld [vmem:[%s5842_s29 + $0x10] sm:$0xff]  ;;  %v4173_v6 = vld [vmem:[%s5842_s29 + $0x8] sm:$0xff]  ;;  %v4172_v7 = vld [vmem:[%s5842_s29] sm:$0xff]  ;;  %s5844_s2 = sld [smem:[#allocation7_spill]]  ;;  %vm417_vm1 = vcmask 588800   ;;  %vm557_vm2 = vcmask 261120  }
  0x12   :  { %v4530_v20 = vld [vmem:[%s5821_s3] ss:$0 sm:$0xff]  ;;  %vm2317_vm3 = vcmask 523264   ;;  %s4374_s1 = smov [#allocation2]  }
  0x13   :  { %228 = vmatpush.bf16.msra.mxu0 %v4177_v2 }
  0x16   :  { %v4160_v8 = vld [vmem:[%s5843_s19] sm:$0xff]  ;;  %v4161_v9 = vld [vmem:[%s5843_s19 + $0x8] sm:$0xff]  ;;  %v4162_v10 = vld [vmem:[%s5843_s19 + $0x10] sm:$0xff] }
  0x17   :  { %229 = vmatpush.bf16.msra.mxu0 %v4176_v3  ;;  %v4163_v11 = vld [vmem:[%s5843_s19 + $0x18] sm:$0xff]  ;;  %v4164_v12 = vld [vmem:[%s5843_s19 + $0x20] sm:$0xff]  ;;  %v4165_v13 = vld [vmem:[%s5843_s19 + $0x28] sm:$0xff] }
  0x18   :  { %v4166_v14 = vld [vmem:[%s5843_s19 + $0x30] sm:$0xff]  ;;  %v4167_v15 = vld [vmem:[%s5843_s19 + $0x38] sm:$0xff]  ;;  %v4168_v16 = vld [vmem:[%s5843_s19 + $0x40] sm:$0xff] }
  0x19   :  { %v4524_v18 = vld [vmem:[%s5844_s2] ss:$0 sm:$0xff]  ;;  %v4169_v28 = vld [vmem:[%s5843_s19 + $0x48] sm:$0xff]  ;;  %v4170_v31 = vld [vmem:[%s5843_s19 + $0x50] sm:$0xff] }
  0x1a   :  { %v4171_v34 = vld [vmem:[%s5843_s19 + $0x58] sm:$0xff]  ;;  %v85_v37 = vld [vmem:[%s5843_s19 + $0x60] sm:$0xf] }
  0x1b   :  { %230 = vmatpush.bf16.msra.mxu0 %v4175_v4  ;;  %v151_v38 = vunpack.c.l.b16 %v85_v37 }
  0x1d   :  { %v164_v39 = vpack.c.b16 %v151_v38, %v151_v38 }
  0x1f   :  { %231 = vmatpush.bf16.msra.mxu0 %v4174_v5 }
  0x23   :  { %232 = vmatpush.bf16.msra.mxu0 %v4173_v6 }
  0x27   :  { %233 = vmatpush.bf16.msra.mxu0 %v4172_v7 }
  0x2a   :  { %234 = vmatmul.bf16.vlgmr.msra.gmra.mxu0 %v4160_v8 }
  0x3a   :  { %239 = vmatmul.bf16.gmra.mxu0 %v4161_v9 }
  0x4a   :  { %244 = vmatmul.bf16.gmra.mxu0 %v4162_v10 }
  0x5a   :  { %249 = vmatmul.bf16.gmra.mxu0 %v4163_v11 }
  0x6a   :  { %254 = vmatmul.bf16.gmra.mxu0 %v4164_v12 }
  0x7a   :  { %259 = vmatmul.bf16.gmra.mxu0 %v4165_v13 }
  0x8a   :  { %264 = vmatmul.bf16.gmra.mxu0 %v4166_v14 }
  0x9a   :  { %269 = vmatmul.bf16.gmra.mxu0 %v4167_v15 }
  0xa7   :  { %v235_v17 = vpop.f32.mrf.mxu0 }
  0xa8   :  { %v303_v19 = vmul.f32 %v4524_v18, %v235_v17 }
  0xaa   :  { %274 = vmatmul.bf16.gmra.mxu0 %v4168_v16  ;;  %v332_v22 = vadd.f32 %v4530_v20, %v303_v19 }
  0xac   :  { %v357_v25 = vmax.f32 %v332_v22, 0.0 }
  0xaf   :  { %v237_v21 = vpop.f32.mrf.mxu0 }
  0xb0   :  { %v304_v23 = vmul.f32 %v4524_v18, %v237_v21 }
  0xb2   :  { %v333_v24 = vadd.f32 %v4530_v20, %v304_v23 }
  0xb4   :  { %v358_v26 = vmax.f32 %v333_v24, 0.0 }
  0xb6   :  { %v4535_v27 = vpack.c.bf16 %v358_v26, %v357_v25 }
  0xb7   :  { %v4540_v29 = vpop.f32.mrf.mxu0 }
  0xb8   :  { %v305_v25 = vmul.f32 %v4524_v18, %v4540_v29 }
  0xba   :  { %279 = vmatmul.bf16.gmra.mxu0 %v4169_v28 }
  0xbf   :  { %v4542_v30 = vpop.f32.mrf.mxu0 }
  0xc0   :  { %v306_v21 = vmul.f32 %v4524_v18, %v4542_v30 }
  0xc7   :  { %v245_v32 = vpop.f32.mrf.mxu0 }
  0xc8   :  { %v307_v16 = vmul.f32 %v4524_v18, %v245_v32 }
  0xca   :  { %284 = vmatmul.bf16.gmra.mxu0 %v4170_v31  ;;  %v336_v26 = vadd.f32 %v4530_v20, %v307_v16  ;;  %v335_v31 = vadd.f32 %v4530_v20, %v306_v21 }
  0xcc   :  { %v360_v29 = vmax.f32 %v335_v31, 0.0 }
  0xcf   :  { %v247_v33 = vpop.f32.mrf.mxu0 }
  0xd0   :  { %v308_v11 = vmul.f32 %v4524_v18, %v247_v33 }
  0xd2   :  { %v337_v22 = vadd.f32 %v4530_v20, %v308_v11 }
  0xd4   :  { %v362_v30 = vmax.f32 %v337_v22, 0.0 }
  0xd7   :  { %v250_v35 = vpop.f32.mrf.mxu0 }
  0xd8   :  { %v309_v8 = vmul.f32 %v4524_v18, %v250_v35  ;;  %v361_v35 = vmax.f32 %v336_v26, 0.0 }
  0xda   :  { %289 = vmatmul.bf16.gmra.mxu0 %v4171_v34  ;;  %v338_v17 = vadd.f32 %v4530_v20, %v309_v8  ;;  %v334_v34 = vadd.f32 %v4530_v20, %v305_v25 }
  0xdc   :  { %v363_v28 = vmax.f32 %v338_v17, 0.0  ;;  %v359_v37 = vmax.f32 %v334_v34, 0.0  ;;  %v4187_v34 = vld [vmem:[%s5822_s4 + $0x24] sm:$0xf0] }
  0xde   :  { %v4617_v38 = vpack.c.bf16 %v360_v29, %v359_v37 }
  0xdf   :  { %v252_v36 = vpop.f32.mrf.mxu0 }
  0xe0   :  { %v310_v4 = vmul.f32 %v4524_v18, %v252_v36  ;;  %v4612_v36 = vpack.c.bf16 %v362_v30, %v361_v35 }
  0xe2   :  { %v339_v12 = vadd.f32 %v4530_v20, %v310_v4 }
  0xe4   :  { %v364_v23 = vmax.f32 %v339_v12, 0.0 }
  0xe6   :  { %v4606_v32 = vpack.c.bf16 %v364_v23, %v363_v28  ;;  %v3303_v28 = vld [vmem:[%s5822_s4 + $0x10] sm:$0xf] }
  0xe7   :  { %v255_v40 = vpop.f32.mrf.mxu0 }
  0xe8   :  { %v311_v1 = vmul.f32 %v4524_v18, %v255_v40  ;;  %v3515_v40 = vld [vmem:[%s5822_s4 + $0xe0] sm:$0xf] }
  0xea   :  { %294 = vmatmul.bf16.gmra.mxu0 %v164_v39  ;;  %v340_v9 = vadd.f32 %v4530_v20, %v311_v1 }
  0xec   :  { %v365_v19 = vmax.f32 %v340_v9, 0.0 }
  0xef   :  { %v257_v41 = vpop.f32.mrf.mxu0 }
  0xf0   :  { %v312_v60 = vmul.f32 %v4524_v18, %v257_v41  ;;  %v4223_v41 = vld [vmem:[%s5822_s4 + $0xe4] sm:$0xf0] }
  0xf2   :  { %v341_v5 = vadd.f32 %v4530_v20, %v312_v60 }
  0xf4   :  { %v366_v13 = vmax.f32 %v341_v5, 0.0 }
  0xf6   :  { %v4597_v24 = vpack.c.bf16 %v366_v13, %v365_v19 }
  0xf7   :  { %v260_v42 = vpop.f32.mrf.mxu0 }
  0xf8   :  { %v313_v56 = vmul.f32 %v4524_v18, %v260_v42  ;;  %v3516_v42 = vor.u32 %v4223_v41, %v3515_v40  ;;  %v3297_v40 = vld [vmem:[%s5822_s4 + $0x8] sm:$0xf0]  ;;  %v4228_v41 = vld [vmem:[%s5822_s4 + $0x104] sm:$0xf] }
  0xfa   :  { %v342_v2 = vadd.f32 %v4530_v20, %v313_v56 }
  0xfc   :  { %v367_v10 = vmax.f32 %v342_v2, 0.0 }
  0xff   :  { %v262_v43 = vpop.f32.mrf.mxu0 }
 0x100   :  { %v314_v53 = vmul.f32 %v4524_v18, %v262_v43 }
 0x102   :  { %v343_v61 = vadd.f32 %v4530_v20, %v314_v53 }
 0x104   :  { %v368_v6 = vmax.f32 %v343_v61, 0.0 }
 0x106   :  { %v4585_v14 = vpack.c.bf16 %v368_v6, %v367_v10 }
 0x107   :  { %v265_v44 = vpop.f32.mrf.mxu0 }
 0x108   :  { %v315_v50 = vmul.f32 %v4524_v18, %v265_v44  ;;  %v4191_v44 = vld [vmem:[%s5823_s5 + $0x18] sm:$0xff] }
 0x10a   :  { %v344_v57 = vadd.f32 %v4530_v20, %v315_v50  ;;  %v3523_v50 = vld [vmem:[%s5822_s4 + $0xf0] sm:$0xf] }
 0x10c   :  { %v369_v3 = vmax.f32 %v344_v57, 0.0 }
 0x10f   :  { %v267_v45 = vpop.f32.mrf.mxu0 }
 0x110   :  { %v316_v48 = vmul.f32 %v4524_v18, %v267_v45 }
 0x112   :  { %v345_v54 = vadd.f32 %v4530_v20, %v316_v48  ;;  %v4181_v48 = vld [vmem:[%s5822_s4 + $0x4] sm:$0xf0] }
 0x114   :  { %v370_v62 = vmax.f32 %v345_v54, 0.0 }
 0x116   :  { %v4576_v7 = vpack.c.bf16 %v370_v62, %v369_v3 }
 0x117   :  { %v270_v46 = vpop.f32.mrf.mxu0 }
 0x118   :  { %v317_v47 = vmul.f32 %v4524_v18, %v270_v46  ;;  %v4190_v46 = vld [vmem:[%s5823_s5 + $0x10] sm:$0xff] }
 0x11a   :  { %v346_v51 = vadd.f32 %v4530_v20, %v317_v47  ;;  %v3295_v47 = vld [vmem:[%s5822_s4] sm:$0xf] }
 0x11c   :  { %v371_v58 = vmax.f32 %v346_v51, 0.0  ;;  %v4225_v51 = vld [vmem:[%s5822_s4 + $0xf4] sm:$0xf0] }
 0x11f   :  { %v272_v49 = vpop.f32.mrf.mxu0 }
 0x120   :  { %v318_v52 = vmul.f32 %v4524_v18, %v272_v49  ;;  %v3296_v49 = vor.u32 %v4181_v48, %v3295_v47  ;;  %v4238_v47 = vld [vmem:[%s5823_s5 + $0x90] sm:$0xff] }
 0x121   :  { %v3321_v48 = vld [vmem:[%s5822_s4 + $0x30] sm:$0xf] }
 0x122   :  { %v347_v55 = vadd.f32 %v4530_v20, %v318_v52  ;;  %v3524_v52 = vor.u32 %v4225_v51, %v3523_v50  ;;  %v4182_v51 = vld [vmem:[%s5822_s4 + $0x14] sm:$0xf] }
 0x124   :  { %v372_v59 = vmax.f32 %v347_v55, 0.0 }
 0x126   :  { %v4565_v63 = vpack.c.bf16 %v372_v59, %v371_v58 }
 0x127   :  { %v4567_v0 = vpop.f32.mrf.mxu0 }
 0x128   :  { %428 = vmatpush.bf16.msra.mxu1 %v4565_v63  ;;  %500 = vmatpush.bf16.msra.mxu3 %v4565_v63  ;;  %v319_v21 = vmul.f32 %v4524_v18, %v4567_v0 }
 0x129   :  { %1218 = vmatpush.bf16.msrb.mxu0 %v4565_v63 }
 0x12a   :  { %v348_v0 = vadd.f32 %v4530_v20, %v319_v21 }
 0x12c   :  { %429 = vmatpush.bf16.msra.mxu1 %v4576_v7  ;;  %501 = vmatpush.bf16.msra.mxu3 %v4576_v7  ;;  %v373_v37 = vmax.f32 %v348_v0, 0.0 }
 0x12d   :  { %1219 = vmatpush.bf16.msrb.mxu0 %v4576_v7 }
 0x12f   :  { %v4587_v15 = vpop.f32.mrf.mxu0 }
 0x130   :  { %430 = vmatpush.bf16.msra.mxu1 %v4585_v14  ;;  %502 = vmatpush.bf16.msra.mxu3 %v4585_v14  ;;  %v320_v13 = vmul.f32 %v4524_v18, %v4587_v15 }
 0x131   :  { %1220 = vmatpush.bf16.msrb.mxu0 %v4585_v14 }
 0x132   :  { %v349_v25 = vadd.f32 %v4530_v20, %v320_v13  ;;  %v4184_v13 = vld [vmem:[%s5823_s5] sm:$0xff] }
 0x134   :  { %431 = vmatpush.bf16.msra.mxu1 %v4597_v24  ;;  %503 = vmatpush.bf16.msra.mxu3 %v4597_v24  ;;  %v374_v35 = vmax.f32 %v349_v25, 0.0 }
 0x135   :  { %1221 = vmatpush.bf16.msrb.mxu0 %v4597_v24 }
 0x137   :  { %v280_v33 = vpop.f32.mrf.mxu0 }
 0x138   :  { %432 = vmatpush.bf16.msra.mxu1 %v4606_v32  ;;  %504 = vmatpush.bf16.msra.mxu3 %v4606_v32  ;;  %v321_v10 = vmul.f32 %v4524_v18, %v280_v33  ;;  %v3313_v33 = vld [vmem:[%s5822_s4 + $0x20] sm:$0xf] }
 0x139   :  { %1222 = vmatpush.bf16.msrb.mxu0 %v4606_v32 }
 0x13a   :  { %v350_v22 = vadd.f32 %v4530_v20, %v321_v10  ;;  %v3395_v10 = vld [vmem:[%s5822_s4 + $0x70] sm:$0xf] }
 0x13c   :  { %433 = vmatpush.bf16.msra.mxu1 %v4612_v36  ;;  %505 = vmatpush.bf16.msra.mxu3 %v4612_v36  ;;  %v375_v31 = vmax.f32 %v350_v22, 0.0 }
 0x13d   :  { %1223 = vmatpush.bf16.msrb.mxu0 %v4612_v36 }
 0x13f   :  { %v282_v39 = vpop.f32.mrf.mxu0 }
 0x140   :  { %434 = vmatpush.bf16.msra.mxu1 %v4617_v38  ;;  %506 = vmatpush.bf16.msra.mxu3 %v4617_v38  ;;  %v322_v4 = vmul.f32 %v4524_v18, %v282_v39  ;;  %v4180_v39 = vld [vmem:[%s5822_s4 + $0x4] sm:$0xf] }
 0x141   :  { %1224 = vmatpush.bf16.msrb.mxu0 %v4617_v38 }
 0x142   :  { %v351_v16 = vadd.f32 %v4530_v20, %v322_v4  ;;  %v3387_v4 = vld [vmem:[%s5822_s4 + $0x60] sm:$0xf] }
 0x144   :  { %435 = vmatpush.bf16.msra.mxu1 %v4535_v27  ;;  %507 = vmatpush.bf16.msra.mxu3 %v4535_v27  ;;  %v376_v15 = vmax.f32 %v351_v16, 0.0  ;;  %v3419_v16 = vld [vmem:[%s5822_s4 + $0x80] sm:$0xf] }
 0x145   :  { %1225 = vmatpush.bf16.msrb.mxu0 %v4535_v27 }
 0x146   :  { %v4696_v29 = vpack.c.bf16 %v376_v15, %v375_v31  ;;  %v3427_v15 = vld [vmem:[%s5822_s4 + $0x90] sm:$0xf] }
 0x147   :  { %v285_v43 = vpop.f32.mrf.mxu0  ;;  %436 = vmatmul.bf16.vlgmr.msra.gmra.mxu1 %v3296_v49  ;;  %v4189_v49 = vld [vmem:[%s5822_s4 + $0x34] sm:$0xf0] }
 0x148   :  { %1226 = vmatmul.bf16.vlgmr.msrb.gmra.mxu0 %v3516_v42  ;;  %570 = vmatpush.bf16.msrb.mxu1 %v4191_v44  ;;  %v323_v1 = vmul.f32 %v4524_v18, %v285_v43  ;;  %v3549_v42 = vld [vmem:[%s5822_s4 + $0x108] sm:$0xf0]  ;;  %v4713_v43 = vpack.c.bf16 %v374_v35, %v373_v37  ;;  %v4239_v44 = vld [vmem:[%s5823_s5 + $0x98] sm:$0xff]  ;;  %v3322_v50 = vor.u32 %v4189_v49, %v3321_v48  ;;  %v3451_v37 = vld [vmem:[%s5822_s4 + $0xa0] sm:$0xf] }
 0x149   :  { %v3459_v49 = vld [vmem:[%s5822_s4 + $0xb0] sm:$0xf] }
 0x14a   :  { %v352_v11 = vadd.f32 %v4530_v20, %v323_v1  ;;  %v3363_v1 = vld [vmem:[%s5822_s4 + $0x50] sm:$0xf] }
 0x14c   :  { %571 = vmatpush.bf16.msrb.mxu1 %v4190_v46  ;;  %v377_v23 = vmax.f32 %v352_v11, 0.0  ;;  %v3552_v46 = vor.u32 %v4228_v41, %v3549_v42  ;;  %v4201_v11 = vld [vmem:[%s5822_s4 + $0x74] sm:$0xf0] }
 0x14f   :  { %v287_v45 = vpop.f32.mrf.mxu0 }
 0x150   :  { %v324_v60 = vmul.f32 %v4524_v18, %v287_v45  ;;  %v3300_v45 = vor.u32 %v4180_v39, %v3297_v40  ;;  %v4211_v39 = vld [vmem:[%s5822_s4 + $0xa4] sm:$0xf0] }
 0x152   :  { %v353_v5 = vadd.f32 %v4530_v20, %v324_v60  ;;  %v3355_v60 = vld [vmem:[%s5822_s4 + $0x40] sm:$0xf] }
 0x154   :  { %v378_v17 = vmax.f32 %v353_v5, 0.0  ;;  %v4199_v5 = vld [vmem:[%s5822_s4 + $0x64] sm:$0xf0] }
 0x156   :  { %v4678_v26 = vpack.c.bf16 %v378_v17, %v377_v23  ;;  %v4205_v17 = vld [vmem:[%s5822_s4 + $0x84] sm:$0xf0] }
 0x157   :  { %v290_v53 = vpop.f32.mrf.mxu0  ;;  %v3420_v22 = vor.u32 %v4205_v17, %v3419_v16 }
 0x158   :  { %1231 = vmatmul.bf16.gmra.mxu0 %v3524_v52  ;;  %v325_v58 = vmul.f32 %v4524_v18, %v290_v53  ;;  %v3305_v52 = vld [vmem:[%s5822_s4 + $0x18] sm:$0xf0] }
 0x159   :  { %v3308_v53 = vor.u32 %v4182_v51, %v3305_v52 }
 0x15a   :  { %v354_v2 = vadd.f32 %v4530_v20, %v325_v58  ;;  %v3323_v58 = vld [vmem:[%s5822_s4 + $0x38] sm:$0xf0] }
 0x15c   :  { %v379_v12 = vmax.f32 %v354_v2, 0.0  ;;  %v4195_v2 = vld [vmem:[%s5822_s4 + $0x54] sm:$0xf0] }
 0x15f   :  { %v292_v54 = vpop.f32.mrf.mxu0 }
 0x160   :  { %v326_v55 = vmul.f32 %v4524_v18, %v292_v54  ;;  %v4186_v54 = vld [vmem:[%s5822_s4 + $0x24] sm:$0xf] }
 0x162   :  { %v355_v61 = vadd.f32 %v4530_v20, %v326_v55  ;;  %v3315_v55 = vld [vmem:[%s5822_s4 + $0x28] sm:$0xf0] }
 0x164   :  { %v380_v6 = vmax.f32 %v355_v61, 0.0  ;;  %v4193_v61 = vld [vmem:[%s5822_s4 + $0x44] sm:$0xf0] }
 0x166   :  { %v4669_v19 = vpack.c.bf16 %v380_v6, %v379_v12  ;;  %v3388_v6 = vor.u32 %v4199_v5, %v3387_v4  ;;  %v3396_v12 = vor.u32 %v4201_v11, %v3395_v10  ;;  %v4233_v4 = vld [vmem:[%s5823_s5 + $0x88] sm:$0xff]  ;;  %v4232_v5 = vld [vmem:[%s5823_s5 + $0x80] sm:$0xff]  ;;  %v3491_v11 = vld [vmem:[%s5822_s4 + $0xd0] sm:$0xf] }
 0x167   :  { %v295_v56 = vpop.f32.mrf.mxu0  ;;  %v3357_v10 = vld [vmem:[%s5822_s4 + $0x48] sm:$0xf0] }
 0x168   :  { %v327_v57 = vmul.f32 %v4524_v18, %v295_v56  ;;  %v4183_v18 = vld [vmem:[%s5822_s4 + $0x14] sm:$0xf0]  ;;  %v3318_v56 = vor.u32 %v4186_v54, %v3315_v55 }
 0x169   :  { %v3304_v30 = vor.u32 %v4183_v18, %v3303_v28  ;;  %v4207_v28 = vld [vmem:[%s5822_s4 + $0x94] sm:$0xf0] }
 0x16a   :  { %v356_v59 = vadd.f32 %v4530_v20, %v327_v57  ;;  %v3314_v20 = vor.u32 %v4187_v34, %v3313_v33  ;;  %v4188_v57 = vld [vmem:[%s5822_s4 + $0x34] sm:$0xf] }
 0x16b   :  { %441 = vmatmul.bf16.gmra.mxu1 %v3304_v30  ;;  %v3428_v30 = vor.u32 %v4207_v28, %v3427_v15  ;;  %v3517_v15 = vld [vmem:[%s5822_s4 + $0xe8] sm:$0xf0] }
 0x16c   :  { %v381_v62 = vmax.f32 %v356_v59, 0.0  ;;  %508 = vmatmul.bf16.vlgmr.msra.gmra.mxu3 %v3314_v20  ;;  %v3326_v59 = vor.u32 %v4188_v57, %v3323_v58  ;;  %v3483_v58 = vld [vmem:[%s5822_s4 + $0xc0] sm:$0xf] }
 0x16e   :  { %v394_v3 = vpack.c.bf16 %v381_v62, %v381_v62  ;;  %v3356_v62 = vor.u32 %v4193_v61, %v3355_v60 }
 0x16f   :  { %v297_v8 = vpop.f32.mrf.mxu0 }
 0x170   :  { %v4659_v9 = vsel %vm424_vm0, %v394_v3, 0  ;;  %v3364_v3 = vor.u32 %v4195_v2, %v3363_v1  ;;  %v4185_v8 = vld [vmem:[%s5823_s5 + $0x8] sm:$0xff] }
 0x171   :  { %450 = vmatpush.bf16.msra.mxu2 %v4659_v9  ;;  %670 = vmatpush.bf16.msra.mxu1 %v4659_v9 }
 0x172   :  { %1354 = vmatpush.bf16.msra.mxu0 %v4659_v9  ;;  %607 = vmatpush.bf16.msrb.mxu3 %v4185_v8  ;;  %v4192_v8 = vld [vmem:[%s5822_s4 + $0x44] sm:$0xf] }
 0x173   :  { %v3360_v16 = vor.u32 %v4192_v8, %v3357_v10 }
 0x175   :  { %451 = vmatpush.bf16.msra.mxu2 %v4669_v19  ;;  %671 = vmatpush.bf16.msra.mxu1 %v4669_v19 }
 0x176   :  { %1355 = vmatpush.bf16.msra.mxu0 %v4669_v19  ;;  %608 = vmatpush.bf16.msrb.mxu3 %v4184_v13 }
 0x179   :  { %452 = vmatpush.bf16.msra.mxu2 %v4678_v26  ;;  %672 = vmatpush.bf16.msra.mxu1 %v4678_v26 }
 0x17a   :  { %1356 = vmatpush.bf16.msra.mxu0 %v4678_v26 }
 0x17c   :  { %513 = vmatmul.bf16.gmra.mxu3 %v3322_v50  ;;  %v4213_v50 = vld [vmem:[%s5822_s4 + $0xb4] sm:$0xf0] }
 0x17d   :  { %453 = vmatpush.bf16.msra.mxu2 %v4696_v29  ;;  %673 = vmatpush.bf16.msra.mxu1 %v4696_v29  ;;  %v3460_v54 = vor.u32 %v4213_v50, %v3459_v49 }
 0x17e   :  { %1357 = vmatpush.bf16.msra.mxu0 %v4696_v29 }
 0x181   :  { %454 = vmatpush.bf16.msra.mxu2 %v4713_v43  ;;  %674 = vmatpush.bf16.msra.mxu1 %v4713_v43 }
 0x182   :  { %1358 = vmatpush.bf16.msra.mxu0 %v4713_v43 }
 0x184   :  { %3309 = vmatmul.msk.bf16.vlgmr.msra.gmra.mxu2 %vm417_vm1, %v3300_v45  ;;  %v3452_v45 = vor.u32 %v4211_v39, %v3451_v37 }
 0x185   :  { %522 = vmatpush.bf16.msrb.mxu2 %v4659_v9  ;;  %3561 = vmatmul.msk.bf16.vlgmr.msra.gmra.mxu0 %vm417_vm1, %v3552_v46 }
 0x186   :  { %1515 = vmatpush.bf16.msrb.mxu0 %v4239_v44 }
 0x189   :  { %523 = vmatpush.bf16.msrb.mxu2 %v4669_v19 }
 0x18a   :  { %1516 = vmatpush.bf16.msrb.mxu0 %v4238_v47 }
 0x18d   :  { %524 = vmatpush.bf16.msrb.mxu2 %v4678_v26 }
 0x18e   :  { %1674 = vmatpush.bf16.msra.mxu0 %v4565_v63 }
 0x191   :  { %525 = vmatpush.bf16.msrb.mxu2 %v4696_v29 }
 0x192   :  { %1675 = vmatpush.bf16.msra.mxu0 %v4576_v7 }
 0x194   :  { %3310 = vmatmul.msk.bf16.gmra.mxu2 %vm417_vm1, %v3308_v53 }
 0x195   :  { %526 = vmatpush.bf16.msrb.mxu2 %v4713_v43 }
 0x196   :  { %1676 = vmatpush.bf16.msra.mxu0 %v4585_v14 }
 0x199   :  { %648 = vmatpush.bf16.msra.mxu2 %v4565_v63 }
 0x19a   :  { %1677 = vmatpush.bf16.msra.mxu0 %v4597_v24 }
 0x19d   :  { %649 = vmatpush.bf16.msra.mxu2 %v4576_v7 }
 0x19e   :  { %1678 = vmatpush.bf16.msra.mxu0 %v4606_v32 }
 0x1a1   :  { %650 = vmatpush.bf16.msra.mxu2 %v4585_v14 }
 0x1a2   :  { %1679 = vmatpush.bf16.msra.mxu0 %v4612_v36 }
 0x1a4   :  { %3327 = vmatmul.msk.bf16.vlgmr.msrb.gmra.mxu2 %vm417_vm1, %v3318_v56 }
 0x1a5   :  { %651 = vmatpush.bf16.msra.mxu2 %v4597_v24 }
 0x1a6   :  { %1680 = vmatpush.bf16.msra.mxu0 %v4617_v38 }
 0x1a9   :  { %652 = vmatpush.bf16.msra.mxu2 %v4606_v32 }
 0x1aa   :  { %1681 = vmatpush.bf16.msra.mxu0 %v4535_v27 }
 0x1ad   :  { %653 = vmatpush.bf16.msra.mxu2 %v4612_v36 }
 0x1b1   :  { %654 = vmatpush.bf16.msra.mxu2 %v4617_v38 }
 0x1b4   :  { %3328 = vmatmul.msk.bf16.gmra.mxu2 %vm417_vm1, %v3326_v59  ;;  %v4217_v59 = vld [vmem:[%s5822_s4 + $0xc4] sm:$0xf0] }
 0x1b5   :  { %655 = vmatpush.bf16.msra.mxu2 %v4535_v27  ;;  %v3484_v2 = vor.u32 %v4217_v59, %v3483_v58  ;;  %v4210_v58 = vld [vmem:[%s5822_s4 + $0xa4] sm:$0xf]  ;;  %v3453_v59 = vld [vmem:[%s5822_s4 + $0xa8] sm:$0xf0] }
 0x1b9   :  { %762 = vmatpush.bf16.msrb.mxu2 %v4565_v63 }
 0x1bd   :  { %763 = vmatpush.bf16.msrb.mxu2 %v4576_v7 }
 0x1c1   :  { %764 = vmatpush.bf16.msrb.mxu2 %v4585_v14 }
 0x1c4   :  { %656 = vmatmul.bf16.vlgmr.msra.gmra.mxu2 %v3356_v62  ;;  %v437_v21 = vpop.f32.mrf.mxu1 }
 0x1c5   :  { %765 = vmatpush.bf16.msrb.mxu2 %v4597_v24 }
 0x1c9   :  { %766 = vmatpush.bf16.msrb.mxu2 %v4606_v32 }
 0x1cc   :  { %v439_v25 = vpop.f32.mrf.mxu1 }
 0x1cd   :  { %767 = vmatpush.bf16.msrb.mxu2 %v4612_v36 }
 0x1d1   :  { %768 = vmatpush.bf16.msrb.mxu2 %v4617_v38 }
 0x1d4   :  { %661 = vmatmul.bf16.gmra.mxu2 %v3364_v3 }
 0x1d5   :  { %769 = vmatpush.bf16.msrb.mxu2 %v4535_v27 }
 0x1d9   :  { %876 = vmatpush.bf16.msra.mxu2 %v4565_v63 }
 0x1dd   :  { %877 = vmatpush.bf16.msra.mxu2 %v4576_v7 }
 0x1e1   :  { %878 = vmatpush.bf16.msra.mxu2 %v4585_v14 }
 0x1e4   :  { %770 = vmatmul.bf16.vlgmr.msrb.gmra.mxu2 %v3388_v6 }
 0x1e5   :  { %879 = vmatpush.bf16.msra.mxu2 %v4597_v24 }
 0x1e8   :  { %v442_v34 = vpop.f32.mrf.mxu1 }
 0x1e9   :  { %880 = vmatpush.bf16.msra.mxu2 %v4606_v32 }
 0x1ed   :  { %881 = vmatpush.bf16.msra.mxu2 %v4612_v36 }
 0x1ef   :  { %v509_v44 = vpop.f32.mrf.mxu3 }
 0x1f0   :  { %v444_v20 = vpop.f32.mrf.mxu1 }
 0x1f1   :  { %882 = vmatpush.bf16.msra.mxu2 %v4617_v38 }
 0x1f4   :  { %775 = vmatmul.bf16.gmra.mxu2 %v3396_v12  ;;  %v4219_v12 = vld [vmem:[%s5822_s4 + $0xd4] sm:$0xf0] }
 0x1f5   :  { %883 = vmatpush.bf16.msra.mxu2 %v4535_v27  ;;  %v3492_v17 = vor.u32 %v4219_v12, %v3491_v11  ;;  %v4196_v11 = vld [vmem:[%s5823_s5 + $0x20] sm:$0xff]  ;;  %v4212_v12 = vld [vmem:[%s5822_s4 + $0xb4] sm:$0xf] }
 0x1f7   :  { %v511_v48 = vpop.f32.mrf.mxu3 }
 0x1f9   :  { %990 = vmatpush.bf16.msrb.mxu2 %v4565_v63 }
 0x1fd   :  { %991 = vmatpush.bf16.msrb.mxu2 %v4576_v7 }
 0x1ff   :  { %v514_v56 = vpop.f32.mrf.mxu3 }
 0x201   :  { %992 = vmatpush.bf16.msrb.mxu2 %v4585_v14 }
 0x204   :  { %884 = vmatmul.bf16.vlgmr.msra.gmra.mxu2 %v3420_v22  ;;  %v4194_v22 = vld [vmem:[%s5822_s4 + $0x54] sm:$0xf] }
 0x205   :  { %993 = vmatpush.bf16.msrb.mxu2 %v4597_v24 }
 0x207   :  { %v456_v23 = vpop.f32.mrf.mxu2  ;;  %v516_v60 = vpop.f32.mrf.mxu3 }
 0x208   :  { %v457_v0 = vadd.f32 %v456_v23, %v437_v21  ;;  %v3365_v23 = vld [vmem:[%s5822_s4 + $0x58] sm:$0xf0] }
 0x209   :  { %994 = vmatpush.bf16.msrb.mxu2 %v4606_v32 }
 0x20d   :  { %995 = vmatpush.bf16.msrb.mxu2 %v4612_v36 }
 0x20f   :  { %v458_v18 = vpop.f32.mrf.mxu2 }
 0x210   :  { %v459_v31 = vadd.f32 %v458_v18, %v439_v25  ;;  %v4222_v25 = vld [vmem:[%s5822_s4 + $0xe4] sm:$0xf]  ;;  %v3368_v18 = vor.u32 %v4194_v22, %v3365_v23 }
 0x211   :  { %996 = vmatpush.bf16.msrb.mxu2 %v4617_v38 }
 0x212   :  { %v466_v33 = vpack.c.bf16 %v459_v31, %v457_v0  ;;  %v3520_v0 = vor.u32 %v4222_v25, %v3517_v15 }
 0x214   :  { %3351 = vmatmul.msk.bf16.vlgmr.msrb.gmra.mxu3 %vm557_vm2, %v466_v33  ;;  %889 = vmatmul.bf16.gmra.mxu2 %v3428_v30  ;;  %v4198_v30 = vld [vmem:[%s5822_s4 + $0x64] sm:$0xf]  ;;  %v3389_v33 = vld [vmem:[%s5822_s4 + $0x68] sm:$0xf0] }
 0x215   :  { %997 = vmatpush.bf16.msrb.mxu2 %v4535_v27  ;;  %v3392_v37 = vor.u32 %v4198_v30, %v3389_v33  ;;  %v4216_v30 = vld [vmem:[%s5822_s4 + $0xc4] sm:$0xf]  ;;  %v3485_v33 = vld [vmem:[%s5822_s4 + $0xc8] sm:$0xf0] }
 0x217   :  { %v461_v35 = vpop.f32.mrf.mxu2 }
 0x218   :  { %v462_v41 = vadd.f32 %v461_v35, %v442_v34  ;;  %v4224_v34 = vld [vmem:[%s5822_s4 + $0xf4] sm:$0xf]  ;;  %v3525_v35 = vld [vmem:[%s5822_s4 + $0xf8] sm:$0xf0] }
 0x219   :  { %1104 = vmatpush.bf16.msra.mxu2 %v4565_v63  ;;  %v3528_v39 = vor.u32 %v4224_v34, %v3525_v35  ;;  %v3488_v35 = vor.u32 %v4216_v30, %v3485_v33 }
 0x21d   :  { %1105 = vmatpush.bf16.msra.mxu2 %v4576_v7 }
 0x21f   :  { %v463_v40 = vpop.f32.mrf.mxu2 }
 0x220   :  { %v464_v42 = vadd.f32 %v463_v40, %v444_v20 }
 0x221   :  { %1106 = vmatpush.bf16.msra.mxu2 %v4585_v14 }
 0x222   :  { %v467_v46 = vpack.c.bf16 %v464_v42, %v462_v41  ;;  %v4200_v41 = vld [vmem:[%s5822_s4 + $0x74] sm:$0xf]  ;;  %v3397_v42 = vld [vmem:[%s5822_s4 + $0x78] sm:$0xf0] }
 0x224   :  { %3352 = vmatmul.msk.bf16.gmra.mxu3 %vm557_vm2, %v467_v46  ;;  %998 = vmatmul.bf16.vlgmr.msrb.gmra.mxu2 %v3452_v45  ;;  %v3400_v45 = vor.u32 %v4200_v41, %v3397_v42 }
 0x225   :  { %1107 = vmatpush.bf16.msra.mxu2 %v4597_v24 }
 0x227   :  { %v528_v47 = vpop.f32.mrf.mxu2 }
 0x228   :  { %v529_v52 = vadd.f32 %v528_v47, %v509_v44  ;;  %v4204_v47 = vld [vmem:[%s5822_s4 + $0x84] sm:$0xf] }
 0x229   :  { %1108 = vmatpush.bf16.msra.mxu2 %v4606_v32 }
 0x22d   :  { %1109 = vmatpush.bf16.msra.mxu2 %v4612_v36 }
 0x22f   :  { %v530_v51 = vpop.f32.mrf.mxu2 }
 0x230   :  { %v531_v53 = vadd.f32 %v530_v51, %v511_v48  ;;  %v3421_v48 = vld [vmem:[%s5822_s4 + $0x88] sm:$0xf0] }
 0x231   :  { %1110 = vmatpush.bf16.msra.mxu2 %v4617_v38  ;;  %v3424_v50 = vor.u32 %v4204_v47, %v3421_v48  ;;  %v4202_v48 = vld [vmem:[%s5823_s5 + $0x30] sm:$0xff] }
 0x232   :  { %v538_v55 = vpack.c.bf16 %v531_v53, %v529_v52  ;;  %v4206_v52 = vld [vmem:[%s5822_s4 + $0x94] sm:$0xf]  ;;  %v3429_v53 = vld [vmem:[%s5822_s4 + $0x98] sm:$0xf0] }
 0x234   :  { %3341 = vmatmul.msk.bf16.vlgmr.msrb.gmra.mxu1 %vm557_vm2, %v538_v55  ;;  %1003 = vmatmul.bf16.gmra.mxu2 %v3460_v54  ;;  %v3432_v55 = vor.u32 %v4206_v52, %v3429_v53  ;;  %v4218_v52 = vld [vmem:[%s5822_s4 + $0xd4] sm:$0xf]  ;;  %v3493_v53 = vld [vmem:[%s5822_s4 + $0xd8] sm:$0xf0] }
 0x235   :  { %1111 = vmatpush.bf16.msra.mxu2 %v4535_v27  ;;  %784 = vmatpush.bf16.msrb.mxu1 %v4659_v9 }
 0x237   :  { %v533_v57 = vpop.f32.mrf.mxu2 }
 0x238   :  { %v534_v62 = vadd.f32 %v533_v57, %v514_v56 }
 0x239   :  { %1240 = vmatpush.bf16.msrb.mxu2 %v4659_v9  ;;  %785 = vmatpush.bf16.msrb.mxu1 %v4669_v19 }
 0x23d   :  { %1241 = vmatpush.bf16.msrb.mxu2 %v4669_v19  ;;  %786 = vmatpush.bf16.msrb.mxu1 %v4678_v26 }
 0x23f   :  { %v535_v61 = vpop.f32.mrf.mxu2 }
 0x240   :  { %v536_v1 = vadd.f32 %v535_v61, %v516_v60  ;;  %v3456_v61 = vor.u32 %v4210_v58, %v3453_v59 }
 0x241   :  { %1242 = vmatpush.bf16.msrb.mxu2 %v4678_v26  ;;  %787 = vmatpush.bf16.msrb.mxu1 %v4696_v29 }
 0x242   :  { %v539_v3 = vpack.c.bf16 %v536_v1, %v534_v62  ;;  %v4227_v1 = vld [vmem:[%s5823_s5 + $0x78] sm:$0xff] }
 0x244   :  { %3342 = vmatmul.msk.bf16.gmra.mxu1 %vm557_vm2, %v539_v3  ;;  %1112 = vmatmul.bf16.vlgmr.msra.gmra.mxu2 %v3484_v2  ;;  %v4226_v3 = vld [vmem:[%s5823_s5 + $0x70] sm:$0xff] }
 0x245   :  { %1243 = vmatpush.bf16.msrb.mxu2 %v4696_v29  ;;  %788 = vmatpush.bf16.msrb.mxu1 %v4713_v43 }
 0x247   :  { %v4886_v6 = vpop.f32.mrf.mxu2 }
 0x249   :  { %1244 = vmatpush.bf16.msrb.mxu2 %v4713_v43 }
 0x24d   :  { %1401 = vmatpush.bf16.msra.mxu2 %v4233_v4  ;;  %v4197_v4 = vld [vmem:[%s5823_s5 + $0x28] sm:$0xff] }
 0x24e   :  { %717 = vmatpush.bf16.msra.mxu3 %v4197_v4 }
 0x24f   :  { %v4900_v13 = vpop.f32.mrf.mxu2 }
 0x251   :  { %1402 = vmatpush.bf16.msra.mxu2 %v4232_v5 }
 0x252   :  { %718 = vmatpush.bf16.msra.mxu3 %v4196_v11 }
 0x254   :  { %3369 = vmatmul.msk.bf16.vlgmr.msra.gmra.mxu1 %vm417_vm1, %v3360_v16  ;;  %1117 = vmatmul.bf16.gmra.mxu2 %v3492_v17  ;;  %v3461_v16 = vld [vmem:[%s5822_s4 + $0xb8] sm:$0xf0] }
 0x255   :  { %898 = vmatpush.bf16.msra.mxu1 %v4659_v9  ;;  %v3464_v22 = vor.u32 %v4212_v12, %v3461_v16 }
 0x257   :  { %v4904_v21 = vpop.f32.mrf.mxu2 }
 0x259   :  { %899 = vmatpush.bf16.msra.mxu1 %v4669_v19 }
 0x25d   :  { %900 = vmatpush.bf16.msra.mxu1 %v4678_v26 }
 0x25f   :  { %v4920_v28 = vpop.f32.mrf.mxu2 }
 0x261   :  { %901 = vmatpush.bf16.msra.mxu1 %v4696_v29 }
 0x264   :  { %3370 = vmatmul.msk.bf16.gmra.mxu1 %vm417_vm1, %v3368_v18  ;;  %3529 = vmatmul.msk.bf16.vlgmr.msrb.gmra.mxu2 %vm417_vm1, %v3520_v0 }
 0x265   :  { %902 = vmatpush.bf16.msra.mxu1 %v4713_v43  ;;  %1560 = vmatpush.bf16.msrb.mxu2 %v4565_v63 }
 0x267   :  { %v4927_v31 = vpop.f32.mrf.mxu2 }
 0x269   :  { %1561 = vmatpush.bf16.msrb.mxu2 %v4576_v7 }
 0x26d   :  { %1562 = vmatpush.bf16.msrb.mxu2 %v4585_v14 }
 0x26f   :  { %v4943_v20 = vpop.f32.mrf.mxu2 }
 0x271   :  { %1563 = vmatpush.bf16.msrb.mxu2 %v4597_v24 }
 0x274   :  { %3401 = vmatmul.msk.bf16.vlgmr.msrb.gmra.mxu1 %vm417_vm1, %v3392_v37  ;;  %3530 = vmatmul.msk.bf16.gmra.mxu2 %vm417_vm1, %v3528_v39  ;;  %v4203_v39 = vld [vmem:[%s5823_s5 + $0x38] sm:$0xff] }
 0x275   :  { %1012 = vmatpush.bf16.msrb.mxu1 %v4659_v9  ;;  %1564 = vmatpush.bf16.msrb.mxu2 %v4606_v32 }
 0x276   :  { %831 = vmatpush.bf16.msrb.mxu3 %v4203_v39 }
 0x277   :  { %v4950_v40 = vpop.f32.mrf.mxu2 }
 0x279   :  { %1013 = vmatpush.bf16.msrb.mxu1 %v4669_v19  ;;  %1565 = vmatpush.bf16.msrb.mxu2 %v4612_v36 }
 0x27a   :  { %832 = vmatpush.bf16.msrb.mxu3 %v4202_v48 }
 0x27d   :  { %1014 = vmatpush.bf16.msrb.mxu1 %v4678_v26  ;;  %1566 = vmatpush.bf16.msrb.mxu2 %v4617_v38 }
 0x27f   :  { %v4962_v44 = vpop.f32.mrf.mxu2 }
 0x281   :  { %1015 = vmatpush.bf16.msrb.mxu1 %v4696_v29  ;;  %1567 = vmatpush.bf16.msrb.mxu2 %v4535_v27 }
 0x284   :  { %3402 = vmatmul.msk.bf16.gmra.mxu1 %vm417_vm1, %v3400_v45 }
 0x285   :  { %1016 = vmatpush.bf16.msrb.mxu1 %v4713_v43 }
 0x287   :  { %v4968_v46 = vpop.f32.mrf.mxu2 }
 0x28f   :  { %v4976_v49 = vpop.f32.mrf.mxu2 }
 0x294   :  { %3433 = vmatmul.msk.bf16.vlgmr.msra.gmra.mxu1 %vm417_vm1, %v3424_v50 }
 0x295   :  { %1126 = vmatpush.bf16.msra.mxu1 %v4659_v9 }
 0x297   :  { %v4980_v51 = vpop.f32.mrf.mxu2  ;;  %v610_v57 = vpop.f32.mrf.mxu3 }
 0x299   :  { %1127 = vmatpush.bf16.msra.mxu1 %v4669_v19 }
 0x29d   :  { %1128 = vmatpush.bf16.msra.mxu1 %v4678_v26 }
 0x29f   :  { %v4990_v54 = vpop.f32.mrf.mxu2  ;;  %v5017_v5 = vpop.f32.mrf.mxu3 }
 0x2a1   :  { %1129 = vmatpush.bf16.msra.mxu1 %v4696_v29 }
 0x2a4   :  { %3434 = vmatmul.msk.bf16.gmra.mxu1 %vm417_vm1, %v3432_v55  ;;  %v1227_v55 = vpop.f32.mrf.mxu0 }
 0x2a5   :  { %1130 = vmatpush.bf16.msra.mxu1 %v4713_v43 }
 0x2a7   :  { %v4995_v56 = vpop.f32.mrf.mxu2  ;;  %v615_v23 = vpop.f32.mrf.mxu3 }
 0x2af   :  { %v5003_v60 = vpop.f32.mrf.mxu2 }
 0x2b1   :  { %v573_v62 = vpop.f32.mrf.mxu1 }
 0x2b2   :  { %v5008_v2 = vadd.f32 %v610_v57, %v573_v62 }
 0x2b4   :  { %3465 = vmatmul.msk.bf16.vlgmr.msrb.gmra.mxu1 %vm417_vm1, %v3456_v61 }
 0x2b5   :  { %1287 = vmatpush.bf16.msrb.mxu1 %v4227_v1  ;;  %v1229_v1 = vpop.f32.mrf.mxu0 }
 0x2b7   :  { %v5019_v8 = vpop.f32.mrf.mxu2 }
 0x2b9   :  { %v5021_v10 = vpop.f32.mrf.mxu1  ;;  %1288 = vmatpush.bf16.msrb.mxu1 %v4226_v3 }
 0x2bf   :  { %v5032_v17 = vpop.f32.mrf.mxu2 }
 0x2c1   :  { %v578_v25 = vpop.f32.mrf.mxu1 }
 0x2c2   :  { %v5034_v15 = vadd.f32 %v615_v23, %v578_v25  ;;  %v1232_v23 = vpop.f32.mrf.mxu0 }
 0x2c4   :  { %3466 = vmatmul.msk.bf16.gmra.mxu1 %vm417_vm1, %v3464_v22 }
 0x2c7   :  { %v5037_v18 = vpop.f32.mrf.mxu2 }
 0x2c9   :  { %v5039_v0 = vpop.f32.mrf.mxu1 }
 0x2ca   :  { %v1234_v39 = vpop.f32.mrf.mxu0 }
 0x2cf   :  { %v5047_v34 = vpop.f32.mrf.mxu2 }
 0x2d1   :  { %v676_v37 = vpop.f32.mrf.mxu1 }
 0x2d2   :  { %v677_v45 = vadd.f32 %v676_v37, %v4886_v6 }
 0x2d4   :  { %3497 = vmatmul.msk.bf16.vlgmr.msra.gmra.mxu1 %vm417_vm1, %v3488_v35  ;;  %v4208_v35 = vld [vmem:[%s5823_s5 + $0x40] sm:$0xff] }
 0x2d5   :  { %1446 = vmatpush.bf16.msra.mxu1 %v4565_v63 }
 0x2d7   :  { %v5054_v41 = vpop.f32.mrf.mxu2 }
 0x2d9   :  { %1447 = vmatpush.bf16.msra.mxu1 %v4576_v7  ;;  %v678_v42 = vpop.f32.mrf.mxu1 }
 0x2da   :  { %v679_v47 = vadd.f32 %v678_v42, %v4900_v13  ;;  %v3496_v13 = vor.u32 %v4218_v52, %v3493_v53 }
 0x2dc   :  { %v686_v50 = vpack.c.bf16 %v679_v47, %v677_v45 }
 0x2dd   :  { %1448 = vmatpush.bf16.msra.mxu1 %v4585_v14 }
 0x2de   :  { %3383 = vmatmul.msk.bf16.vlgmr.msra.gmra.mxu3 %vm557_vm2, %v686_v50 }
 0x2df   :  { %v5070_v6 = vpop.f32.mrf.mxu2 }
 0x2e1   :  { %1449 = vmatpush.bf16.msra.mxu1 %v4597_v24  ;;  %v681_v57 = vpop.f32.mrf.mxu1 }
 0x2e2   :  { %v682_v61 = vadd.f32 %v681_v57, %v4904_v21  ;;  %v4209_v21 = vld [vmem:[%s5823_s5 + $0x48] sm:$0xff] }
 0x2e3   :  { %945 = vmatpush.bf16.msra.mxu3 %v4209_v21 }
 0x2e4   :  { %3498 = vmatmul.msk.bf16.gmra.mxu1 %vm417_vm1, %v3496_v13  ;;  %v3579_v13 = vld [vmem:[%s5822_s4 + $0x120] sm:$0xf] }
 0x2e5   :  { %1450 = vmatpush.bf16.msra.mxu1 %v4606_v32 }
 0x2e7   :  { %v1246_v58 = vpop.f32.mrf.mxu2  ;;  %946 = vmatpush.bf16.msra.mxu3 %v4208_v35 }
 0x2e8   :  { %v1247_v4 = vadd.f32 %v1246_v58, %v1227_v55  ;;  %v4235_v55 = vld [vmem:[%s5822_s4 + $0x124] sm:$0xf0] }
 0x2e9   :  { %1451 = vmatpush.bf16.msra.mxu1 %v4612_v36  ;;  %v683_v59 = vpop.f32.mrf.mxu1  ;;  %v3580_v58 = vor.u32 %v4235_v55, %v3579_v13 }
 0x2ea   :  { %v684_v62 = vadd.f32 %v683_v59, %v4920_v28  ;;  %v4251_v59 = vld [vmem:[%s5823_s5 + $0xb8] sm:$0xff] }
 0x2ec   :  { %v687_v3 = vpack.c.bf16 %v684_v62, %v682_v61  ;;  %v4214_v61 = vld [vmem:[%s5823_s5 + $0x50] sm:$0xff] }
 0x2ed   :  { %1452 = vmatpush.bf16.msra.mxu1 %v4617_v38 }
 0x2ee   :  { %3384 = vmatmul.msk.bf16.gmra.mxu3 %vm557_vm2, %v687_v3 }
 0x2ef   :  { %v1248_v11 = vpop.f32.mrf.mxu2 }
 0x2f0   :  { %v1249_v12 = vadd.f32 %v1248_v11, %v1229_v1 }
 0x2f1   :  { %1453 = vmatpush.bf16.msra.mxu1 %v4535_v27  ;;  %v790_v16 = vpop.f32.mrf.mxu1 }
 0x2f2   :  { %v1256_v22 = vpack.c.bf16 %v1249_v12, %v1247_v4  ;;  %v791_v30 = vadd.f32 %v790_v16, %v4927_v31  ;;  %v4221_v4 = vld [vmem:[%s5823_s5 + $0x68] sm:$0xff]  ;;  %v3587_v12 = vld [vmem:[%s5822_s4 + $0x130] sm:$0xf]  ;;  %v4237_v16 = vld [vmem:[%s5822_s4 + $0x134] sm:$0xf0] }
 0x2f4   :  { %3543 = vmatmul.msk.bf16.vlgmr.msrb.gmra.mxu1 %vm557_vm2, %v1256_v22  ;;  %v3588_v22 = vor.u32 %v4237_v16, %v3587_v12  ;;  %v4245_v12 = vld [vmem:[%s5823_s5 + $0xa8] sm:$0xff] }
 0x2f5   :  { %1582 = vmatpush.bf16.msrb.mxu1 %v4659_v9 }
 0x2f7   :  { %v1251_v28 = vpop.f32.mrf.mxu2 }
 0x2f8   :  { %v1252_v42 = vadd.f32 %v1251_v28, %v1232_v23 }
 0x2f9   :  { %v792_v25 = vpop.f32.mrf.mxu1  ;;  %1583 = vmatpush.bf16.msrb.mxu1 %v4669_v19 }
 0x2fa   :  { %v793_v33 = vadd.f32 %v792_v25, %v4943_v20 }
 0x2fc   :  { %v800_v37 = vpack.c.bf16 %v793_v33, %v791_v30  ;;  %v4240_v30 = vld [vmem:[%s5822_s4 + $0x144] sm:$0xf]  ;;  %v3613_v33 = vld [vmem:[%s5822_s4 + $0x148] sm:$0xf0] }
 0x2fd   :  { %1584 = vmatpush.bf16.msrb.mxu1 %v4678_v26 }
 0x2fe   :  { %3415 = vmatmul.msk.bf16.vlgmr.msrb.gmra.mxu3 %vm557_vm2, %v800_v37  ;;  %v3616_v37 = vor.u32 %v4240_v30, %v3613_v33  ;;  %v3581_v30 = vld [vmem:[%s5822_s4 + $0x128] sm:$0xf0] }
 0x2ff   :  { %v1253_v45 = vpop.f32.mrf.mxu2 }
 0x300   :  { %v1254_v47 = vadd.f32 %v1253_v45, %v1234_v39 }
 0x301   :  { %v795_v48 = vpop.f32.mrf.mxu1  ;;  %1585 = vmatpush.bf16.msrb.mxu1 %v4696_v29 }
 0x302   :  { %v1257_v31 = vpack.c.bf16 %v1254_v47, %v1252_v42  ;;  %v796_v50 = vadd.f32 %v795_v48, %v4950_v40  ;;  %v4215_v40 = vld [vmem:[%s5823_s5 + $0x58] sm:$0xff] }
 0x303   :  { %1059 = vmatpush.bf16.msrb.mxu3 %v4215_v40 }
 0x304   :  { %3544 = vmatmul.msk.bf16.gmra.mxu1 %vm557_vm2, %v1257_v31 }
 0x305   :  { %1586 = vmatpush.bf16.msrb.mxu1 %v4713_v43 }
 0x307   :  { %1060 = vmatpush.bf16.msrb.mxu3 %v4214_v61 }
 0x309   :  { %v797_v20 = vpop.f32.mrf.mxu1 }
 0x30a   :  { %v798_v52 = vadd.f32 %v797_v20, %v4962_v44  ;;  %v4250_v44 = vld [vmem:[%s5823_s5 + $0xb0] sm:$0xff] }
 0x30c   :  { %v801_v53 = vpack.c.bf16 %v798_v52, %v796_v50 }
 0x30e   :  { %3416 = vmatmul.msk.bf16.gmra.mxu3 %vm557_vm2, %v801_v53 }
 0x311   :  { %v904_v57 = vpop.f32.mrf.mxu1 }
 0x312   :  { %v905_v1 = vadd.f32 %v904_v57, %v4968_v46  ;;  %v4220_v46 = vld [vmem:[%s5823_s5 + $0x60] sm:$0xff] }
 0x314   :  { %1454 = vmatmul.bf16.vlgmr.msra.gmra.mxu1 %v3580_v58 }
 0x315   :  { %1743 = vmatpush.bf16.msra.mxu1 %v4251_v59 }
 0x319   :  { %v906_v62 = vpop.f32.mrf.mxu1  ;;  %1744 = vmatpush.bf16.msra.mxu1 %v4250_v44  ;;  %v4230_v44 = vld [vmem:[%s5822_s4 + $0x114] sm:$0xf] }
 0x31a   :  { %v907_v3 = vadd.f32 %v906_v62, %v4976_v49  ;;  %v4229_v62 = vld [vmem:[%s5822_s4 + $0x104] sm:$0xf0] }
 0x31c   :  { %v914_v11 = vpack.c.bf16 %v907_v3, %v905_v1 }
 0x31e   :  { %3447 = vmatmul.msk.bf16.vlgmr.msra.gmra.mxu3 %vm557_vm2, %v914_v11 }
 0x31f   :  { %1173 = vmatpush.bf16.msra.mxu3 %v4221_v4 }
 0x321   :  { %v909_v49 = vpop.f32.mrf.mxu1 }
 0x322   :  { %v910_v21 = vadd.f32 %v909_v49, %v4980_v51  ;;  %v4231_v49 = vld [vmem:[%s5822_s4 + $0x114] sm:$0xf0] }
 0x323   :  { %1174 = vmatpush.bf16.msra.mxu3 %v4220_v46 }
 0x324   :  { %1459 = vmatmul.bf16.gmra.mxu1 %v3588_v22 }
 0x329   :  { %v911_v23 = vpop.f32.mrf.mxu1 }
 0x32a   :  { %v912_v28 = vadd.f32 %v911_v23, %v4990_v54 }
 0x32c   :  { %v915_v25 = vpack.c.bf16 %v912_v28, %v910_v21 }
 0x32e   :  { %3448 = vmatmul.msk.bf16.gmra.mxu3 %vm557_vm2, %v915_v25  ;;  %v4234_v25 = vld [vmem:[%s5822_s4 + $0x124] sm:$0xf] }
 0x331   :  { %v1018_v35 = vpop.f32.mrf.mxu1 }
 0x332   :  { %v1019_v54 = vadd.f32 %v1018_v35, %v4995_v56  ;;  %v3584_v35 = vor.u32 %v4234_v25, %v3581_v30 }
 0x334   :  { %3625 = vmatmul.msk.bf16.vlgmr.msrb.gmra.mxu1 %vm417_vm1, %v3616_v37 }
 0x335   :  { %1902 = vmatpush.bf16.msrb.mxu1 %v4565_v63 }
 0x339   :  { %v1020_v51 = vpop.f32.mrf.mxu1  ;;  %1903 = vmatpush.bf16.msrb.mxu1 %v4576_v7 }
 0x33a   :  { %v1021_v39 = vadd.f32 %v1020_v51, %v5003_v60 }
 0x33c   :  { %v1028_v42 = vpack.c.bf16 %v1021_v39, %v1019_v54  ;;  %v4236_v54 = vld [vmem:[%s5822_s4 + $0x134] sm:$0xf]  ;;  %v3589_v39 = vld [vmem:[%s5822_s4 + $0x138] sm:$0xf0] }
 0x33d   :  { %1904 = vmatpush.bf16.msrb.mxu1 %v4585_v14 }
 0x33e   :  { %3479 = vmatmul.msk.bf16.vlgmr.msrb.gmra.mxu3 %vm557_vm2, %v1028_v42 }
 0x33f   :  { %1332 = vmatpush.bf16.msrb.mxu3 %v4565_v63 }
 0x341   :  { %v1023_v45 = vpop.f32.mrf.mxu1  ;;  %1905 = vmatpush.bf16.msrb.mxu1 %v4597_v24 }
 0x342   :  { %v1024_v47 = vadd.f32 %v1023_v45, %v5019_v8  ;;  %v617_v8 = vpop.f32.mrf.mxu3  ;;  %v3592_v45 = vor.u32 %v4236_v54, %v3589_v39 }
 0x343   :  { %1333 = vmatpush.bf16.msrb.mxu3 %v4576_v7  ;;  %v618_v1 = vadd.f32 %v617_v8, %v5039_v0  ;;  %v3555_v0 = vld [vmem:[%s5822_s4 + $0x110] sm:$0xf] }
 0x344   :  { %v3556_v23 = vor.u32 %v4231_v49, %v3555_v0 }
 0x345   :  { %1906 = vmatpush.bf16.msrb.mxu1 %v4606_v32 }
 0x347   :  { %1334 = vmatpush.bf16.msrb.mxu3 %v4585_v14 }
 0x349   :  { %v1025_v56 = vpop.f32.mrf.mxu1  ;;  %1907 = vmatpush.bf16.msrb.mxu1 %v4612_v36 }
 0x34a   :  { %v1026_v60 = vadd.f32 %v1025_v56, %v5032_v17 }
 0x34b   :  { %1335 = vmatpush.bf16.msrb.mxu3 %v4597_v24 }
 0x34c   :  { %v1029_v48 = vpack.c.bf16 %v1026_v60, %v1024_v47 }
 0x34d   :  { %1908 = vmatpush.bf16.msrb.mxu1 %v4617_v38 }
 0x34e   :  { %3480 = vmatmul.msk.bf16.gmra.mxu3 %vm557_vm2, %v1029_v48 }
 0x34f   :  { %1336 = vmatpush.bf16.msrb.mxu3 %v4606_v32 }
 0x351   :  { %v1132_v31 = vpop.f32.mrf.mxu1  ;;  %1909 = vmatpush.bf16.msrb.mxu1 %v4535_v27 }
 0x352   :  { %v1133_v17 = vadd.f32 %v1132_v31, %v5037_v18  ;;  %v613_v18 = vadd.f32 %v5017_v5, %v5021_v10 }
 0x353   :  { %1337 = vmatpush.bf16.msrb.mxu3 %v4612_v36 }
 0x357   :  { %1338 = vmatpush.bf16.msrb.mxu3 %v4617_v38 }
 0x359   :  { %v1134_v20 = vpop.f32.mrf.mxu1 }
 0x35a   :  { %v1135_v50 = vadd.f32 %v1134_v20, %v5047_v34 }
 0x35b   :  { %1339 = vmatpush.bf16.msrb.mxu3 %v4535_v27 }
 0x35c   :  { %v1142_v52 = vpack.c.bf16 %v1135_v50, %v1133_v17 }
 0x35e   :  { %3511 = vmatmul.msk.bf16.vlgmr.msra.gmra.mxu3 %vm557_vm2, %v1142_v52 }
 0x35f   :  { %1468 = vmatpush.bf16.msra.mxu3 %v4659_v9 }
 0x361   :  { %v720_v53 = vpop.f32.mrf.mxu3  ;;  %v1137_v13 = vpop.f32.mrf.mxu1 }
 0x362   :  { %v730_v55 = vadd.f32 %v720_v53, %v5008_v2  ;;  %v1138_v58 = vadd.f32 %v1137_v13, %v5054_v41  ;;  %v3557_v2 = vld [vmem:[%s5822_s4 + $0x118] sm:$0xf0] }
 0x363   :  { %1469 = vmatpush.bf16.msra.mxu3 %v4669_v19  ;;  %v3560_v61 = vor.u32 %v4230_v44, %v3557_v2 }
 0x365   :  { %3562 = vmatmul.msk.bf16.gmra.mxu0 %vm417_vm1, %v3560_v61  ;;  %v1360_v61 = vpop.f32.mrf.mxu0 }
 0x367   :  { %1470 = vmatpush.bf16.msra.mxu3 %v4678_v26 }
 0x369   :  { %v722_v57 = vpop.f32.mrf.mxu3  ;;  %v1139_v34 = vpop.f32.mrf.mxu1 }
 0x36a   :  { %v5175_v59 = vadd.f32 %v722_v57, %v613_v18  ;;  %v1140_v40 = vadd.f32 %v1139_v34, %v5070_v6  ;;  %v3547_v6 = vld [vmem:[%s5822_s4 + $0x100] sm:$0xf] }
 0x36b   :  { %1471 = vmatpush.bf16.msra.mxu3 %v4696_v29  ;;  %v3548_v11 = vor.u32 %v4229_v62, %v3547_v6 }
 0x36c   :  { %v1143_v5 = vpack.c.bf16 %v1140_v40, %v1138_v58 }
 0x36e   :  { %3512 = vmatmul.msk.bf16.gmra.mxu3 %vm557_vm2, %v1143_v5 }
 0x36f   :  { %1472 = vmatpush.bf16.msra.mxu3 %v4713_v43 }
 0x371   :  { %v725_v10 = vpop.f32.mrf.mxu3  ;;  %v1290_v52 = vpop.f32.mrf.mxu1 }
 0x372   :  { %v732_v41 = vadd.f32 %v725_v10, %v5034_v15  ;;  %v4244_v15 = vld [vmem:[%s5823_s5 + $0xa0] sm:$0xff]  ;;  %v1362_v10 = vpop.f32.mrf.mxu0 }
 0x379   :  { %v727_v3 = vpop.f32.mrf.mxu3  ;;  %v5246_v18 = vpop.f32.mrf.mxu1 }
 0x37a   :  { %v5196_v4 = vadd.f32 %v727_v3, %v618_v1 }
 0x37e   :  { %1340 = vmatmul.bf16.vlgmr.msrb.gmra.mxu3 %v3548_v11 }
 0x37f   :  { %1629 = vmatpush.bf16.msrb.mxu3 %v4245_v12 }
 0x381   :  { %v834_v16 = vpop.f32.mrf.mxu3  ;;  %v1295_v58 = vpop.f32.mrf.mxu1 }
 0x382   :  { %v844_v46 = vadd.f32 %v834_v16, %v730_v55 }
 0x383   :  { %1630 = vmatpush.bf16.msrb.mxu3 %v4244_v15 }
 0x389   :  { %v5210_v22 = vpop.f32.mrf.mxu3  ;;  %v5256_v11 = vpop.f32.mrf.mxu1 }
 0x38e   :  { %1345 = vmatmul.bf16.gmra.mxu3 %v3556_v23  ;;  %v4242_v23 = vld [vmem:[%s5822_s4 + $0x154] sm:$0xf] }
 0x391   :  { %v839_v21 = vpop.f32.mrf.mxu3 }
 0x392   :  { %v846_v28 = vadd.f32 %v839_v21, %v732_v41  ;;  %v3621_v21 = vld [vmem:[%s5822_s4 + $0x158] sm:$0xf0] }
 0x393   :  { %v3624_v25 = vor.u32 %v4242_v23, %v3621_v21 }
 0x395   :  { %3626 = vmatmul.msk.bf16.gmra.mxu1 %vm417_vm1, %v3624_v25  ;;  %v3677_v25 = vld [vmem:[%s5822_s4 + $0x188] sm:$0xf0] }
 0x399   :  { %v5218_v33 = vpop.f32.mrf.mxu3 }
 0x39e   :  { %3593 = vmatmul.msk.bf16.vlgmr.msra.gmra.mxu3 %vm417_vm1, %v3584_v35 }
 0x39f   :  { %1788 = vmatpush.bf16.msra.mxu3 %v4565_v63 }
 0x3a1   :  { %v948_v37 = vpop.f32.mrf.mxu3 }
 0x3a2   :  { %v958_v51 = vadd.f32 %v948_v37, %v844_v46  ;;  %v1455_v46 = vpop.f32.mrf.mxu1  ;;  %v3611_v37 = vld [vmem:[%s5822_s4 + $0x140] sm:$0xf] }
 0x3a3   :  { %1789 = vmatpush.bf16.msra.mxu3 %v4576_v7 }
 0x3a7   :  { %1790 = vmatpush.bf16.msra.mxu3 %v4585_v14 }
 0x3a9   :  { %v5230_v42 = vpop.f32.mrf.mxu3 }
 0x3aa   :  { %v1457_v35 = vpop.f32.mrf.mxu1 }
 0x3ab   :  { %1791 = vmatpush.bf16.msra.mxu3 %v4597_v24 }
 0x3ae   :  { %3594 = vmatmul.msk.bf16.gmra.mxu3 %vm417_vm1, %v3592_v45 }
 0x3af   :  { %1792 = vmatpush.bf16.msra.mxu3 %v4606_v32 }
 0x3b1   :  { %v953_v56 = vpop.f32.mrf.mxu3 }
 0x3b2   :  { %v960_v47 = vadd.f32 %v953_v56, %v846_v28 }
 0x3b3   :  { %1793 = vmatpush.bf16.msra.mxu3 %v4612_v36 }
 0x3b7   :  { %1794 = vmatpush.bf16.msra.mxu3 %v4617_v38 }
 0x3b9   :  { %v5237_v60 = vpop.f32.mrf.mxu3 }
 0x3bb   :  { %1795 = vmatpush.bf16.msra.mxu3 %v4535_v27 }
 0x3c1   :  { %v1062_v48 = vpop.f32.mrf.mxu3 }
 0x3c2   :  { %v1072_v31 = vadd.f32 %v1062_v48, %v958_v51  ;;  %v4241_v51 = vld [vmem:[%s5822_s4 + $0x144] sm:$0xf0] }
 0x3c3   :  { %v3612_v56 = vor.u32 %v4241_v51, %v3611_v37 }
 0x3c9   :  { %v5240_v8 = vpop.f32.mrf.mxu3 }
 0x3d1   :  { %v1067_v20 = vpop.f32.mrf.mxu3 }
 0x3d2   :  { %v1074_v17 = vadd.f32 %v1067_v20, %v960_v47  ;;  %v4257_v47 = vld [vmem:[%s5823_s5 + $0xc8] sm:$0xff]  ;;  %v4256_v20 = vld [vmem:[%s5823_s5 + $0xc0] sm:$0xff] }
 0x3d9   :  { %v5242_v50 = vpop.f32.mrf.mxu3 }
 0x3e1   :  { %v1176_v53 = vpop.f32.mrf.mxu3 }
 0x3e2   :  { %v1186_v13 = vadd.f32 %v1176_v53, %v1072_v31  ;;  %v1365_v3 = vpop.f32.mrf.mxu0  ;;  %v1460_v31 = vpop.f32.mrf.mxu1  ;;  %v3619_v53 = vld [vmem:[%s5822_s4 + $0x150] sm:$0xf] }
 0x3e4   :  { %v5244_v55 = vadd.f32 %v1290_v52, %v1186_v13  ;;  %v4243_v13 = vld [vmem:[%s5822_s4 + $0x154] sm:$0xf0] }
 0x3e9   :  { %v5248_v57 = vpop.f32.mrf.mxu3 }
 0x3ea   :  { %v1367_v15 = vpop.f32.mrf.mxu0  ;;  %v1462_v52 = vpop.f32.mrf.mxu1 }
 0x3f1   :  { %v1181_v34 = vpop.f32.mrf.mxu3 }
 0x3f2   :  { %v1188_v40 = vadd.f32 %v1181_v34, %v1074_v17 }
 0x3f4   :  { %v5250_v44 = vadd.f32 %v1295_v58, %v1188_v40 }
 0x3f9   :  { %v5252_v2 = vpop.f32.mrf.mxu3 }
 0x401   :  { %v1341_v5 = vpop.f32.mrf.mxu3 }
 0x402   :  { %v1361_v6 = vadd.f32 %v1360_v61, %v1341_v5  ;;  %v3620_v61 = vor.u32 %v4243_v13, %v3619_v53 }
 0x409   :  { %v1343_v41 = vpop.f32.mrf.mxu3 }
 0x40a   :  { %v1363_v62 = vadd.f32 %v1362_v10, %v1343_v41  ;;  %v3643_v10 = vld [vmem:[%s5822_s4 + $0x160] sm:$0xf]  ;;  %v4247_v41 = vld [vmem:[%s5822_s4 + $0x164] sm:$0xf0] }
 0x40c   :  { %v1370_v1 = vpack.c.bf16 %v1363_v62, %v1361_v6  ;;  %v4246_v6 = vld [vmem:[%s5822_s4 + $0x164] sm:$0xf]  ;;  %v3645_v62 = vld [vmem:[%s5822_s4 + $0x168] sm:$0xf0] }
 0x40e   :  { %3575 = vmatmul.msk.bf16.vlgmr.msra.gmra.mxu2 %vm557_vm2, %v1370_v1  ;;  %v3644_v1 = vor.u32 %v4247_v41, %v3643_v10 }
 0x40f   :  { %1696 = vmatpush.bf16.msra.mxu2 %v4659_v9 }
 0x411   :  { %v1346_v12 = vpop.f32.mrf.mxu3 }
 0x412   :  { %v1366_v0 = vadd.f32 %v1365_v3, %v1346_v12  ;;  %v3648_v3 = vor.u32 %v4246_v6, %v3645_v62  ;;  %v4263_v12 = vld [vmem:[%s5823_s5 + $0xd8] sm:$0xff]  ;;  %v3675_v6 = vld [vmem:[%s5822_s4 + $0x180] sm:$0xf]  ;;  %v4253_v62 = vld [vmem:[%s5822_s4 + $0x184] sm:$0xf0] }
 0x413   :  { %1697 = vmatpush.bf16.msra.mxu2 %v4669_v19 }
 0x417   :  { %1698 = vmatpush.bf16.msra.mxu2 %v4678_v26 }
 0x419   :  { %v1348_v16 = vpop.f32.mrf.mxu3 }
 0x41a   :  { %v1368_v49 = vadd.f32 %v1367_v15, %v1348_v16  ;;  %v4262_v15 = vld [vmem:[%s5823_s5 + $0xd0] sm:$0xff] }
 0x41b   :  { %1699 = vmatpush.bf16.msra.mxu2 %v4696_v29  ;;  %v3651_v16 = vld [vmem:[%s5822_s4 + $0x170] sm:$0xf] }
 0x41c   :  { %v1371_v28 = vpack.c.bf16 %v1368_v49, %v1366_v0  ;;  %v4248_v0 = vld [vmem:[%s5822_s4 + $0x174] sm:$0xf]  ;;  %v3653_v49 = vld [vmem:[%s5822_s4 + $0x178] sm:$0xf0] }
 0x41d   :  { %v3656_v21 = vor.u32 %v4248_v0, %v3653_v49 }
 0x41e   :  { %3576 = vmatmul.msk.bf16.gmra.mxu2 %vm557_vm2, %v1371_v28  ;;  %v4252_v28 = vld [vmem:[%s5822_s4 + $0x184] sm:$0xf] }
 0x41f   :  { %1700 = vmatpush.bf16.msra.mxu2 %v4713_v43 }
 0x421   :  { %v1474_v30 = vpop.f32.mrf.mxu3 }
 0x422   :  { %v1475_v54 = vadd.f32 %v1474_v30, %v1455_v46  ;;  %v4249_v46 = vld [vmem:[%s5822_s4 + $0x174] sm:$0xf0]  ;;  %v3680_v30 = vor.u32 %v4252_v28, %v3677_v25 }
 0x423   :  { %v3652_v23 = vor.u32 %v4249_v46, %v3651_v16 }
 0x429   :  { %v1476_v39 = vpop.f32.mrf.mxu3 }
 0x42a   :  { %v1477_v45 = vadd.f32 %v1476_v39, %v1457_v35 }
 0x42c   :  { %v1484_v48 = vpack.c.bf16 %v1477_v45, %v1475_v54 }
 0x42e   :  { %3607 = vmatmul.msk.bf16.vlgmr.msrb.gmra.mxu0 %vm557_vm2, %v1484_v48  ;;  %1568 = vmatmul.bf16.vlgmr.msrb.gmra.mxu2 %v3612_v56 }
 0x42f   :  { %1810 = vmatpush.bf16.msrb.mxu0 %v4659_v9  ;;  %1857 = vmatpush.bf16.msrb.mxu2 %v4257_v47 }
 0x431   :  { %v1479_v17 = vpop.f32.mrf.mxu3 }
 0x432   :  { %v1480_v34 = vadd.f32 %v1479_v17, %v1460_v31 }
 0x433   :  { %1811 = vmatpush.bf16.msrb.mxu0 %v4669_v19  ;;  %1858 = vmatpush.bf16.msrb.mxu2 %v4256_v20 }
 0x437   :  { %1812 = vmatpush.bf16.msrb.mxu0 %v4678_v26 }
 0x439   :  { %v1481_v58 = vpop.f32.mrf.mxu3 }
 0x43a   :  { %v1482_v40 = vadd.f32 %v1481_v58, %v1462_v52  ;;  %v4254_v58 = vld [vmem:[%s5822_s4 + $0x194] sm:$0xf] }
 0x43b   :  { %1813 = vmatpush.bf16.msrb.mxu0 %v4696_v29 }
 0x43c   :  { %v1485_v5 = vpack.c.bf16 %v1482_v40, %v1480_v34  ;;  %v3685_v40 = vld [vmem:[%s5822_s4 + $0x198] sm:$0xf0] }
 0x43e   :  { %3608 = vmatmul.msk.bf16.gmra.mxu0 %vm557_vm2, %v1485_v5  ;;  %1573 = vmatmul.bf16.gmra.mxu2 %v3620_v61  ;;  %v3688_v5 = vor.u32 %v4254_v58, %v3685_v40 }
 0x43f   :  { %1814 = vmatpush.bf16.msrb.mxu0 %v4713_v43 }
 0x44e   :  { %1682 = vmatmul.bf16.vlgmr.msra.gmra.mxu0 %v3644_v1  ;;  %3657 = vmatmul.msk.bf16.vlgmr.msra.gmra.mxu2 %vm417_vm1, %v3648_v3 }
 0x44f   :  { %2016 = vmatpush.bf16.msra.mxu2 %v4565_v63  ;;  %1971 = vmatpush.bf16.msra.mxu0 %v4263_v12 }
 0x453   :  { %2017 = vmatpush.bf16.msra.mxu2 %v4576_v7  ;;  %1972 = vmatpush.bf16.msra.mxu0 %v4262_v15  ;;  %v3676_v15 = vor.u32 %v4253_v62, %v3675_v6 }
 0x457   :  { %2018 = vmatpush.bf16.msra.mxu2 %v4585_v14 }
 0x45b   :  { %2019 = vmatpush.bf16.msra.mxu2 %v4597_v24 }
 0x45e   :  { %1687 = vmatmul.bf16.gmra.mxu0 %v3652_v23  ;;  %3658 = vmatmul.msk.bf16.gmra.mxu2 %vm417_vm1, %v3656_v21  ;;  %v3683_v23 = vld [vmem:[%s5822_s4 + $0x190] sm:$0xf]  ;;  %v4255_v21 = vld [vmem:[%s5822_s4 + $0x194] sm:$0xf0] }
 0x45f   :  { %2020 = vmatpush.bf16.msra.mxu2 %v4606_v32 }
 0x463   :  { %2021 = vmatpush.bf16.msra.mxu2 %v4612_v36 }
 0x467   :  { %2022 = vmatpush.bf16.msra.mxu2 %v4617_v38 }
 0x46b   :  { %2023 = vmatpush.bf16.msra.mxu2 %v4535_v27 }
 0x46e   :  { %3689 = vmatmul.msk.bf16.vlgmr.msrb.gmra.mxu0 %vm417_vm1, %v3680_v30 }
 0x46f   :  { %2130 = vmatpush.bf16.msrb.mxu0 %v4565_v63 }
 0x473   :  { %2131 = vmatpush.bf16.msrb.mxu0 %v4576_v7 }
 0x477   :  { %2132 = vmatpush.bf16.msrb.mxu0 %v4585_v14  ;;  %v1588_v14 = vpop.f32.mrf.mxu1 }
 0x47b   :  { %2133 = vmatpush.bf16.msrb.mxu0 %v4597_v24 }
 0x47e   :  { %3690 = vmatmul.msk.bf16.gmra.mxu0 %vm417_vm1, %v3688_v5 }
 0x47f   :  { %2134 = vmatpush.bf16.msrb.mxu0 %v4606_v32 }
 0x483   :  { %2135 = vmatpush.bf16.msrb.mxu0 %v4612_v36 }
 0x487   :  { %2136 = vmatpush.bf16.msrb.mxu0 %v4617_v38  ;;  %v1590_v38 = vpop.f32.mrf.mxu1 }
 0x48b   :  { %2137 = vmatpush.bf16.msrb.mxu0 %v4535_v27 }
 0x491   :  { %v1404_v35 = vpop.f32.mrf.mxu2 }
 0x492   :  { %v1414_v37 = vadd.f32 %v1404_v35, %v5244_v55  ;;  %v3684_v35 = vor.u32 %v4255_v21, %v3683_v23 }
 0x499   :  { %v5351_v51 = vpop.f32.mrf.mxu2 }
 0x4a1   :  { %v1409_v63 = vpop.f32.mrf.mxu2 }
 0x4a2   :  { %v1416_v7 = vadd.f32 %v1409_v63, %v5250_v44  ;;  %v1593_v44 = vpop.f32.mrf.mxu1  ;;  %v4258_v63 = vld [vmem:[%s5822_s4 + $0x1a4] sm:$0xf] }
 0x4a9   :  { %v5354_v54 = vpop.f32.mrf.mxu2 }
 0x4aa   :  { %v1595_v17 = vpop.f32.mrf.mxu1 }
 0x4ab   :  { %v1518_v24 = vpop.f32.mrf.mxu0 }
 0x4ac   :  { %v5356_v39 = vadd.f32 %v1518_v24, %v1414_v37  ;;  %v4259_v24 = vld [vmem:[%s5822_s4 + $0x1a4] sm:$0xf0] }
 0x4b1   :  { %v1569_v32 = vpop.f32.mrf.mxu2 }
 0x4b2   :  { %v1589_v27 = vadd.f32 %v1588_v14, %v1569_v32  ;;  %v3707_v14 = vld [vmem:[%s5822_s4 + $0x1a0] sm:$0xf] }
 0x4b3   :  { %v5358_v36 = vpop.f32.mrf.mxu0 }
 0x4b9   :  { %v1571_v45 = vpop.f32.mrf.mxu2 }
 0x4ba   :  { %v1591_v56 = vadd.f32 %v1590_v38, %v1571_v45  ;;  %v3708_v38 = vor.u32 %v4259_v24, %v3707_v14  ;;  %v4260_v45 = vld [vmem:[%s5822_s4 + $0x1b4] sm:$0xf]  ;;  %v4265_v14 = vld [vmem:[%s5822_s4 + $0x1c4] sm:$0xf0] }
 0x4bb   :  { %v1523_v47 = vpop.f32.mrf.mxu0 }
 0x4bc   :  { %v1598_v55 = vpack.c.bf16 %v1591_v56, %v1589_v27  ;;  %v5360_v48 = vadd.f32 %v1523_v47, %v1416_v7  ;;  %v3709_v7 = vld [vmem:[%s5822_s4 + $0x1a8] sm:$0xf0]  ;;  %v3717_v27 = vld [vmem:[%s5822_s4 + $0x1b8] sm:$0xf0]  ;;  %v3715_v56 = vld [vmem:[%s5822_s4 + $0x1b0] sm:$0xf] }
 0x4bd   :  { %v3712_v32 = vor.u32 %v4258_v63, %v3709_v7  ;;  %v4261_v47 = vld [vmem:[%s5822_s4 + $0x1b4] sm:$0xf0] }
 0x4be   :  { %3639 = vmatmul.msk.bf16.vlgmr.msrb.gmra.mxu3 %vm557_vm2, %v1598_v55  ;;  %v3720_v55 = vor.u32 %v4260_v45, %v3717_v27 }
 0x4bf   :  { %1924 = vmatpush.bf16.msrb.mxu3 %v4659_v9 }
 0x4c1   :  { %v1574_v31 = vpop.f32.mrf.mxu2 }
 0x4c2   :  { %v1594_v53 = vadd.f32 %v1593_v44, %v1574_v31  ;;  %v3716_v44 = vor.u32 %v4261_v47, %v3715_v56  ;;  %v3747_v47 = vld [vmem:[%s5822_s4 + $0x1d0] sm:$0xf] }
 0x4c3   :  { %1925 = vmatpush.bf16.msrb.mxu3 %v4669_v19  ;;  %v5365_v20 = vpop.f32.mrf.mxu0 }
 0x4c7   :  { %1926 = vmatpush.bf16.msrb.mxu3 %v4678_v26 }
 0x4c9   :  { %v1576_v52 = vpop.f32.mrf.mxu2 }
 0x4ca   :  { %v1596_v13 = vadd.f32 %v1595_v17, %v1576_v52 }
 0x4cb   :  { %1927 = vmatpush.bf16.msrb.mxu3 %v4696_v29  ;;  %v1683_v34 = vpop.f32.mrf.mxu0 }
 0x4cc   :  { %v1599_v61 = vpack.c.bf16 %v1596_v13, %v1594_v53 }
 0x4ce   :  { %3640 = vmatmul.msk.bf16.gmra.mxu3 %vm557_vm2, %v1599_v61 }
 0x4cf   :  { %1928 = vmatpush.bf16.msrb.mxu3 %v4713_v43 }
 0x4d1   :  { %v1702_v10 = vpop.f32.mrf.mxu2 }
 0x4d2   :  { %v1703_v1 = vadd.f32 %v1702_v10, %v1683_v34  ;;  %v847_v10 = vadd.f32 %v5218_v33, %v5196_v4 }
 0x4d3   :  { %v1685_v41 = vpop.f32.mrf.mxu0 }
 0x4d4   :  { %v961_v6 = vadd.f32 %v5237_v60, %v847_v10  ;;  %v3773_v10 = vld [vmem:[%s5822_s4 + $0x1e8] sm:$0xf0] }
 0x4d9   :  { %v1704_v3 = vpop.f32.mrf.mxu2 }
 0x4da   :  { %v1705_v12 = vadd.f32 %v1704_v3, %v1685_v41 }
 0x4db   :  { %v1688_v46 = vpop.f32.mrf.mxu0 }
 0x4dc   :  { %v1712_v16 = vpack.c.bf16 %v1705_v12, %v1703_v1 }
 0x4de   :  { %3671 = vmatmul.msk.bf16.vlgmr.msra.gmra.mxu1 %vm557_vm2, %v1712_v16  ;;  %1796 = vmatmul.bf16.vlgmr.msra.gmra.mxu3 %v3676_v15 }
 0x4df   :  { %2038 = vmatpush.bf16.msra.mxu1 %v4659_v9 }
 0x4e1   :  { %v1707_v0 = vpop.f32.mrf.mxu2 }
 0x4e2   :  { %v1708_v28 = vadd.f32 %v1707_v0, %v1688_v46 }
 0x4e3   :  { %2039 = vmatpush.bf16.msra.mxu1 %v4669_v19  ;;  %v1690_v49 = vpop.f32.mrf.mxu0 }
 0x4e7   :  { %2040 = vmatpush.bf16.msra.mxu1 %v4678_v26 }
 0x4e9   :  { %v1709_v25 = vpop.f32.mrf.mxu2 }
 0x4ea   :  { %v1710_v30 = vadd.f32 %v1709_v25, %v1690_v49  ;;  %v4264_v49 = vld [vmem:[%s5822_s4 + $0x1c4] sm:$0xf] }
 0x4eb   :  { %2041 = vmatpush.bf16.msra.mxu1 %v4696_v29  ;;  %v1816_v58 = vpop.f32.mrf.mxu0 }
 0x4ec   :  { %v1713_v37 = vpack.c.bf16 %v1710_v30, %v1708_v28 }
 0x4ee   :  { %3672 = vmatmul.msk.bf16.gmra.mxu1 %vm557_vm2, %v1713_v37  ;;  %1801 = vmatmul.bf16.gmra.mxu3 %v3684_v35  ;;  %v3749_v37 = vld [vmem:[%s5822_s4 + $0x1d8] sm:$0xf0] }
 0x4ef   :  { %2042 = vmatpush.bf16.msra.mxu1 %v4713_v43 }
 0x4f3   :  { %v1818_v62 = vpop.f32.mrf.mxu0 }
 0x4fb   :  { %v1821_v33 = vpop.f32.mrf.mxu0 }
 0x4fe   :  { %3721 = vmatmul.msk.bf16.vlgmr.msrb.gmra.mxu3 %vm417_vm1, %v3712_v32  ;;  %1910 = vmatmul.bf16.vlgmr.msrb.gmra.mxu1 %v3708_v38 }
 0x50e   :  { %3722 = vmatmul.msk.bf16.gmra.mxu3 %vm417_vm1, %v3720_v55  ;;  %1915 = vmatmul.bf16.gmra.mxu1 %v3716_v44  ;;  %v4267_v55 = vld [vmem:[%s5822_s4 + $0x1d4] sm:$0xf0] }
 0x541   :  { %v1632_v31 = vpop.f32.mrf.mxu3 }
 0x542   :  { %v1642_v17 = vadd.f32 %v1632_v31, %v5356_v39  ;;  %v1075_v39 = vadd.f32 %v5242_v50, %v961_v6 }
 0x544   :  { %v1189_v1 = vadd.f32 %v5252_v2, %v1075_v39  ;;  %v3779_v39 = vld [vmem:[%s5822_s4 + $0x1f0] sm:$0xf] }
 0x546   :  { %v1303_v16 = vadd.f32 %v5256_v11, %v1189_v1  ;;  %v3741_v11 = vld [vmem:[%s5822_s4 + $0x1c8] sm:$0xf0]  ;;  %v4273_v1 = vld [vmem:[%s5822_s4 + $0x1f4] sm:$0xf0] }
 0x547   :  { %v3744_v23 = vor.u32 %v4264_v49, %v3741_v11 }
 0x548   :  { %v1417_v4 = vadd.f32 %v5354_v54, %v1303_v16  ;;  %v845_v16 = vadd.f32 %v5210_v22, %v5175_v59 }
 0x549   :  { %v5424_v52 = vpop.f32.mrf.mxu3  ;;  %3753 = vmatmul.msk.bf16.vlgmr.msra.gmra.mxu1 %vm417_vm1, %v3744_v23 }
 0x54a   :  { %v1531_v60 = vadd.f32 %v5365_v20, %v1417_v4 }
 0x551   :  { %v1637_v53 = vpop.f32.mrf.mxu3 }
 0x552   :  { %v1644_v13 = vadd.f32 %v1637_v53, %v5360_v48 }
 0x559   :  { %v1639_v34 = vpop.f32.mrf.mxu3 }
 0x55a   :  { %v1645_v2 = vadd.f32 %v1639_v34, %v1531_v60 }
 0x55b   :  { %v1746_v40 = vpop.f32.mrf.mxu1 }
 0x55c   :  { %v5427_v61 = vadd.f32 %v1746_v40, %v1642_v17  ;;  %v4271_v40 = vld [vmem:[%s5822_s4 + $0x1e4] sm:$0xf0] }
 0x561   :  { %v1797_v5 = vpop.f32.mrf.mxu3 }
 0x562   :  { %v1817_v48 = vadd.f32 %v1816_v58, %v1797_v5  ;;  %v3771_v58 = vld [vmem:[%s5822_s4 + $0x1e0] sm:$0xf]  ;;  %v4270_v5 = vld [vmem:[%s5822_s4 + $0x1e4] sm:$0xf] }
 0x563   :  { %v5431_v41 = vpop.f32.mrf.mxu1  ;;  %v3772_v6 = vor.u32 %v4271_v40, %v3771_v58 }
 0x569   :  { %v1799_v3 = vpop.f32.mrf.mxu3 }
 0x56a   :  { %v1819_v12 = vadd.f32 %v1818_v62, %v1799_v3  ;;  %v3776_v62 = vor.u32 %v4270_v5, %v3773_v10  ;;  %v4272_v3 = vld [vmem:[%s5822_s4 + $0x1f4] sm:$0xf] }
 0x56b   :  { %v1751_v15 = vpop.f32.mrf.mxu1 }
 0x56c   :  { %v1826_v46 = vpack.c.bf16 %v1819_v12, %v1817_v48  ;;  %v5437_v0 = vadd.f32 %v1751_v15, %v1644_v13  ;;  %v3748_v13 = vor.u32 %v4267_v55, %v3747_v47  ;;  %v3781_v48 = vld [vmem:[%s5822_s4 + $0x1f8] sm:$0xf0]  ;;  %v3780_v12 = vor.u32 %v4273_v1, %v3779_v39 }
 0x56d   :  { %v3784_v15 = vor.u32 %v4272_v3, %v3781_v48 }
 0x56e   :  { %3703 = vmatmul.msk.bf16.vlgmr.msrb.gmra.mxu2 %vm557_vm2, %v1826_v46  ;;  %v959_v46 = vadd.f32 %v5230_v42, %v845_v16 }
 0x56f   :  { %2152 = vmatpush.bf16.msrb.mxu2 %v4659_v9  ;;  %v1823_v9 = vpop.f32.mrf.mxu0 }
 0x570   :  { %v1073_v4 = vadd.f32 %v5240_v8, %v959_v46  ;;  %v4342_v46 = vld [vmem:[%s5825_s7] ss:$0 sm:$0xff] }
 0x571   :  { %v1802_v50 = vpop.f32.mrf.mxu3 }
 0x572   :  { %v1822_v28 = vadd.f32 %v1821_v33, %v1802_v50  ;;  %v1187_v33 = vadd.f32 %v5248_v57, %v1073_v4 }
 0x573   :  { %2153 = vmatpush.bf16.msrb.mxu2 %v4669_v19  ;;  %v1753_v54 = vpop.f32.mrf.mxu1  ;;  %v4266_v19 = vld [vmem:[%s5822_s4 + $0x1d4] sm:$0xf] }
 0x574   :  { %v5450_v21 = vadd.f32 %v1753_v54, %v1645_v2  ;;  %v3752_v63 = vor.u32 %v4266_v19, %v3749_v37  ;;  %v1301_v60 = vadd.f32 %v5246_v18, %v1187_v33  ;;  %v4269_v54 = vld [vmem:[%s5823_s5 + $0xe8] sm:$0xff]  ;;  %v4268_v18 = vld [vmem:[%s5823_s5 + $0xe0] sm:$0xff] }
 0x575   :  { %2085 = vmatpush.bf16.msra.mxu3 %v4269_v54 }
 0x576   :  { %3754 = vmatmul.msk.bf16.gmra.mxu1 %vm417_vm1, %v3752_v63  ;;  %v1415_v2 = vadd.f32 %v5351_v51, %v1301_v60 }
 0x577   :  { %2154 = vmatpush.bf16.msrb.mxu2 %v4678_v26 }
 0x578   :  { %v1529_v11 = vadd.f32 %v5358_v36, %v1415_v2 }
 0x579   :  { %v1804_v20 = vpop.f32.mrf.mxu3  ;;  %2086 = vmatpush.bf16.msra.mxu3 %v4268_v18 }
 0x57a   :  { %v1824_v25 = vadd.f32 %v1823_v9, %v1804_v20  ;;  %v1643_v59 = vadd.f32 %v5424_v52, %v1529_v11 }
 0x57b   :  { %2155 = vmatpush.bf16.msrb.mxu2 %v4696_v29  ;;  %v1911_v30 = vpop.f32.mrf.mxu1  ;;  %v3739_v29 = vld [vmem:[%s5822_s4 + $0x1c0] sm:$0xf] }
 0x57c   :  { %v1827_v35 = vpack.c.bf16 %v1824_v25, %v1822_v28  ;;  %v3740_v45 = vor.u32 %v4265_v14, %v3739_v29  ;;  %v1757_v22 = vadd.f32 %v5431_v41, %v1643_v59  ;;  %v4275_v41 = vld [vmem:[%s5823_s5 + $0xf8] sm:$0xff] }
 0x57d   :  { %2199 = vmatpush.bf16.msrb.mxu1 %v4275_v41  ;;  %v2265_v41 = vld [vmem:[%s5826_s8 + $0x8] sm:$0xff] }
 0x57e   :  { %3704 = vmatmul.msk.bf16.gmra.mxu2 %vm557_vm2, %v1827_v35 }
 0x57f   :  { %2156 = vmatpush.bf16.msrb.mxu2 %v4713_v43 }
 0x581   :  { %v1930_v26 = vpop.f32.mrf.mxu3 }
 0x582   :  { %v1931_v32 = vadd.f32 %v1930_v26, %v1911_v30 }
 0x583   :  { %v1913_v7 = vpop.f32.mrf.mxu1 }
 0x589   :  { %v1932_v24 = vpop.f32.mrf.mxu3 }
 0x58a   :  { %v1933_v38 = vadd.f32 %v1932_v24, %v1913_v7 }
 0x58b   :  { %v1916_v43 = vpop.f32.mrf.mxu1 }
 0x58c   :  { %v1940_v27 = vpack.c.bf16 %v1933_v38, %v1931_v32 }
 0x58e   :  { %3735 = vmatmul.msk.bf16.vlgmr.msra.gmra.mxu0 %vm557_vm2, %v1940_v27  ;;  %2024 = vmatmul.bf16.vlgmr.msra.gmra.mxu2 %v3740_v45 }
 0x591   :  { %v1935_v56 = vpop.f32.mrf.mxu3 }
 0x592   :  { %v1936_v17 = vadd.f32 %v1935_v56, %v1916_v43 }
 0x593   :  { %v1918_v44 = vpop.f32.mrf.mxu1 }
 0x599   :  { %v1937_v31 = vpop.f32.mrf.mxu3 }
 0x59a   :  { %v1938_v53 = vadd.f32 %v1937_v31, %v1918_v44 }
 0x59c   :  { %v1941_v34 = vpack.c.bf16 %v1938_v53, %v1936_v17 }
 0x59e   :  { %3736 = vmatmul.msk.bf16.gmra.mxu0 %vm557_vm2, %v1941_v34  ;;  %2029 = vmatmul.bf16.gmra.mxu2 %v3748_v13 }
 0x5ae   :  { %2138 = vmatmul.bf16.vlgmr.msrb.gmra.mxu0 %v3772_v6  ;;  %3785 = vmatmul.msk.bf16.vlgmr.msrb.gmra.mxu2 %vm417_vm1, %v3776_v62 }
 0x5be   :  { %2143 = vmatmul.bf16.gmra.mxu0 %v3780_v12  ;;  %3786 = vmatmul.msk.bf16.gmra.mxu2 %vm417_vm1, %v3784_v15  ;;  %v4341_v12 = vld [vmem:[%s5824_s6] ss:$0 sm:$0xff]  ;;  %s3202_s6 = sshll.u32 %s4374_s1, 4  ;;  %s3203_s6 = int_to_ptr.vmem [resolvable:$true] %s3202_s6 }
 0x5f1   :  { %v1860_v50 = vpop.f32.mrf.mxu2 }
 0x5f2   :  { %v1870_v49 = vadd.f32 %v1860_v50, %v5427_v61  ;;  %v2044_v61 = vpop.f32.mrf.mxu1 }
 0x5f9   :  { %v1862_v42 = vpop.f32.mrf.mxu2 }
 0x5fa   :  { %v1871_v8 = vadd.f32 %v1862_v42, %v1757_v22  ;;  %v2046_v25 = vpop.f32.mrf.mxu1 }
 0x601   :  { %v1865_v57 = vpop.f32.mrf.mxu2 }
 0x602   :  { %v1872_v51 = vadd.f32 %v1865_v57, %v5437_v0  ;;  %v4274_v0 = vld [vmem:[%s5823_s5 + $0xf0] sm:$0xff]  ;;  %v2049_v7 = vpop.f32.mrf.mxu1 }
 0x603   :  { %2200 = vmatpush.bf16.msrb.mxu1 %v4274_v0  ;;  %v4281_v0 = vld [vmem:[%s5827_s9 + $0x28] sm:$0xff] }
 0x609   :  { %v1867_v36 = vpop.f32.mrf.mxu2 }
 0x60a   :  { %v1873_v23 = vadd.f32 %v1867_v36, %v5450_v21  ;;  %v2051_v32 = vpop.f32.mrf.mxu1 }
 0x60b   :  { %v1974_v9 = vpop.f32.mrf.mxu0 }
 0x60c   :  { %v1984_v20 = vadd.f32 %v1974_v9, %v1870_v49 }
 0x611   :  { %v2025_v52 = vpop.f32.mrf.mxu2 }
 0x612   :  { %v2045_v19 = vadd.f32 %v2044_v61, %v2025_v52 }
 0x613   :  { %v1976_v28 = vpop.f32.mrf.mxu0 }
 0x614   :  { %v1985_v30 = vadd.f32 %v1976_v28, %v1871_v8 }
 0x619   :  { %v2027_v35 = vpop.f32.mrf.mxu2 }
 0x61a   :  { %v2047_v37 = vadd.f32 %v2046_v25, %v2027_v35  ;;  %v4283_v35 = vld [vmem:[%s5827_s9 + $0x38] sm:$0xff] }
 0x61b   :  { %v1979_v26 = vpop.f32.mrf.mxu0 }
 0x61c   :  { %v2054_v21 = vpack.c.bf16 %v2047_v37, %v2045_v19  ;;  %v1986_v63 = vadd.f32 %v1979_v26, %v1872_v51  ;;  %v2266_v19 = vpack.c.bf16 %v2265_v41, %v2265_v41  ;;  %v4282_v26 = vld [vmem:[%s5827_s9 + $0x30] sm:$0xff] }
 0x61e   :  { %3767 = vmatmul.msk.bf16.vlgmr.msra.gmra.mxu3 %vm557_vm2, %v2054_v21  ;;  %v4280_v21 = vld [vmem:[%s5827_s9 + $0x20] sm:$0xff] }
 0x621   :  { %v2030_v29 = vpop.f32.mrf.mxu2 }
 0x622   :  { %v2050_v45 = vadd.f32 %v2049_v7, %v2030_v29  ;;  %v2512_v29 = vld [vmem:[%s5826_s8 + $0x20] sm:$0xff] }
 0x623   :  { %v1981_v14 = vpop.f32.mrf.mxu0 }
 0x624   :  { %v1987_v24 = vadd.f32 %v1981_v14, %v1873_v23  ;;  %v2513_v14 = vpack.c.bf16 %v2512_v29, %v2512_v29 }
 0x629   :  { %v2032_v38 = vpop.f32.mrf.mxu2 }
 0x62a   :  { %v2052_v27 = vadd.f32 %v2051_v32, %v2032_v38  ;;  %v4278_v32 = vld [vmem:[%s5827_s9 + $0x10] sm:$0xff]  ;;  %v4277_v38 = vld [vmem:[%s5827_s9 + $0x8] sm:$0xff] }
 0x62b   :  { %v2139_v43 = vpop.f32.mrf.mxu0 }
 0x62c   :  { %v2055_v56 = vpack.c.bf16 %v2052_v27, %v2050_v45  ;;  %v4287_v45 = vld [vmem:[%s5827_s9 + $0x58] sm:$0xff]  ;;  %v4276_v27 = vld [vmem:[%s5827_s9] sm:$0xff] }
 0x62d   :  { %2433 = vmatpush.bf16.msra.mxu1 %v4287_v45 }
 0x62e   :  { %3768 = vmatmul.msk.bf16.gmra.mxu3 %vm557_vm2, %v2055_v56  ;;  %v4285_v56 = vld [vmem:[%s5827_s9 + $0x48] sm:$0xff] }
 0x631   :  { %v2158_v47 = vpop.f32.mrf.mxu2 }
 0x632   :  { %v2159_v31 = vadd.f32 %v2158_v47, %v2139_v43  ;;  %v4286_v43 = vld [vmem:[%s5827_s9 + $0x50] sm:$0xff]  ;;  %v4284_v47 = vld [vmem:[%s5827_s9 + $0x40] sm:$0xff] }
 0x633   :  { %v2141_v55 = vpop.f32.mrf.mxu0  ;;  %2434 = vmatpush.bf16.msra.mxu1 %v4286_v43 }
 0x637   :  { %2435 = vmatpush.bf16.msra.mxu1 %v4285_v56  ;;  %v4304_v56 = vld [vmem:[%s5827_s9 + $0xe0] sm:$0xff] }
 0x639   :  { %v2160_v44 = vpop.f32.mrf.mxu2 }
 0x63a   :  { %v2161_v17 = vadd.f32 %v2160_v44, %v2141_v55 }
 0x63b   :  { %v2144_v13 = vpop.f32.mrf.mxu0  ;;  %2436 = vmatpush.bf16.msra.mxu1 %v4284_v47 }
 0x63c   :  { %v2168_v53 = vpack.c.bf16 %v2161_v17, %v2159_v31  ;;  %v2650_v31 = vld [vmem:[%s5826_s8 + $0x30] sm:$0xff] }
 0x63d   :  { %v2651_v17 = vpack.c.bf16 %v2650_v31, %v2650_v31 }
 0x63e   :  { %3799 = vmatmul.msk.bf16.vlgmr.msrb.gmra.mxu1 %vm557_vm2, %v2168_v53 }
 0x641   :  { %v2163_v34 = vpop.f32.mrf.mxu2 }
 0x642   :  { %v2164_v5 = vadd.f32 %v2163_v34, %v2144_v13 }
 0x643   :  { %v2146_v58 = vpop.f32.mrf.mxu0 }
 0x649   :  { %v2165_v40 = vpop.f32.mrf.mxu2 }
 0x64a   :  { %v2166_v10 = vadd.f32 %v2165_v40, %v2146_v58  ;;  %v2443_v58 = vld [vmem:[%s5826_s8 + $0x18] sm:$0xff] }
 0x64c   :  { %v2169_v6 = vpack.c.bf16 %v2166_v10, %v2164_v5  ;;  %v2444_v5 = vpack.c.bf16 %v2443_v58, %v2443_v58 }
 0x64e   :  { %3800 = vmatmul.msk.bf16.gmra.mxu1 %vm557_vm2, %v2169_v6 }
 0x6a1   :  { %v2088_v62 = vpop.f32.mrf.mxu3 }
 0x6a2   :  { %v2098_v3 = vadd.f32 %v2088_v62, %v1984_v20  ;;  %v2788_v62 = vld [vmem:[%s5826_s8 + $0x40] sm:$0xff] }
 0x6a9   :  { %v2090_v39 = vpop.f32.mrf.mxu3 }
 0x6aa   :  { %v2099_v15 = vadd.f32 %v2090_v39, %v1985_v30  ;;  %v2238_v30 = vld [vmem:[%s5826_s8] sm:$0xff]  ;;  %v2789_v39 = vpack.c.bf16 %v2788_v62, %v2788_v62  ;;  %v4319_v62 = vld [vmem:[%s5830_s12 + $0x38] sm:$0xff] }
 0x6ab   :  { %v2239_v37 = vpack.c.bf16 %v2238_v30, %v2238_v30  ;;  %v4310_v30 = vld [vmem:[%s5827_s9 + $0x110] sm:$0xff] }
 0x6b1   :  { %v2093_v60 = vpop.f32.mrf.mxu3 }
 0x6b2   :  { %v2100_v22 = vadd.f32 %v2093_v60, %v1986_v63  ;;  %v2374_v63 = vld [vmem:[%s5826_s8 + $0x10] sm:$0xff]  ;;  %v4289_v60 = vld [vmem:[%s5827_s9 + $0x68] sm:$0xff] }
 0x6b3   :  { %v2375_v7 = vpack.c.bf16 %v2374_v63, %v2374_v63  ;;  %v4307_v63 = vld [vmem:[%s5827_s9 + $0xf8] sm:$0xff] }
 0x6b9   :  { %v2095_v18 = vpop.f32.mrf.mxu3 }
 0x6ba   :  { %v2101_v57 = vadd.f32 %v2095_v18, %v1987_v24  ;;  %v4279_v24 = vld [vmem:[%s5827_s9 + $0x18] sm:$0xff]  ;;  %v4297_v18 = vld [vmem:[%s5827_s9 + $0xa8] sm:$0xff] }
 0x6bb   :  { %v2202_v1 = vpop.f32.mrf.mxu1  ;;  %2365 = vmatpush.bf16.msra.mxu2 %v4279_v24 }
 0x6bc   :  { %v2212_v48 = vadd.f32 %v2202_v1, %v2098_v3  ;;  %v2581_v3 = vld [vmem:[%s5826_s8 + $0x28] sm:$0xff] }
 0x6be   :  { %v2220_v16 = vmul.f32 %v4341_v12, %v2212_v48  ;;  %v2582_v48 = vpack.c.bf16 %v2581_v3, %v2581_v3  ;;  %v4314_v3 = vld [vmem:[%s5830_s12 + $0x10] sm:$0xff] }
 0x6bf   :  { %2366 = vmatpush.bf16.msra.mxu2 %v4278_v32 }
 0x6c0   :  { %v2228_v50 = vadd.f32 %v4342_v46, %v2220_v16  ;;  %v4291_v16 = vld [vmem:[%s5827_s9 + $0x78] sm:$0xff] }
 0x6c2   :  { %v2232_v11 = vmax.f32 %v2228_v50, 0.0  ;;  %v4293_v50 = vld [vmem:[%s5827_s9 + $0x88] sm:$0xff] }
 0x6c3   :  { %v2204_v4 = vpop.f32.mrf.mxu1  ;;  %2367 = vmatpush.bf16.msra.mxu2 %v4277_v38  ;;  %v4306_v38 = vld [vmem:[%s5827_s9 + $0xf0] sm:$0xff] }
 0x6c4   :  { %v2213_v33 = vadd.f32 %v2204_v4, %v2099_v15  ;;  %v4290_v4 = vld [vmem:[%s5827_s9 + $0x70] sm:$0xff] }
 0x6c6   :  { %v2221_v2 = vmul.f32 %v4341_v12, %v2213_v33  ;;  %v4294_v33 = vld [vmem:[%s5827_s9 + $0x90] sm:$0xff] }
 0x6c7   :  { %2368 = vmatpush.bf16.msra.mxu2 %v4276_v27  ;;  %v4305_v27 = vld [vmem:[%s5827_s9 + $0xe8] sm:$0xff] }
 0x6c8   :  { %v2229_v49 = vadd.f32 %v4342_v46, %v2221_v2  ;;  %v4288_v2 = vld [vmem:[%s5827_s9 + $0x60] sm:$0xff] }
 0x6ca   :  { %v2233_v54 = vmax.f32 %v2229_v49, 0.0  ;;  %v4292_v49 = vld [vmem:[%s5827_s9 + $0x80] sm:$0xff] }
 0x6cb   :  { %v2207_v59 = vpop.f32.mrf.mxu1  ;;  %2502 = vmatpush.bf16.msrb.mxu2 %v4291_v16 }
 0x6cc   :  { %v5539_v42 = vpack.c.bf16 %v2233_v54, %v2232_v11  ;;  %v2214_v8 = vadd.f32 %v2207_v59, %v2100_v22  ;;  %v4299_v54 = vld [vmem:[%s5827_s9 + $0xb8] sm:$0xff] }
 0x6cd   :  { %v4303_v22 = vld [vmem:[%s5827_s9 + $0xd8] sm:$0xff] }
 0x6ce   :  { %v2222_v51 = vmul.f32 %v4341_v12, %v2214_v8  ;;  %v4302_v8 = vld [vmem:[%s5827_s9 + $0xd0] sm:$0xff] }
 0x6cf   :  { %2503 = vmatpush.bf16.msrb.mxu2 %v4290_v4 }
 0x6d0   :  { %v2230_v23 = vadd.f32 %v4342_v46, %v2222_v51  ;;  %v4301_v51 = vld [vmem:[%s5827_s9 + $0xc8] sm:$0xff] }
 0x6d2   :  { %v2234_v52 = vmax.f32 %v2230_v23, 0.0  ;;  %v4300_v23 = vld [vmem:[%s5827_s9 + $0xc0] sm:$0xff] }
 0x6d3   :  { %v2209_v36 = vpop.f32.mrf.mxu1  ;;  %2504 = vmatpush.bf16.msrb.mxu2 %v4289_v60  ;;  %v4321_v60 = vld [vmem:[%s5830_s12 + $0x48] sm:$0xff] }
 0x6d4   :  { %v2215_v61 = vadd.f32 %v2209_v36, %v2101_v57 }
 0x6d6   :  { %v2223_v9 = vmul.f32 %v4341_v12, %v2215_v61  ;;  %v2719_v12 = vld [vmem:[%s5826_s8 + $0x38] sm:$0xff]  ;;  %v4296_v61 = vld [vmem:[%s5827_s9 + $0xa0] sm:$0xff] }
 0x6d7   :  { %v2720_v15 = vpack.c.bf16 %v2719_v12, %v2719_v12  ;;  %2505 = vmatpush.bf16.msrb.mxu2 %v4288_v2  ;;  %v4322_v12 = vld [vmem:[%s5830_s12 + $0x50] sm:$0xff]  ;;  %v4312_v2 = vld [vmem:[%s5830_s12] sm:$0xff] }
 0x6d8   :  { %v2231_v20 = vadd.f32 %v4342_v46, %v2223_v9  ;;  %v4295_v46 = vld [vmem:[%s5827_s9 + $0x98] sm:$0xff] }
 0x6d9   :  { %2571 = vmatpush.bf16.msrb.mxu1 %v4295_v46  ;;  %v4313_v46 = vld [vmem:[%s5830_s12 + $0x8] sm:$0xff] }
 0x6da   :  { %v2235_v28 = vmax.f32 %v2231_v20, 0.0 }
 0x6dc   :  { %v5541_v25 = vpack.c.bf16 %v2235_v28, %v2234_v52  ;;  %v4311_v52 = vld [vmem:[%s5827_s9 + $0x118] sm:$0xff] }
 0x6dd   :  { %2572 = vmatpush.bf16.msrb.mxu1 %v4294_v33  ;;  %v4317_v33 = vld [vmem:[%s5830_s12 + $0x28] sm:$0xff] }
 0x6de   :  { %2249 = vmatpush.bf16.msrb.mxu3 %v5541_v25  ;;  %2276 = vmatpush.bf16.msra.mxu0 %v5541_v25 }
 0x6e1   :  { %2573 = vmatpush.bf16.msrb.mxu1 %v4293_v50  ;;  %v4325_v50 = vld [vmem:[%s5830_s12 + $0x68] sm:$0xff] }
 0x6e2   :  { %2250 = vmatpush.bf16.msrb.mxu3 %v5539_v42  ;;  %2277 = vmatpush.bf16.msra.mxu0 %v5539_v42 }
 0x6e5   :  { %3802 = vmatmul.msk.bf16.vlgmr.msra.gmra.mxu0 %vm557_vm2, %v2266_v19  ;;  %3801 = vmatmul.msk.bf16.vlgmr.msrb.gmra.mxu3 %vm557_vm2, %v2239_v37 }
 0x6e6   :  { %2325 = vmatpush.bf16.msra.mxu3 %v4283_v35  ;;  %2385 = vmatpush.bf16.msrb.mxu0 %v5541_v25 }
 0x6e7   :  { %2574 = vmatpush.bf16.msrb.mxu1 %v4292_v49  ;;  %v4316_v49 = vld [vmem:[%s5830_s12 + $0x20] sm:$0xff] }
 0x6ea   :  { %2326 = vmatpush.bf16.msra.mxu3 %v4282_v26  ;;  %2386 = vmatpush.bf16.msrb.mxu0 %v5539_v42  ;;  %v4309_v26 = vld [vmem:[%s5827_s9 + $0x108] sm:$0xff] }
 0x6ee   :  { %2523 = vmatpush.bf16.msra.mxu0 %v5541_v25  ;;  %2327 = vmatpush.bf16.msra.mxu3 %v4281_v0 }
 0x6f2   :  { %2524 = vmatpush.bf16.msra.mxu0 %v5539_v42  ;;  %2328 = vmatpush.bf16.msra.mxu3 %v4280_v21 }
 0x6f5   :  { %3845 = vmatmul.msk.bf16.vlgmr.msrb.gmra.mxu0 %vm557_vm2, %v2375_v7  ;;  %v4308_v7 = vld [vmem:[%s5827_s9 + $0x100] sm:$0xff] }
 0x6f6   :  { %2454 = vmatpush.bf16.msrb.mxu3 %v5541_v25  ;;  %2661 = vmatpush.bf16.msrb.mxu0 %v5541_v25 }
 0x6fa   :  { %2455 = vmatpush.bf16.msrb.mxu3 %v5539_v42  ;;  %2662 = vmatpush.bf16.msrb.mxu0 %v5539_v42 }
 0x705   :  { %3897 = vmatmul.msk.bf16.vlgmr.msra.gmra.mxu0 %vm557_vm2, %v2513_v14 }
 0x706   :  { %2799 = vmatpush.bf16.msra.mxu0 %v5541_v25 }
 0x70a   :  { %2800 = vmatpush.bf16.msra.mxu0 %v5539_v42 }
 0x715   :  { %3949 = vmatmul.msk.bf16.vlgmr.msrb.gmra.mxu0 %vm557_vm2, %v2651_v17 }
 0x725   :  { %4001 = vmatmul.msk.bf16.vlgmr.msra.gmra.mxu0 %vm557_vm2, %v2789_v39  ;;  %v4323_v39 = vld [vmem:[%s5830_s12 + $0x58] sm:$0xff] }
 0x726   :  { %3009 = vmatpush.bf16.msrb.mxu0 %v4323_v39 }
 0x72a   :  { %3010 = vmatpush.bf16.msrb.mxu0 %v4322_v12 }
 0x72e   :  { %3011 = vmatpush.bf16.msrb.mxu0 %v4321_v60 }
 0x762   :  { %v2279_v55 = vpop.f32.mrf.mxu0 }
 0x763   :  { %v2283_v44 = vpack.c.bf16 %v2279_v55, %v2279_v55 }
 0x765   :  { %3827 = vmatmul.msk.bf16.vlgmr.msra.gmra.mxu3 %vm2317_vm3, %v2283_v44 }
 0x766   :  { %2592 = vmatpush.bf16.msra.mxu3 %v5541_v25 }
 0x768   :  { %v2252_v53 = vpop.f32.mrf.mxu3 }
 0x769   :  { %v2256_v13 = vpack.c.bf16 %v2252_v53, %v2252_v53 }
 0x76a   :  { %2593 = vmatpush.bf16.msra.mxu3 %v5539_v42  ;;  %v2281_v34 = vpop.f32.mrf.mxu0 }
 0x76b   :  { %3844 = vmatmul.msk.bf16.vlgmr.msra.gmra.mxu2 %vm2317_vm3, %v2256_v13 }
 0x76c   :  { %2640 = vmatpush.bf16.msra.mxu2 %v4299_v54  ;;  %v4324_v54 = vld [vmem:[%s5830_s12 + $0x60] sm:$0xff] }
 0x770   :  { %v2254_v40 = vpop.f32.mrf.mxu3 }
 0x772   :  { %v2388_v10 = vpop.f32.mrf.mxu0 }
 0x773   :  { %v2392_v6 = vpack.c.bf16 %v2388_v10, %v2388_v10 }
 0x775   :  { %3871 = vmatmul.msk.bf16.vlgmr.msrb.gmra.mxu3 %vm557_vm2, %v2444_v5  ;;  %3870 = vmatmul.msk.bf16.vlgmr.msra.gmra.mxu1 %vm2317_vm3, %v2392_v6  ;;  %v4315_v5 = vld [vmem:[%s5830_s12 + $0x18] sm:$0xff] }
 0x776   :  { %2730 = vmatpush.bf16.msrb.mxu3 %v5541_v25  ;;  %2709 = vmatpush.bf16.msra.mxu1 %v4303_v22  ;;  %v4335_v22 = vld [vmem:[%s5832_s14 + $0x38] sm:$0xff] }
 0x77a   :  { %2731 = vmatpush.bf16.msrb.mxu3 %v5539_v42  ;;  %v2390_v1 = vpop.f32.mrf.mxu0  ;;  %v4298_v42 = vld [vmem:[%s5827_s9 + $0xb0] sm:$0xff]  ;;  %2710 = vmatpush.bf16.msra.mxu1 %v4302_v8 }
 0x77b   :  { %2641 = vmatpush.bf16.msra.mxu2 %v4298_v42  ;;  %v4327_v1 = vld [vmem:[%s5830_s12 + $0x78] sm:$0xff]  ;;  %v4334_v42 = vld [vmem:[%s5832_s14 + $0x30] sm:$0xff] }
 0x77e   :  { %2711 = vmatpush.bf16.msra.mxu1 %v4301_v51 }
 0x77f   :  { %2642 = vmatpush.bf16.msra.mxu2 %v4297_v18  ;;  %v4333_v18 = vld [vmem:[%s5832_s14 + $0x28] sm:$0xff] }
 0x782   :  { %v2526_v11 = vpop.f32.mrf.mxu0  ;;  %2712 = vmatpush.bf16.msra.mxu1 %v4300_v23 }
 0x783   :  { %v2530_v59 = vpack.c.bf16 %v2526_v11, %v2526_v11  ;;  %2643 = vmatpush.bf16.msra.mxu2 %v4296_v61  ;;  %v4320_v11 = vld [vmem:[%s5830_s12 + $0x40] sm:$0xff] }
 0x784   :  { %3012 = vmatpush.bf16.msrb.mxu0 %v4320_v11 }
 0x785   :  { %3923 = vmatmul.msk.bf16.vlgmr.msra.gmra.mxu3 %vm557_vm2, %v2582_v48  ;;  %3922 = vmatmul.msk.bf16.vlgmr.msrb.gmra.mxu1 %vm2317_vm3, %v2530_v59  ;;  %v4318_v48 = vld [vmem:[%s5830_s12 + $0x30] sm:$0xff] }
 0x786   :  { %2847 = vmatpush.bf16.msrb.mxu1 %v4311_v52  ;;  %2919 = vmatpush.bf16.msra.mxu3 %v4319_v62 }
 0x78a   :  { %v2528_v57 = vpop.f32.mrf.mxu0  ;;  %2848 = vmatpush.bf16.msrb.mxu1 %v4310_v30  ;;  %2920 = vmatpush.bf16.msra.mxu3 %v4318_v48 }
 0x78e   :  { %2849 = vmatpush.bf16.msrb.mxu1 %v4309_v26  ;;  %2921 = vmatpush.bf16.msra.mxu3 %v4317_v33 }
 0x792   :  { %v2664_v9 = vpop.f32.mrf.mxu0  ;;  %2850 = vmatpush.bf16.msrb.mxu1 %v4308_v7  ;;  %2922 = vmatpush.bf16.msra.mxu3 %v4316_v49  ;;  %v4330_v7 = vld [vmem:[%s5832_s14 + $0x10] sm:$0xff] }
 0x793   :  { %v2668_v20 = vpack.c.bf16 %v2664_v9, %v2664_v9 }
 0x795   :  { %3975 = vmatmul.msk.bf16.vlgmr.msrb.gmra.mxu3 %vm557_vm2, %v2720_v15  ;;  %3974 = vmatmul.msk.bf16.vlgmr.msra.gmra.mxu1 %vm2317_vm3, %v2668_v20  ;;  %v4326_v15 = vld [vmem:[%s5830_s12 + $0x70] sm:$0xff]  ;;  %v4343_v20 = vld [vmem:[%s5828_s10] ss:$0 sm:$0xff]  ;;  %s3204_s12 = sshll.u32 %s5836_s18, 4  ;;  %s3205_s12 = int_to_ptr.hbm [resolvable:$true] %s3204_s12 }
 0x796   :  { %3060 = vmatpush.bf16.msra.mxu1 %v4327_v1  ;;  %3145 = vmatpush.bf16.msrb.mxu3 %v4335_v22 }
 0x79a   :  { %v2666_v19 = vpop.f32.mrf.mxu0  ;;  %3061 = vmatpush.bf16.msra.mxu1 %v4326_v15  ;;  %3146 = vmatpush.bf16.msrb.mxu3 %v4334_v42 }
 0x79e   :  { %3062 = vmatpush.bf16.msra.mxu1 %v4325_v50  ;;  %3147 = vmatpush.bf16.msrb.mxu3 %v4333_v18 }
 0x7a2   :  { %v2802_v14 = vpop.f32.mrf.mxu0  ;;  %3063 = vmatpush.bf16.msra.mxu1 %v4324_v54 }
 0x7a3   :  { %v2806_v32 = vpack.c.bf16 %v2802_v14, %v2802_v14  ;;  %v4328_v14 = vld [vmem:[%s5832_s14] sm:$0xff] }
 0x7a5   :  { %4026 = vmatmul.msk.bf16.vlgmr.msrb.gmra.mxu1 %vm2317_vm3, %v2806_v32 }
 0x7aa   :  { %v2804_v43 = vpop.f32.mrf.mxu0 }
 0x7e8   :  { %v2330_v36 = vpop.f32.mrf.mxu3 }
 0x7ee   :  { %v2370_v28 = vpop.f32.mrf.mxu2 }
 0x7ef   :  { %v2371_v25 = vadd.f32 %v2370_v28, %v2330_v36  ;;  %v4344_v28 = vld [vmem:[%s5829_s11] ss:$0 sm:$0xff] }
 0x7f0   :  { %v2332_v41 = vpop.f32.mrf.mxu3 }
 0x7f2   :  { %v2438_v35 = vpop.f32.mrf.mxu1 }
 0x7f3   :  { %v5692_v37 = vadd.f32 %v2438_v35, %v2371_v25 }
 0x7f6   :  { %v2372_v0 = vpop.f32.mrf.mxu2 }
 0x7f8   :  { %v2457_v21 = vpop.f32.mrf.mxu3 }
 0x7f9   :  { %v2461_v29 = vpack.c.bf16 %v2457_v21, %v2457_v21  ;;  %v4332_v21 = vld [vmem:[%s5832_s14 + $0x20] sm:$0xff] }
 0x7fa   :  { %v2440_v24 = vpop.f32.mrf.mxu1  ;;  %3148 = vmatpush.bf16.msrb.mxu3 %v4332_v21 }
 0x7fb   :  { %3896 = vmatmul.msk.bf16.vlgmr.msrb.gmra.mxu2 %vm2317_vm3, %v2461_v29  ;;  %v4329_v29 = vld [vmem:[%s5832_s14 + $0x8] sm:$0xff] }
 0x7fc   :  { %2778 = vmatpush.bf16.msrb.mxu2 %v4307_v63  ;;  %v4331_v63 = vld [vmem:[%s5832_s14 + $0x18] sm:$0xff] }
 0x7fe   :  { %3149 = vmatpush.bf16.msrb.mxu3 %v4331_v63 }
 0x800   :  { %v2459_v45 = vpop.f32.mrf.mxu3  ;;  %2779 = vmatpush.bf16.msrb.mxu2 %v4306_v38 }
 0x802   :  { %v2576_v13 = vpop.f32.mrf.mxu1  ;;  %3150 = vmatpush.bf16.msrb.mxu3 %v4330_v7 }
 0x804   :  { %2780 = vmatpush.bf16.msrb.mxu2 %v4305_v27 }
 0x806   :  { %3151 = vmatpush.bf16.msrb.mxu3 %v4329_v29 }
 0x808   :  { %v2595_v47 = vpop.f32.mrf.mxu3  ;;  %2781 = vmatpush.bf16.msrb.mxu2 %v4304_v56 }
 0x809   :  { %v2599_v55 = vpack.c.bf16 %v2595_v47, %v2595_v47  ;;  %v4345_v47 = vld [vmem:[%s5831_s13] ss:$0 sm:$0xff] }
 0x80a   :  { %v2578_v34 = vpop.f32.mrf.mxu1  ;;  %3152 = vmatpush.bf16.msrb.mxu3 %v4328_v14 }
 0x80b   :  { %3948 = vmatmul.msk.bf16.vlgmr.msra.gmra.mxu2 %vm2317_vm3, %v2599_v55 }
 0x80c   :  { %2959 = vmatpush.bf16.msra.mxu2 %v4315_v5  ;;  %v4346_v5 = vld [vmem:[%s5833_s15] ss:$0 sm:$0xff] }
 0x810   :  { %v2597_v44 = vpop.f32.mrf.mxu3  ;;  %2960 = vmatpush.bf16.msra.mxu2 %v4314_v3  ;;  %v4347_v3 = vld [vmem:[%s5835_s17] ss:$0 sm:$0xff] }
 0x812   :  { %v2714_v58 = vpop.f32.mrf.mxu1 }
 0x814   :  { %2961 = vmatpush.bf16.msra.mxu2 %v4313_v46 }
 0x818   :  { %v2733_v31 = vpop.f32.mrf.mxu3  ;;  %2962 = vmatpush.bf16.msra.mxu2 %v4312_v2 }
 0x819   :  { %v2737_v17 = vpack.c.bf16 %v2733_v31, %v2733_v31 }
 0x81a   :  { %v2716_v40 = vpop.f32.mrf.mxu1 }
 0x81b   :  { %4000 = vmatmul.msk.bf16.vlgmr.msrb.gmra.mxu2 %vm2317_vm3, %v2737_v17  ;;  %v4336_v40 = vld [vmem:[%s5834_s16] sm:$0xff] }
 0x820   :  { %v2735_v53 = vpop.f32.mrf.mxu3 }
 0x822   :  { %v2852_v10 = vpop.f32.mrf.mxu1 }
 0x82a   :  { %v2854_v16 = vpop.f32.mrf.mxu1 }
 0x87e   :  { %v2507_v6 = vpop.f32.mrf.mxu2 }
 0x87f   :  { %v2511_v8 = vadd.f32 %v2507_v6, %v5692_v37 }
 0x881   :  { %v2580_v51 = vadd.f32 %v2576_v13, %v2511_v8 }
 0x886   :  { %v2509_v4 = vpop.f32.mrf.mxu2 }
 0x88e   :  { %v2645_v59 = vpop.f32.mrf.mxu2 }
 0x88f   :  { %v2649_v36 = vadd.f32 %v2645_v59, %v2580_v51 }
 0x891   :  { %v2718_v61 = vadd.f32 %v2714_v58, %v2649_v36  ;;  %v4337_v58 = vld [vmem:[%s5834_s16 + $0x8] sm:$0xff] }
 0x892   :  { %3189 = vmatpush.bf16.msrb.mxu2 %v4337_v58 }
 0x896   :  { %v2647_v57 = vpop.f32.mrf.mxu2  ;;  %3190 = vmatpush.bf16.msrb.mxu2 %v4336_v40 }
 0x89e   :  { %v2783_v23 = vpop.f32.mrf.mxu2 }
 0x89f   :  { %v2787_v9 = vadd.f32 %v2783_v23, %v2718_v61 }
 0x8a1   :  { %v2856_v52 = vadd.f32 %v2852_v10, %v2787_v9 }
 0x8a3   :  { %v2861_v25 = vmul.f32 %v4343_v20, %v2856_v52 }
 0x8a5   :  { %v2866_v41 = vadd.f32 %v4344_v28, %v2861_v25 }
 0x8a6   :  { %v2785_v30 = vpop.f32.mrf.mxu2 }
 0x8a7   :  { %v2867_v35 = vmax.f32 %v2866_v41, 0.0 }
 0x8a9   :  { %v2868_v19 = vpack.c.bf16 %v2867_v35, %v2867_v35 }
 0x8ab   :  { %v2887_v37 = vrot.slane %v2868_v19, 1  ;;  %v2977_v26 = vrot.slane %v2868_v19, 2  ;;  %v3028_v0 = vrot.slane %v2868_v19, 3  ;;  %4068 = vmatmul.msk.bf16.vlgmr.msra.gmra.mxu2 %vm2317_vm3, %v2868_v19 }
 0x8ad   :  { %4051 = vmatmul.msk.bf16.vlgmr.msra.gmra.mxu3 %vm2317_vm3, %v2887_v37  ;;  %4093 = vmatmul.msk.bf16.vlgmr.msrb.gmra.mxu0 %vm2317_vm3, %v2977_v26 }
 0x8ae   :  { %4118 = vmatmul.msk.bf16.vlgmr.msra.gmra.mxu1 %vm2317_vm3, %v3028_v0 }
 0x92a   :  { %v3014_v24 = vpop.f32.mrf.mxu0 }
 0x92b   :  { %v3065_v32 = vpop.f32.mrf.mxu1 }
 0x92e   :  { %v2964_v38 = vpop.f32.mrf.mxu2 }
 0x930   :  { %v2924_v45 = vpop.f32.mrf.mxu3 }
 0x931   :  { %v2965_v27 = vadd.f32 %v2964_v38, %v2924_v45 }
 0x932   :  { %v3016_v43 = vpop.f32.mrf.mxu0 }
 0x933   :  { %v3018_v56 = vadd.f32 %v3014_v24, %v2965_v27  ;;  %v3067_v55 = vpop.f32.mrf.mxu1 }
 0x935   :  { %v3069_v44 = vadd.f32 %v3065_v32, %v3018_v56 }
 0x936   :  { %v2966_v31 = vpop.f32.mrf.mxu2 }
 0x937   :  { %v3074_v17 = vadd.f32 %v4345_v47, %v3069_v44 }
 0x938   :  { %v2926_v53 = vpop.f32.mrf.mxu3 }
 0x939   :  { %v3075_v13 = vmax.f32 %v3074_v17, 0.0 }
 0x93b   :  { %v3076_v34 = vpack.c.bf16 %v3075_v13, %v3075_v13 }
 0x93d   :  { %3153 = vmatmul.bf16.vlgmr.msrb.gmra.mxu3 %v3076_v34 }
 0x9c0   :  { %v3154_v10 = vpop.f32.mrf.mxu3 }
 0x9c1   :  { %v3155_v6 = vadd.f32 %v4346_v5, %v3154_v10 }
 0x9c3   :  { %v3158_v62 = vmax.f32 %v3155_v6, 0.0 }
 0x9c5   :  { %v3159_v39 = vpack.c.bf16 %v3158_v62, %v3158_v62 }
 0x9c7   :  { %4159 = vmatmul.msk.bf16.vlgmr.msrb.gmra.mxu2 %vm557_vm2, %v3159_v39 }
 0x9c8   :  { %v3156_v1 = vpop.f32.mrf.mxu3 }
 0xa4a   :  { %v3192_v48 = vpop.f32.mrf.mxu2 }
 0xa4b   :  { %v3193_v12 = vadd.f32 %v4347_v3, %v3192_v48 }
 0xa4d   :  { %3196 = vst [vmem:[#allocation2] sm:$0x3] %v3193_v12 }
 0xa4e   :  { %3207 = dma.vmem_to_hbm [thread:$0]  %s3203_s6, 32, %s3205_s12, [#allocation3]  }
 0xa52   :  { %v3194_v15 = vpop.f32.mrf.mxu2 }
 0xa53   :  { %4372 = dma.done.wait [#allocation3], 32  }
 0xa54   :  { %4373 = vsyncadd [#allocation3], 4294967264 }
 0xa55   :  { %3212 = vsyncpa [#allocation3], 1 }

</bundles_post_ra>
